<compile_context>
chip_gen: v5e
topology: v5e:2x2
jax: 0.10.0
libtpu: 0.0.40
codegen_flags: <defaults>
</compile_context>

<pallas_src>
import jax
import jax.numpy as jnp
from jax.experimental import pallas as pl
from jax.experimental.pallas import tpu as pltpu

_K = 5  # every conv in the model uses kernel_size=5, stride=1, no padding


# -----------------------------------------------------------------------------
# The fused kernel (one invocation per batch element).
# -----------------------------------------------------------------------------
def _paper_conv_kernel(
    # inputs -------------------------------------------------------------
    x_ref,                                   # (Lin, 1)       f32, NLC
    w1_ref, b1_ref,                          # conv1 (BN1 folded)
    w2_ref, b2_ref, s2_ref, t2_ref,          # conv2 + BN2 (post-ReLU affine)
    w3_ref, b3_ref,                          # conv3
    w4_ref, b4_ref,                          # conv4
    w5_ref, b5_ref,                          # conv5 (BN5 folded)
    w6_ref, b6_ref,                          # conv6
    fw1_ref, fb1_ref,                        # fc1 (BN_fc folded)
    fw2_ref, fb2_ref,                        # fc2 (padded to 128 lanes)
    # output -------------------------------------------------------------
    o_ref,                                   # (1, 128)       f32, lanes 0..7 real
    # VMEM scratch: per-sample activations, NLC layout --------------------
    a1_ref,                                  # (L1, 256) conv1 out
    c2_ref,                                  # (L2, 128) conv2 out (pre-pool)
    p2_ref,                                  # (Lp, 128) pooled
    h3_ref, h4_ref, h5_ref, h6_ref,          # small conv outputs
):
    f32 = jnp.float32
    bf16 = jnp.bfloat16

    lin = x_ref.shape[0]
    l1 = lin - _K + 1                        # 180
    l2 = l1 - _K + 1                         # 176
    lp = l2 // 8                             # 22

    # ---- Conv1d(1->256) [BN1 folded] -> ReLU : VPU outer products -----------
    c1 = w1_ref.shape[1]                     # 256
    w1_rows = [w1_ref[pl.ds(k, 1), :] for k in range(_K)]   # five (1,256) rows
    b1 = b1_ref[...]
    chunk1 = 64                              # (64,256) f32 acc = 16 vregs
    for l0 in range(0, l1, chunk1):
        cl = min(chunk1, l1 - l0)
        acc = jnp.zeros((cl, c1), f32)
        for k in range(_K):
            # (cl,1) * (1,C) broadcast outer product on the VPU
            acc = acc + x_ref[pl.ds(l0 + k, cl), :] * w1_rows[k]
        a1_ref[pl.ds(l0, cl), :] = jnp.maximum(acc + b1, 0.0)

    # ---- Conv1d(256->128) -> ReLU -> [Dropout=id] -> BN2 : 5-tap MXU acc ----
    cout2 = w2_ref.shape[2]                  # 128
    b2 = b2_ref[...]
    s2 = s2_ref[...]
    t2 = t2_ref[...]
    chunk2 = 88
    for l0 in range(0, l2, chunk2):
        cl = min(chunk2, l2 - l0)
        acc = jnp.zeros((cl, cout2), f32)
        for k in range(_K):
            acc = acc + jnp.dot(a1_ref[pl.ds(l0 + k, cl), :].astype(bf16),
                                w2_ref[k],
                                preferred_element_type=f32)
        y = jnp.maximum(acc + b2, 0.0)
        c2_ref[pl.ds(l0, cl), :] = y * s2 + t2

    # ---- MaxPool1d(8): per-group sublane max, all 128 lanes busy ------------
    for i in range(lp):
        p2_ref[pl.ds(i, 1), :] = jnp.max(c2_ref[pl.ds(8 * i, 8), :],
                                         axis=0, keepdims=True)

    # ---- Conv 3..6: im2col -> one long-K (640) bf16 matmul per layer --------
    # (BN5 already folded into w5/b5, so all four share one epilogue.)
    def conv_im2col(in_ref, w_ref, b_ref, out_ref):
        lout = in_ref.shape[0] - _K + 1
        slab = jnp.concatenate(
            [in_ref[pl.ds(k, lout), :] for k in range(_K)],
            axis=-1).astype(bf16)                           # (lout, K*Cin)
        y = jnp.dot(slab, w_ref[...], preferred_element_type=f32) + b_ref[...]
        out_ref[...] = jnp.maximum(y, 0.0)

    conv_im2col(p2_ref, w3_ref, b3_ref, h3_ref)                      # (18,128)
    conv_im2col(h3_ref, w4_ref, b4_ref, h4_ref)                      # (14,128)
    conv_im2col(h4_ref, w5_ref, b5_ref, h5_ref)                      # (10,128)
    conv_im2col(h5_ref, w6_ref, b6_ref, h6_ref)                      # (6,128)

    # ---- Head: Flatten (perm folded into fw1) -> fc1[+BN_fc] -> fc2 ---------
    l6 = h6_ref.shape[0]                     # 6
    hflat = jnp.concatenate(
        [h6_ref[pl.ds(l, 1), :] for l in range(l6)], axis=-1).astype(bf16)
    z = jnp.dot(hflat, fw1_ref[...], preferred_element_type=f32) + fb1_ref[...]
    # fc2 is zero-padded to 128 outputs -> unmasked lane-dense (1,128) store.
    o_ref[...] = (jnp.dot(z.astype(bf16), fw2_ref[...],
                          preferred_element_type=f32) + fb2_ref[...])


# -----------------------------------------------------------------------------
# Host-side glue: BN folding, weight layout prep, the pallas_call wrapper.
# -----------------------------------------------------------------------------
def _bn_affine(bn, eps=1e-5):
    scale = bn["gamma"] / jnp.sqrt(bn["var"] + eps)
    shift = bn["beta"] - bn["mean"] * scale
    return scale, shift


def _conv_w_im2col(w):
    """PyTorch (Cout, Cin, K) -> (K*Cin, Cout) matching slab[l, k*Cin + c]."""
    cout, cin, k = w.shape
    return jnp.transpose(w, (2, 1, 0)).reshape(k * cin, cout)


def paper_conv_forward(x, p):
    """x: (N, 1, L) float32 (PyTorch NCL).  Returns (N, 8) float32 logits."""
    n, cin, lin = x.shape
    assert cin == 1
    l1 = lin - _K + 1
    l2 = l1 - _K + 1
    lp = l2 // 8
    l3 = lp - _K + 1
    l4 = l3 - _K + 1
    l5 = l4 - _K + 1
    l6 = l5 - _K + 1
    assert 128 * l6 == p["fc1_w"].shape[1]   # Flatten size must match fc1

    f32, bf16 = jnp.float32, jnp.bfloat16
    row = lambda v: v.reshape(1, -1).astype(f32)

    s1, t1 = _bn_affine(p["bn1"])
    s2, t2 = _bn_affine(p["bn2"])
    s5, t5 = _bn_affine(p["bn5"])
    sf, tf = _bn_affine(p["bn_fc"])

    # --- weight layout / dtype prep + BN folds (pure XLA glue, done once) ---
    # BN1: conv1 -> BN1 -> ReLU  (adjacent, pre-activation -> exact fold)
    w1 = (_conv_w_im2col(p["w1"]) * s1[None, :]).astype(f32)     # (5, 256) VPU path
    b1 = p["b1"] * s1 + t1
    # BN2 sits after ReLU and before MaxPool -> kept as in-kernel affine.
    w2 = jnp.transpose(p["w2"], (2, 1, 0)).astype(bf16)          # (5, 256, 128)
    w3 = _conv_w_im2col(p["w3"]).astype(bf16)                    # (640, 128)
    w4 = _conv_w_im2col(p["w4"]).astype(bf16)
    # BN5: conv5 -> BN5 -> ReLU  (adjacent -> exact fold)
    w5 = (_conv_w_im2col(p["w5"]) * s5[None, :]).astype(bf16)
    b5 = p["b5"] * s5 + t5
    w6 = _conv_w_im2col(p["w6"]).astype(bf16)
    # Kernel flatten is length-major (l*128 + c); PyTorch Flatten is
    # channel-major (c*L + l) -> fold the permutation into the fc1 weight,
    # then fold BN_fc (fc1 -> BN_fc is adjacent) into the same weight.
    fw1 = jnp.transpose(p["fc1_w"].reshape(128, 128, l6),
                        (2, 1, 0)).reshape(l6 * 128, 128)
    fw1 = (fw1 * sf[None, :]).astype(bf16)                       # (768, 128)
    fb1 = p["fc1_b"] * sf + tf
    # fc2 zero-padded to 128 outputs -> unmasked lane-dense output store.
    nclass = p["fc2_w"].shape[0]
    fw2 = jnp.zeros((128, 128), f32).at[:, :nclass].set(
        jnp.transpose(p["fc2_w"], (1, 0))).astype(bf16)          # (128, 128)
    fb2 = jnp.zeros((128,), f32).at[:nclass].set(p["fc2_b"])

    xl = jnp.transpose(x, (0, 2, 1)).astype(f32)                 # (N, L, 1)  NLC

    vmem = pl.BlockSpec(memory_space=pltpu.MemorySpace.VMEM)     # full VMEM resident
    out = pl.pallas_call(
        _paper_conv_kernel,
        out_shape=jax.ShapeDtypeStruct((n, 1, 128), f32),
        grid=(n,),
        in_specs=[pl.BlockSpec((None, lin, 1), lambda i: (i, 0, 0))] + [vmem] * 18,
        out_specs=pl.BlockSpec((None, 1, 128), lambda i: (i, 0, 0)),
        scratch_shapes=[
            pltpu.VMEM((l1, 256), f32),   # conv1 out
            pltpu.VMEM((l2, 128), f32),   # conv2 out (pre-pool)
            pltpu.VMEM((lp, 128), f32),   # pooled
            pltpu.VMEM((l3, 128), f32),
            pltpu.VMEM((l4, 128), f32),
            pltpu.VMEM((l5, 128), f32),
            pltpu.VMEM((l6, 128), f32),
        ],
        compiler_params=pltpu.CompilerParams(
            dimension_semantics=("parallel",)),
    )(xl,
      w1, row(b1),
      w2, row(p["b2"]), row(s2), row(t2),
      w3, row(p["b3"]),
      w4, row(p["b4"]),
      w5, row(b5),
      w6, row(p["b6"]),
      fw1, row(fb1),
      fw2, row(fb2))
    return out.reshape(n, 128)[:, :nclass]


# -----------------------------------------------------------------------------
# Deterministic synthetic parameters matching the PyTorch module.
# -----------------------------------------------------------------------------
def init_params(key):
    ks = iter(jax.random.split(key, 40))

    def conv_w(cout, cin, ksz):
        fan = cin * ksz
        w = jax.random.normal(next(ks), (cout, cin, ksz), jnp.float32) / jnp.sqrt(fan)
        b = 0.01 * jax.random.normal(next(ks), (cout,), jnp.float32)
        return w, b

    def bn(c):
        return dict(
            gamma=1.0 + 0.1 * jax.random.normal(next(ks), (c,), jnp.float32),
            beta=0.1 * jax.random.normal(next(ks), (c,), jnp.float32),
            mean=0.1 * jax.random.normal(next(ks), (c,), jnp.float32),
            var=jnp.ones((c,), jnp.float32),
        )

    def linear(cin, cout):
        w = jax.random.normal(next(ks), (cout, cin), jnp.float32) / jnp.sqrt(cin)
        b = 0.01 * jax.random.normal(next(ks), (cout,), jnp.float32)
        return w, b

    p = {}
    p["w1"], p["b1"] = conv_w(256, 1, 5);   p["bn1"] = bn(256)
    p["w2"], p["b2"] = conv_w(128, 256, 5); p["bn2"] = bn(128)
    p["w3"], p["b3"] = conv_w(128, 128, 5)
    p["w4"], p["b4"] = conv_w(128, 128, 5)
    p["w5"], p["b5"] = conv_w(128, 128, 5); p["bn5"] = bn(128)
    p["w6"], p["b6"] = conv_w(128, 128, 5)
    p["fc1_w"], p["fc1_b"] = linear(768, 128); p["bn_fc"] = bn(128)
    p["fc2_w"], p["fc2_b"] = linear(128, 8)
    return p


if __name__ == "__main__":
    key = jax.random.PRNGKey(0)
    kx, kp = jax.random.split(key)

    # Input length 184 so the conv/pool stack yields exactly 128*6 = 768
    # features at Flatten, as required by Linear(in_features=768).
    x = jax.random.normal(kx, (2, 1, 184), jnp.float32)   # (N, C=1, L=184)
    params = init_params(kp)

    fwd = jax.jit(paper_conv_forward)
    logits = fwd(x, params)
    jax.block_until_ready(logits)
    assert logits.shape == (2, 8) and logits.dtype == jnp.float32
    print("KERNEL_OK")
</pallas_src>

<mosaic_0001>
module attributes {stable_mosaic.version = 11 : i64} {
  func.func @_paper_conv_kernel(%arg0: i32, %arg1: memref<1x184x1xf32, #tpu.memory_space<vmem>>, %arg2: memref<5x256xf32, #tpu.memory_space<vmem>>, %arg3: memref<1x256xf32, #tpu.memory_space<vmem>>, %arg4: memref<5x256x128xbf16, #tpu.memory_space<vmem>>, %arg5: memref<1x128xf32, #tpu.memory_space<vmem>>, %arg6: memref<1x128xf32, #tpu.memory_space<vmem>>, %arg7: memref<1x128xf32, #tpu.memory_space<vmem>>, %arg8: memref<640x128xbf16, #tpu.memory_space<vmem>>, %arg9: memref<1x128xf32, #tpu.memory_space<vmem>>, %arg10: memref<640x128xbf16, #tpu.memory_space<vmem>>, %arg11: memref<1x128xf32, #tpu.memory_space<vmem>>, %arg12: memref<640x128xbf16, #tpu.memory_space<vmem>>, %arg13: memref<1x128xf32, #tpu.memory_space<vmem>>, %arg14: memref<640x128xbf16, #tpu.memory_space<vmem>>, %arg15: memref<1x128xf32, #tpu.memory_space<vmem>>, %arg16: memref<768x128xbf16, #tpu.memory_space<vmem>>, %arg17: memref<1x128xf32, #tpu.memory_space<vmem>>, %arg18: memref<128x128xbf16, #tpu.memory_space<vmem>>, %arg19: memref<1x128xf32, #tpu.memory_space<vmem>>, %arg20: memref<1x1x128xf32, #tpu.memory_space<vmem>>, %arg21: memref<180x256xf32, #tpu.memory_space<vmem>>, %arg22: memref<176x128xf32, #tpu.memory_space<vmem>>, %arg23: memref<22x128xf32, #tpu.memory_space<vmem>>, %arg24: memref<18x128xf32, #tpu.memory_space<vmem>>, %arg25: memref<14x128xf32, #tpu.memory_space<vmem>>, %arg26: memref<10x128xf32, #tpu.memory_space<vmem>>, %arg27: memref<6x128xf32, #tpu.memory_space<vmem>>) attributes {dimension_semantics = [#tpu.dimension_semantics<parallel>], iteration_bounds = array<i64: 2>, scalar_prefetch = 0 : i64, scratch_operands = 7 : i64, tpu.core_type = #tpu.core_type<tc>, window_params = [{transform_indices = @transform_0, window_bounds = array<i64: 1, 184, 1>}, {pipeline_mode = #tpu.pipeline_mode<synchronous>, transform_indices = @transform_1, window_bounds = array<i64: 5, 256>}, {pipeline_mode = #tpu.pipeline_mode<synchronous>, transform_indices = @transform_2, window_bounds = array<i64: 1, 256>}, {pipeline_mode = #tpu.pipeline_mode<synchronous>, transform_indices = @transform_3, window_bounds = array<i64: 5, 256, 128>}, {pipeline_mode = #tpu.pipeline_mode<synchronous>, transform_indices = @transform_4, window_bounds = array<i64: 1, 128>}, {pipeline_mode = #tpu.pipeline_mode<synchronous>, transform_indices = @transform_5, window_bounds = array<i64: 1, 128>}, {pipeline_mode = #tpu.pipeline_mode<synchronous>, transform_indices = @transform_6, window_bounds = array<i64: 1, 128>}, {pipeline_mode = #tpu.pipeline_mode<synchronous>, transform_indices = @transform_7, window_bounds = array<i64: 640, 128>}, {pipeline_mode = #tpu.pipeline_mode<synchronous>, transform_indices = @transform_8, window_bounds = array<i64: 1, 128>}, {pipeline_mode = #tpu.pipeline_mode<synchronous>, transform_indices = @transform_9, window_bounds = array<i64: 640, 128>}, {pipeline_mode = #tpu.pipeline_mode<synchronous>, transform_indices = @transform_10, window_bounds = array<i64: 1, 128>}, {pipeline_mode = #tpu.pipeline_mode<synchronous>, transform_indices = @transform_11, window_bounds = array<i64: 640, 128>}, {pipeline_mode = #tpu.pipeline_mode<synchronous>, transform_indices = @transform_12, window_bounds = array<i64: 1, 128>}, {pipeline_mode = #tpu.pipeline_mode<synchronous>, transform_indices = @transform_13, window_bounds = array<i64: 640, 128>}, {pipeline_mode = #tpu.pipeline_mode<synchronous>, transform_indices = @transform_14, window_bounds = array<i64: 1, 128>}, {pipeline_mode = #tpu.pipeline_mode<synchronous>, transform_indices = @transform_15, window_bounds = array<i64: 768, 128>}, {pipeline_mode = #tpu.pipeline_mode<synchronous>, transform_indices = @transform_16, window_bounds = array<i64: 1, 128>}, {pipeline_mode = #tpu.pipeline_mode<synchronous>, transform_indices = @transform_17, window_bounds = array<i64: 128, 128>}, {pipeline_mode = #tpu.pipeline_mode<synchronous>, transform_indices = @transform_18, window_bounds = array<i64: 1, 128>}, {transform_indices = @transform_19, window_bounds = array<i64: 1, 1, 128>}]} {
    %c0 = arith.constant 0 : index
    %c0_0 = arith.constant 0 : index
    %0 = vector.load %arg2[%c0, %c0_0] : memref<5x256xf32, #tpu.memory_space<vmem>>, vector<1x256xf32>
    %c1 = arith.constant 1 : index
    %c0_1 = arith.constant 0 : index
    %1 = vector.load %arg2[%c1, %c0_1] : memref<5x256xf32, #tpu.memory_space<vmem>>, vector<1x256xf32>
    %c2 = arith.constant 2 : index
    %c0_2 = arith.constant 0 : index
    %2 = vector.load %arg2[%c2, %c0_2] : memref<5x256xf32, #tpu.memory_space<vmem>>, vector<1x256xf32>
    %c3 = arith.constant 3 : index
    %c0_3 = arith.constant 0 : index
    %3 = vector.load %arg2[%c3, %c0_3] : memref<5x256xf32, #tpu.memory_space<vmem>>, vector<1x256xf32>
    %c4 = arith.constant 4 : index
    %c0_4 = arith.constant 0 : index
    %4 = vector.load %arg2[%c4, %c0_4] : memref<5x256xf32, #tpu.memory_space<vmem>>, vector<1x256xf32>
    %c0_5 = arith.constant 0 : index
    %c0_6 = arith.constant 0 : index
    %5 = vector.load %arg3[%c0_5, %c0_6] : memref<1x256xf32, #tpu.memory_space<vmem>>, vector<1x256xf32>
    %cst = arith.constant 0.000000e+00 : f32
    %6 = vector.broadcast %cst : f32 to vector<64x256xf32>
    %c0_7 = arith.constant 0 : index
    %c0_8 = arith.constant 0 : index
    %c0_9 = arith.constant 0 : index
    %7 = vector.load %arg1[%c0_7, %c0_8, %c0_9] : memref<1x184x1xf32, #tpu.memory_space<vmem>>, vector<1x64x1xf32>
    %8 = vector.shape_cast %7 : vector<1x64x1xf32> to vector<64x1xf32>
    %9 = vector.broadcast %8 : vector<64x1xf32> to vector<64x256xf32>
    %10 = vector.broadcast %0 : vector<1x256xf32> to vector<64x256xf32>
    %11 = arith.mulf %9, %10 : vector<64x256xf32>
    %12 = arith.addf %6, %11 : vector<64x256xf32>
    %c0_10 = arith.constant 0 : index
    %c1_11 = arith.constant 1 : index
    %c0_12 = arith.constant 0 : index
    %13 = vector.load %arg1[%c0_10, %c1_11, %c0_12] : memref<1x184x1xf32, #tpu.memory_space<vmem>>, vector<1x64x1xf32>
    %14 = vector.shape_cast %13 : vector<1x64x1xf32> to vector<64x1xf32>
    %15 = vector.broadcast %14 : vector<64x1xf32> to vector<64x256xf32>
    %16 = vector.broadcast %1 : vector<1x256xf32> to vector<64x256xf32>
    %17 = arith.mulf %15, %16 : vector<64x256xf32>
    %18 = arith.addf %12, %17 : vector<64x256xf32>
    %c0_13 = arith.constant 0 : index
    %c2_14 = arith.constant 2 : index
    %c0_15 = arith.constant 0 : index
    %19 = vector.load %arg1[%c0_13, %c2_14, %c0_15] : memref<1x184x1xf32, #tpu.memory_space<vmem>>, vector<1x64x1xf32>
    %20 = vector.shape_cast %19 : vector<1x64x1xf32> to vector<64x1xf32>
    %21 = vector.broadcast %20 : vector<64x1xf32> to vector<64x256xf32>
    %22 = vector.broadcast %2 : vector<1x256xf32> to vector<64x256xf32>
    %23 = arith.mulf %21, %22 : vector<64x256xf32>
    %24 = arith.addf %18, %23 : vector<64x256xf32>
    %c0_16 = arith.constant 0 : index
    %c3_17 = arith.constant 3 : index
    %c0_18 = arith.constant 0 : index
    %25 = vector.load %arg1[%c0_16, %c3_17, %c0_18] : memref<1x184x1xf32, #tpu.memory_space<vmem>>, vector<1x64x1xf32>
    %26 = vector.shape_cast %25 : vector<1x64x1xf32> to vector<64x1xf32>
    %27 = vector.broadcast %26 : vector<64x1xf32> to vector<64x256xf32>
    %28 = vector.broadcast %3 : vector<1x256xf32> to vector<64x256xf32>
    %29 = arith.mulf %27, %28 : vector<64x256xf32>
    %30 = arith.addf %24, %29 : vector<64x256xf32>
    %c0_19 = arith.constant 0 : index
    %c4_20 = arith.constant 4 : index
    %c0_21 = arith.constant 0 : index
    %31 = vector.load %arg1[%c0_19, %c4_20, %c0_21] : memref<1x184x1xf32, #tpu.memory_space<vmem>>, vector<1x64x1xf32>
    %32 = vector.shape_cast %31 : vector<1x64x1xf32> to vector<64x1xf32>
    %33 = vector.broadcast %32 : vector<64x1xf32> to vector<64x256xf32>
    %34 = vector.broadcast %4 : vector<1x256xf32> to vector<64x256xf32>
    %35 = arith.mulf %33, %34 : vector<64x256xf32>
    %36 = arith.addf %30, %35 : vector<64x256xf32>
    %37 = vector.broadcast %5 : vector<1x256xf32> to vector<64x256xf32>
    %38 = arith.addf %36, %37 : vector<64x256xf32>
    %cst_22 = arith.constant 0.000000e+00 : f32
    %39 = vector.broadcast %cst_22 : f32 to vector<64x256xf32>
    %40 = arith.maximumf %38, %39 : vector<64x256xf32>
    %c0_23 = arith.constant 0 : index
    %c0_24 = arith.constant 0 : index
    %41 = vector.load %arg21[%c0_23, %c0_24] : memref<180x256xf32, #tpu.memory_space<vmem>>, vector<64x256xf32>
    tpu.vector_store %arg21[%c0_23, %c0_24], %40 {strides = array<i32>} : memref<180x256xf32, #tpu.memory_space<vmem>>, vector<64x256xf32>,
    %cst_25 = arith.constant 0.000000e+00 : f32
    %42 = vector.broadcast %cst_25 : f32 to vector<64x256xf32>
    %c0_26 = arith.constant 0 : index
    %c64 = arith.constant 64 : index
    %c0_27 = arith.constant 0 : index
    %43 = vector.load %arg1[%c0_26, %c64, %c0_27] : memref<1x184x1xf32, #tpu.memory_space<vmem>>, vector<1x64x1xf32>
    %44 = vector.shape_cast %43 : vector<1x64x1xf32> to vector<64x1xf32>
    %45 = vector.broadcast %44 : vector<64x1xf32> to vector<64x256xf32>
    %46 = vector.broadcast %0 : vector<1x256xf32> to vector<64x256xf32>
    %47 = arith.mulf %45, %46 : vector<64x256xf32>
    %48 = arith.addf %42, %47 : vector<64x256xf32>
    %c0_28 = arith.constant 0 : index
    %c65 = arith.constant 65 : index
    %c0_29 = arith.constant 0 : index
    %49 = vector.load %arg1[%c0_28, %c65, %c0_29] : memref<1x184x1xf32, #tpu.memory_space<vmem>>, vector<1x64x1xf32>
    %50 = vector.shape_cast %49 : vector<1x64x1xf32> to vector<64x1xf32>
    %51 = vector.broadcast %50 : vector<64x1xf32> to vector<64x256xf32>
    %52 = vector.broadcast %1 : vector<1x256xf32> to vector<64x256xf32>
    %53 = arith.mulf %51, %52 : vector<64x256xf32>
    %54 = arith.addf %48, %53 : vector<64x256xf32>
    %c0_30 = arith.constant 0 : index
    %c66 = arith.constant 66 : index
    %c0_31 = arith.constant 0 : index
    %55 = vector.load %arg1[%c0_30, %c66, %c0_31] : memref<1x184x1xf32, #tpu.memory_space<vmem>>, vector<1x64x1xf32>
    %56 = vector.shape_cast %55 : vector<1x64x1xf32> to vector<64x1xf32>
    %57 = vector.broadcast %56 : vector<64x1xf32> to vector<64x256xf32>
    %58 = vector.broadcast %2 : vector<1x256xf32> to vector<64x256xf32>
    %59 = arith.mulf %57, %58 : vector<64x256xf32>
    %60 = arith.addf %54, %59 : vector<64x256xf32>
    %c0_32 = arith.constant 0 : index
    %c67 = arith.constant 67 : index
    %c0_33 = arith.constant 0 : index
    %61 = vector.load %arg1[%c0_32, %c67, %c0_33] : memref<1x184x1xf32, #tpu.memory_space<vmem>>, vector<1x64x1xf32>
    %62 = vector.shape_cast %61 : vector<1x64x1xf32> to vector<64x1xf32>
    %63 = vector.broadcast %62 : vector<64x1xf32> to vector<64x256xf32>
    %64 = vector.broadcast %3 : vector<1x256xf32> to vector<64x256xf32>
    %65 = arith.mulf %63, %64 : vector<64x256xf32>
    %66 = arith.addf %60, %65 : vector<64x256xf32>
    %c0_34 = arith.constant 0 : index
    %c68 = arith.constant 68 : index
    %c0_35 = arith.constant 0 : index
    %67 = vector.load %arg1[%c0_34, %c68, %c0_35] : memref<1x184x1xf32, #tpu.memory_space<vmem>>, vector<1x64x1xf32>
    %68 = vector.shape_cast %67 : vector<1x64x1xf32> to vector<64x1xf32>
    %69 = vector.broadcast %68 : vector<64x1xf32> to vector<64x256xf32>
    %70 = vector.broadcast %4 : vector<1x256xf32> to vector<64x256xf32>
    %71 = arith.mulf %69, %70 : vector<64x256xf32>
    %72 = arith.addf %66, %71 : vector<64x256xf32>
    %73 = vector.broadcast %5 : vector<1x256xf32> to vector<64x256xf32>
    %74 = arith.addf %72, %73 : vector<64x256xf32>
    %cst_36 = arith.constant 0.000000e+00 : f32
    %75 = vector.broadcast %cst_36 : f32 to vector<64x256xf32>
    %76 = arith.maximumf %74, %75 : vector<64x256xf32>
    %c64_37 = arith.constant 64 : index
    %c0_38 = arith.constant 0 : index
    %77 = vector.load %arg21[%c64_37, %c0_38] : memref<180x256xf32, #tpu.memory_space<vmem>>, vector<64x256xf32>
    tpu.vector_store %arg21[%c64_37, %c0_38], %76 {strides = array<i32>} : memref<180x256xf32, #tpu.memory_space<vmem>>, vector<64x256xf32>,
    %cst_39 = arith.constant 0.000000e+00 : f32
    %78 = vector.broadcast %cst_39 : f32 to vector<52x256xf32>
    %c0_40 = arith.constant 0 : index
    %c128 = arith.constant 128 : index
    %c0_41 = arith.constant 0 : index
    %79 = vector.load %arg1[%c0_40, %c128, %c0_41] : memref<1x184x1xf32, #tpu.memory_space<vmem>>, vector<1x52x1xf32>
    %80 = vector.shape_cast %79 : vector<1x52x1xf32> to vector<52x1xf32>
    %81 = vector.broadcast %80 : vector<52x1xf32> to vector<52x256xf32>
    %82 = vector.broadcast %0 : vector<1x256xf32> to vector<52x256xf32>
    %83 = arith.mulf %81, %82 : vector<52x256xf32>
    %84 = arith.addf %78, %83 : vector<52x256xf32>
    %c0_42 = arith.constant 0 : index
    %c129 = arith.constant 129 : index
    %c0_43 = arith.constant 0 : index
    %85 = vector.load %arg1[%c0_42, %c129, %c0_43] : memref<1x184x1xf32, #tpu.memory_space<vmem>>, vector<1x52x1xf32>
    %86 = vector.shape_cast %85 : vector<1x52x1xf32> to vector<52x1xf32>
    %87 = vector.broadcast %86 : vector<52x1xf32> to vector<52x256xf32>
    %88 = vector.broadcast %1 : vector<1x256xf32> to vector<52x256xf32>
    %89 = arith.mulf %87, %88 : vector<52x256xf32>
    %90 = arith.addf %84, %89 : vector<52x256xf32>
    %c0_44 = arith.constant 0 : index
    %c130 = arith.constant 130 : index
    %c0_45 = arith.constant 0 : index
    %91 = vector.load %arg1[%c0_44, %c130, %c0_45] : memref<1x184x1xf32, #tpu.memory_space<vmem>>, vector<1x52x1xf32>
    %92 = vector.shape_cast %91 : vector<1x52x1xf32> to vector<52x1xf32>
    %93 = vector.broadcast %92 : vector<52x1xf32> to vector<52x256xf32>
    %94 = vector.broadcast %2 : vector<1x256xf32> to vector<52x256xf32>
    %95 = arith.mulf %93, %94 : vector<52x256xf32>
    %96 = arith.addf %90, %95 : vector<52x256xf32>
    %c0_46 = arith.constant 0 : index
    %c131 = arith.constant 131 : index
    %c0_47 = arith.constant 0 : index
    %97 = vector.load %arg1[%c0_46, %c131, %c0_47] : memref<1x184x1xf32, #tpu.memory_space<vmem>>, vector<1x52x1xf32>
    %98 = vector.shape_cast %97 : vector<1x52x1xf32> to vector<52x1xf32>
    %99 = vector.broadcast %98 : vector<52x1xf32> to vector<52x256xf32>
    %100 = vector.broadcast %3 : vector<1x256xf32> to vector<52x256xf32>
    %101 = arith.mulf %99, %100 : vector<52x256xf32>
    %102 = arith.addf %96, %101 : vector<52x256xf32>
    %c0_48 = arith.constant 0 : index
    %c132 = arith.constant 132 : index
    %c0_49 = arith.constant 0 : index
    %103 = vector.load %arg1[%c0_48, %c132, %c0_49] : memref<1x184x1xf32, #tpu.memory_space<vmem>>, vector<1x52x1xf32>
    %104 = vector.shape_cast %103 : vector<1x52x1xf32> to vector<52x1xf32>
    %105 = vector.broadcast %104 : vector<52x1xf32> to vector<52x256xf32>
    %106 = vector.broadcast %4 : vector<1x256xf32> to vector<52x256xf32>
    %107 = arith.mulf %105, %106 : vector<52x256xf32>
    %108 = arith.addf %102, %107 : vector<52x256xf32>
    %109 = vector.broadcast %5 : vector<1x256xf32> to vector<52x256xf32>
    %110 = arith.addf %108, %109 : vector<52x256xf32>
    %cst_50 = arith.constant 0.000000e+00 : f32
    %111 = vector.broadcast %cst_50 : f32 to vector<52x256xf32>
    %112 = arith.maximumf %110, %111 : vector<52x256xf32>
    %c128_51 = arith.constant 128 : index
    %c0_52 = arith.constant 0 : index
    %113 = vector.load %arg21[%c128_51, %c0_52] : memref<180x256xf32, #tpu.memory_space<vmem>>, vector<52x256xf32>
    tpu.vector_store %arg21[%c128_51, %c0_52], %112 {strides = array<i32>} : memref<180x256xf32, #tpu.memory_space<vmem>>, vector<52x256xf32>,
    %c0_53 = arith.constant 0 : index
    %c0_54 = arith.constant 0 : index
    %114 = vector.load %arg5[%c0_53, %c0_54] : memref<1x128xf32, #tpu.memory_space<vmem>>, vector<1x128xf32>
    %c0_55 = arith.constant 0 : index
    %c0_56 = arith.constant 0 : index
    %115 = vector.load %arg6[%c0_55, %c0_56] : memref<1x128xf32, #tpu.memory_space<vmem>>, vector<1x128xf32>
    %c0_57 = arith.constant 0 : index
    %c0_58 = arith.constant 0 : index
    %116 = vector.load %arg7[%c0_57, %c0_58] : memref<1x128xf32, #tpu.memory_space<vmem>>, vector<1x128xf32>
    %cst_59 = arith.constant 0.000000e+00 : f32
    %117 = vector.broadcast %cst_59 : f32 to vector<88x128xf32>
    %c0_60 = arith.constant 0 : index
    %c0_61 = arith.constant 0 : index
    %118 = vector.load %arg21[%c0_60, %c0_61] : memref<180x256xf32, #tpu.memory_space<vmem>>, vector<88x256xf32>
    %119 = arith.truncf %118 : vector<88x256xf32> to vector<88x256xbf16>
    %c0_62 = arith.constant 0 : index
    %c0_63 = arith.constant 0 : index
    %c0_64 = arith.constant 0 : index
    %120 = vector.load %arg4[%c0_62, %c0_63, %c0_64] : memref<5x256x128xbf16, #tpu.memory_space<vmem>>, vector<1x256x128xbf16>
    %121 = vector.shape_cast %120 : vector<1x256x128xbf16> to vector<256x128xbf16>
    %cst_65 = arith.constant dense<0.000000e+00> : vector<88x128xf32>
    %122 = tpu.matmul %119, %121, %cst_65 {dimension_numbers = #tpu.dot_dimension_numbers<[1], [0], [0], [1], [0, 0, 1, 1], [], []>} : vector<88x256xbf16>, vector<256x128xbf16>, vector<88x128xf32> -> vector<88x128xf32>
    %123 = arith.addf %117, %122 : vector<88x128xf32>
    %c1_66 = arith.constant 1 : index
    %c0_67 = arith.constant 0 : index
    %124 = vector.load %arg21[%c1_66, %c0_67] : memref<180x256xf32, #tpu.memory_space<vmem>>, vector<88x256xf32>
    %125 = arith.truncf %124 : vector<88x256xf32> to vector<88x256xbf16>
    %c1_68 = arith.constant 1 : index
    %c0_69 = arith.constant 0 : index
    %c0_70 = arith.constant 0 : index
    %126 = vector.load %arg4[%c1_68, %c0_69, %c0_70] : memref<5x256x128xbf16, #tpu.memory_space<vmem>>, vector<1x256x128xbf16>
    %127 = vector.shape_cast %126 : vector<1x256x128xbf16> to vector<256x128xbf16>
    %cst_71 = arith.constant dense<0.000000e+00> : vector<88x128xf32>
    %128 = tpu.matmul %125, %127, %cst_71 {dimension_numbers = #tpu.dot_dimension_numbers<[1], [0], [0], [1], [0, 0, 1, 1], [], []>} : vector<88x256xbf16>, vector<256x128xbf16>, vector<88x128xf32> -> vector<88x128xf32>
    %129 = arith.addf %123, %128 : vector<88x128xf32>
    %c2_72 = arith.constant 2 : index
    %c0_73 = arith.constant 0 : index
    %130 = vector.load %arg21[%c2_72, %c0_73] : memref<180x256xf32, #tpu.memory_space<vmem>>, vector<88x256xf32>
    %131 = arith.truncf %130 : vector<88x256xf32> to vector<88x256xbf16>
    %c2_74 = arith.constant 2 : index
    %c0_75 = arith.constant 0 : index
    %c0_76 = arith.constant 0 : index
    %132 = vector.load %arg4[%c2_74, %c0_75, %c0_76] : memref<5x256x128xbf16, #tpu.memory_space<vmem>>, vector<1x256x128xbf16>
    %133 = vector.shape_cast %132 : vector<1x256x128xbf16> to vector<256x128xbf16>
    %cst_77 = arith.constant dense<0.000000e+00> : vector<88x128xf32>
    %134 = tpu.matmul %131, %133, %cst_77 {dimension_numbers = #tpu.dot_dimension_numbers<[1], [0], [0], [1], [0, 0, 1, 1], [], []>} : vector<88x256xbf16>, vector<256x128xbf16>, vector<88x128xf32> -> vector<88x128xf32>
    %135 = arith.addf %129, %134 : vector<88x128xf32>
    %c3_78 = arith.constant 3 : index
    %c0_79 = arith.constant 0 : index
    %136 = vector.load %arg21[%c3_78, %c0_79] : memref<180x256xf32, #tpu.memory_space<vmem>>, vector<88x256xf32>
    %137 = arith.truncf %136 : vector<88x256xf32> to vector<88x256xbf16>
    %c3_80 = arith.constant 3 : index
    %c0_81 = arith.constant 0 : index
    %c0_82 = arith.constant 0 : index
    %138 = vector.load %arg4[%c3_80, %c0_81, %c0_82] : memref<5x256x128xbf16, #tpu.memory_space<vmem>>, vector<1x256x128xbf16>
    %139 = vector.shape_cast %138 : vector<1x256x128xbf16> to vector<256x128xbf16>
    %cst_83 = arith.constant dense<0.000000e+00> : vector<88x128xf32>
    %140 = tpu.matmul %137, %139, %cst_83 {dimension_numbers = #tpu.dot_dimension_numbers<[1], [0], [0], [1], [0, 0, 1, 1], [], []>} : vector<88x256xbf16>, vector<256x128xbf16>, vector<88x128xf32> -> vector<88x128xf32>
    %141 = arith.addf %135, %140 : vector<88x128xf32>
    %c4_84 = arith.constant 4 : index
    %c0_85 = arith.constant 0 : index
    %142 = vector.load %arg21[%c4_84, %c0_85] : memref<180x256xf32, #tpu.memory_space<vmem>>, vector<88x256xf32>
    %143 = arith.truncf %142 : vector<88x256xf32> to vector<88x256xbf16>
    %c4_86 = arith.constant 4 : index
    %c0_87 = arith.constant 0 : index
    %c0_88 = arith.constant 0 : index
    %144 = vector.load %arg4[%c4_86, %c0_87, %c0_88] : memref<5x256x128xbf16, #tpu.memory_space<vmem>>, vector<1x256x128xbf16>
    %145 = vector.shape_cast %144 : vector<1x256x128xbf16> to vector<256x128xbf16>
    %cst_89 = arith.constant dense<0.000000e+00> : vector<88x128xf32>
    %146 = tpu.matmul %143, %145, %cst_89 {dimension_numbers = #tpu.dot_dimension_numbers<[1], [0], [0], [1], [0, 0, 1, 1], [], []>} : vector<88x256xbf16>, vector<256x128xbf16>, vector<88x128xf32> -> vector<88x128xf32>
    %147 = arith.addf %141, %146 : vector<88x128xf32>
    %148 = vector.broadcast %114 : vector<1x128xf32> to vector<88x128xf32>
    %149 = arith.addf %147, %148 : vector<88x128xf32>
    %cst_90 = arith.constant 0.000000e+00 : f32
    %150 = vector.broadcast %cst_90 : f32 to vector<88x128xf32>
    %151 = arith.maximumf %149, %150 : vector<88x128xf32>
    %152 = vector.broadcast %115 : vector<1x128xf32> to vector<88x128xf32>
    %153 = arith.mulf %151, %152 : vector<88x128xf32>
    %154 = vector.broadcast %116 : vector<1x128xf32> to vector<88x128xf32>
    %155 = arith.addf %153, %154 : vector<88x128xf32>
    %c0_91 = arith.constant 0 : index
    %c0_92 = arith.constant 0 : index
    %156 = vector.load %arg22[%c0_91, %c0_92] : memref<176x128xf32, #tpu.memory_space<vmem>>, vector<88x128xf32>
    tpu.vector_store %arg22[%c0_91, %c0_92], %155 {strides = array<i32>} : memref<176x128xf32, #tpu.memory_space<vmem>>, vector<88x128xf32>,
    %cst_93 = arith.constant 0.000000e+00 : f32
    %157 = vector.broadcast %cst_93 : f32 to vector<88x128xf32>
    %c88 = arith.constant 88 : index
    %c0_94 = arith.constant 0 : index
    %158 = vector.load %arg21[%c88, %c0_94] : memref<180x256xf32, #tpu.memory_space<vmem>>, vector<88x256xf32>
    %159 = arith.truncf %158 : vector<88x256xf32> to vector<88x256xbf16>
    %c0_95 = arith.constant 0 : index
    %c0_96 = arith.constant 0 : index
    %c0_97 = arith.constant 0 : index
    %160 = vector.load %arg4[%c0_95, %c0_96, %c0_97] : memref<5x256x128xbf16, #tpu.memory_space<vmem>>, vector<1x256x128xbf16>
    %161 = vector.shape_cast %160 : vector<1x256x128xbf16> to vector<256x128xbf16>
    %cst_98 = arith.constant dense<0.000000e+00> : vector<88x128xf32>
    %162 = tpu.matmul %159, %161, %cst_98 {dimension_numbers = #tpu.dot_dimension_numbers<[1], [0], [0], [1], [0, 0, 1, 1], [], []>} : vector<88x256xbf16>, vector<256x128xbf16>, vector<88x128xf32> -> vector<88x128xf32>
    %163 = arith.addf %157, %162 : vector<88x128xf32>
    %c89 = arith.constant 89 : index
    %c0_99 = arith.constant 0 : index
    %164 = vector.load %arg21[%c89, %c0_99] : memref<180x256xf32, #tpu.memory_space<vmem>>, vector<88x256xf32>
    %165 = arith.truncf %164 : vector<88x256xf32> to vector<88x256xbf16>
    %c1_100 = arith.constant 1 : index
    %c0_101 = arith.constant 0 : index
    %c0_102 = arith.constant 0 : index
    %166 = vector.load %arg4[%c1_100, %c0_101, %c0_102] : memref<5x256x128xbf16, #tpu.memory_space<vmem>>, vector<1x256x128xbf16>
    %167 = vector.shape_cast %166 : vector<1x256x128xbf16> to vector<256x128xbf16>
    %cst_103 = arith.constant dense<0.000000e+00> : vector<88x128xf32>
    %168 = tpu.matmul %165, %167, %cst_103 {dimension_numbers = #tpu.dot_dimension_numbers<[1], [0], [0], [1], [0, 0, 1, 1], [], []>} : vector<88x256xbf16>, vector<256x128xbf16>, vector<88x128xf32> -> vector<88x128xf32>
    %169 = arith.addf %163, %168 : vector<88x128xf32>
    %c90 = arith.constant 90 : index
    %c0_104 = arith.constant 0 : index
    %170 = vector.load %arg21[%c90, %c0_104] : memref<180x256xf32, #tpu.memory_space<vmem>>, vector<88x256xf32>
    %171 = arith.truncf %170 : vector<88x256xf32> to vector<88x256xbf16>
    %c2_105 = arith.constant 2 : index
    %c0_106 = arith.constant 0 : index
    %c0_107 = arith.constant 0 : index
    %172 = vector.load %arg4[%c2_105, %c0_106, %c0_107] : memref<5x256x128xbf16, #tpu.memory_space<vmem>>, vector<1x256x128xbf16>
    %173 = vector.shape_cast %172 : vector<1x256x128xbf16> to vector<256x128xbf16>
    %cst_108 = arith.constant dense<0.000000e+00> : vector<88x128xf32>
    %174 = tpu.matmul %171, %173, %cst_108 {dimension_numbers = #tpu.dot_dimension_numbers<[1], [0], [0], [1], [0, 0, 1, 1], [], []>} : vector<88x256xbf16>, vector<256x128xbf16>, vector<88x128xf32> -> vector<88x128xf32>
    %175 = arith.addf %169, %174 : vector<88x128xf32>
    %c91 = arith.constant 91 : index
    %c0_109 = arith.constant 0 : index
    %176 = vector.load %arg21[%c91, %c0_109] : memref<180x256xf32, #tpu.memory_space<vmem>>, vector<88x256xf32>
    %177 = arith.truncf %176 : vector<88x256xf32> to vector<88x256xbf16>
    %c3_110 = arith.constant 3 : index
    %c0_111 = arith.constant 0 : index
    %c0_112 = arith.constant 0 : index
    %178 = vector.load %arg4[%c3_110, %c0_111, %c0_112] : memref<5x256x128xbf16, #tpu.memory_space<vmem>>, vector<1x256x128xbf16>
    %179 = vector.shape_cast %178 : vector<1x256x128xbf16> to vector<256x128xbf16>
    %cst_113 = arith.constant dense<0.000000e+00> : vector<88x128xf32>
    %180 = tpu.matmul %177, %179, %cst_113 {dimension_numbers = #tpu.dot_dimension_numbers<[1], [0], [0], [1], [0, 0, 1, 1], [], []>} : vector<88x256xbf16>, vector<256x128xbf16>, vector<88x128xf32> -> vector<88x128xf32>
    %181 = arith.addf %175, %180 : vector<88x128xf32>
    %c92 = arith.constant 92 : index
    %c0_114 = arith.constant 0 : index
    %182 = vector.load %arg21[%c92, %c0_114] : memref<180x256xf32, #tpu.memory_space<vmem>>, vector<88x256xf32>
    %183 = arith.truncf %182 : vector<88x256xf32> to vector<88x256xbf16>
    %c4_115 = arith.constant 4 : index
    %c0_116 = arith.constant 0 : index
    %c0_117 = arith.constant 0 : index
    %184 = vector.load %arg4[%c4_115, %c0_116, %c0_117] : memref<5x256x128xbf16, #tpu.memory_space<vmem>>, vector<1x256x128xbf16>
    %185 = vector.shape_cast %184 : vector<1x256x128xbf16> to vector<256x128xbf16>
    %cst_118 = arith.constant dense<0.000000e+00> : vector<88x128xf32>
    %186 = tpu.matmul %183, %185, %cst_118 {dimension_numbers = #tpu.dot_dimension_numbers<[1], [0], [0], [1], [0, 0, 1, 1], [], []>} : vector<88x256xbf16>, vector<256x128xbf16>, vector<88x128xf32> -> vector<88x128xf32>
    %187 = arith.addf %181, %186 : vector<88x128xf32>
    %188 = vector.broadcast %114 : vector<1x128xf32> to vector<88x128xf32>
    %189 = arith.addf %187, %188 : vector<88x128xf32>
    %cst_119 = arith.constant 0.000000e+00 : f32
    %190 = vector.broadcast %cst_119 : f32 to vector<88x128xf32>
    %191 = arith.maximumf %189, %190 : vector<88x128xf32>
    %192 = vector.broadcast %115 : vector<1x128xf32> to vector<88x128xf32>
    %193 = arith.mulf %191, %192 : vector<88x128xf32>
    %194 = vector.broadcast %116 : vector<1x128xf32> to vector<88x128xf32>
    %195 = arith.addf %193, %194 : vector<88x128xf32>
    %c88_120 = arith.constant 88 : index
    %c0_121 = arith.constant 0 : index
    %196 = vector.load %arg22[%c88_120, %c0_121] : memref<176x128xf32, #tpu.memory_space<vmem>>, vector<88x128xf32>
    tpu.vector_store %arg22[%c88_120, %c0_121], %195 {strides = array<i32>} : memref<176x128xf32, #tpu.memory_space<vmem>>, vector<88x128xf32>,
    %c0_122 = arith.constant 0 : index
    %c0_123 = arith.constant 0 : index
    %197 = vector.load %arg22[%c0_122, %c0_123] : memref<176x128xf32, #tpu.memory_space<vmem>>, vector<8x128xf32>
    %cst_124 = arith.constant dense<0xFF800000> : vector<128xf32>
    %198 = vector.multi_reduction <maximumf>, %197, %cst_124 [0] : vector<8x128xf32> to vector<128xf32>
    %199 = vector.shape_cast %198 : vector<128xf32> to vector<1x128xf32>
    %c0_125 = arith.constant 0 : index
    %c0_126 = arith.constant 0 : index
    %200 = vector.load %arg23[%c0_125, %c0_126] : memref<22x128xf32, #tpu.memory_space<vmem>>, vector<1x128xf32>
    tpu.vector_store %arg23[%c0_125, %c0_126], %199 {strides = array<i32>} : memref<22x128xf32, #tpu.memory_space<vmem>>, vector<1x128xf32>,
    %c8 = arith.constant 8 : index
    %c0_127 = arith.constant 0 : index
    %201 = vector.load %arg22[%c8, %c0_127] : memref<176x128xf32, #tpu.memory_space<vmem>>, vector<8x128xf32>
    %cst_128 = arith.constant dense<0xFF800000> : vector<128xf32>
    %202 = vector.multi_reduction <maximumf>, %201, %cst_128 [0] : vector<8x128xf32> to vector<128xf32>
    %203 = vector.shape_cast %202 : vector<128xf32> to vector<1x128xf32>
    %c1_129 = arith.constant 1 : index
    %c0_130 = arith.constant 0 : index
    %204 = vector.load %arg23[%c1_129, %c0_130] : memref<22x128xf32, #tpu.memory_space<vmem>>, vector<1x128xf32>
    tpu.vector_store %arg23[%c1_129, %c0_130], %203 {strides = array<i32>} : memref<22x128xf32, #tpu.memory_space<vmem>>, vector<1x128xf32>,
    %c16 = arith.constant 16 : index
    %c0_131 = arith.constant 0 : index
    %205 = vector.load %arg22[%c16, %c0_131] : memref<176x128xf32, #tpu.memory_space<vmem>>, vector<8x128xf32>
    %cst_132 = arith.constant dense<0xFF800000> : vector<128xf32>
    %206 = vector.multi_reduction <maximumf>, %205, %cst_132 [0] : vector<8x128xf32> to vector<128xf32>
    %207 = vector.shape_cast %206 : vector<128xf32> to vector<1x128xf32>
    %c2_133 = arith.constant 2 : index
    %c0_134 = arith.constant 0 : index
    %208 = vector.load %arg23[%c2_133, %c0_134] : memref<22x128xf32, #tpu.memory_space<vmem>>, vector<1x128xf32>
    tpu.vector_store %arg23[%c2_133, %c0_134], %207 {strides = array<i32>} : memref<22x128xf32, #tpu.memory_space<vmem>>, vector<1x128xf32>,
    %c24 = arith.constant 24 : index
    %c0_135 = arith.constant 0 : index
    %209 = vector.load %arg22[%c24, %c0_135] : memref<176x128xf32, #tpu.memory_space<vmem>>, vector<8x128xf32>
    %cst_136 = arith.constant dense<0xFF800000> : vector<128xf32>
    %210 = vector.multi_reduction <maximumf>, %209, %cst_136 [0] : vector<8x128xf32> to vector<128xf32>
    %211 = vector.shape_cast %210 : vector<128xf32> to vector<1x128xf32>
    %c3_137 = arith.constant 3 : index
    %c0_138 = arith.constant 0 : index
    %212 = vector.load %arg23[%c3_137, %c0_138] : memref<22x128xf32, #tpu.memory_space<vmem>>, vector<1x128xf32>
    tpu.vector_store %arg23[%c3_137, %c0_138], %211 {strides = array<i32>} : memref<22x128xf32, #tpu.memory_space<vmem>>, vector<1x128xf32>,
    %c32 = arith.constant 32 : index
    %c0_139 = arith.constant 0 : index
    %213 = vector.load %arg22[%c32, %c0_139] : memref<176x128xf32, #tpu.memory_space<vmem>>, vector<8x128xf32>
    %cst_140 = arith.constant dense<0xFF800000> : vector<128xf32>
    %214 = vector.multi_reduction <maximumf>, %213, %cst_140 [0] : vector<8x128xf32> to vector<128xf32>
    %215 = vector.shape_cast %214 : vector<128xf32> to vector<1x128xf32>
    %c4_141 = arith.constant 4 : index
    %c0_142 = arith.constant 0 : index
    %216 = vector.load %arg23[%c4_141, %c0_142] : memref<22x128xf32, #tpu.memory_space<vmem>>, vector<1x128xf32>
    tpu.vector_store %arg23[%c4_141, %c0_142], %215 {strides = array<i32>} : memref<22x128xf32, #tpu.memory_space<vmem>>, vector<1x128xf32>,
    %c40 = arith.constant 40 : index
    %c0_143 = arith.constant 0 : index
    %217 = vector.load %arg22[%c40, %c0_143] : memref<176x128xf32, #tpu.memory_space<vmem>>, vector<8x128xf32>
    %cst_144 = arith.constant dense<0xFF800000> : vector<128xf32>
    %218 = vector.multi_reduction <maximumf>, %217, %cst_144 [0] : vector<8x128xf32> to vector<128xf32>
    %219 = vector.shape_cast %218 : vector<128xf32> to vector<1x128xf32>
    %c5 = arith.constant 5 : index
    %c0_145 = arith.constant 0 : index
    %220 = vector.load %arg23[%c5, %c0_145] : memref<22x128xf32, #tpu.memory_space<vmem>>, vector<1x128xf32>
    tpu.vector_store %arg23[%c5, %c0_145], %219 {strides = array<i32>} : memref<22x128xf32, #tpu.memory_space<vmem>>, vector<1x128xf32>,
    %c48 = arith.constant 48 : index
    %c0_146 = arith.constant 0 : index
    %221 = vector.load %arg22[%c48, %c0_146] : memref<176x128xf32, #tpu.memory_space<vmem>>, vector<8x128xf32>
    %cst_147 = arith.constant dense<0xFF800000> : vector<128xf32>
    %222 = vector.multi_reduction <maximumf>, %221, %cst_147 [0] : vector<8x128xf32> to vector<128xf32>
    %223 = vector.shape_cast %222 : vector<128xf32> to vector<1x128xf32>
    %c6 = arith.constant 6 : index
    %c0_148 = arith.constant 0 : index
    %224 = vector.load %arg23[%c6, %c0_148] : memref<22x128xf32, #tpu.memory_space<vmem>>, vector<1x128xf32>
    tpu.vector_store %arg23[%c6, %c0_148], %223 {strides = array<i32>} : memref<22x128xf32, #tpu.memory_space<vmem>>, vector<1x128xf32>,
    %c56 = arith.constant 56 : index
    %c0_149 = arith.constant 0 : index
    %225 = vector.load %arg22[%c56, %c0_149] : memref<176x128xf32, #tpu.memory_space<vmem>>, vector<8x128xf32>
    %cst_150 = arith.constant dense<0xFF800000> : vector<128xf32>
    %226 = vector.multi_reduction <maximumf>, %225, %cst_150 [0] : vector<8x128xf32> to vector<128xf32>
    %227 = vector.shape_cast %226 : vector<128xf32> to vector<1x128xf32>
    %c7 = arith.constant 7 : index
    %c0_151 = arith.constant 0 : index
    %228 = vector.load %arg23[%c7, %c0_151] : memref<22x128xf32, #tpu.memory_space<vmem>>, vector<1x128xf32>
    tpu.vector_store %arg23[%c7, %c0_151], %227 {strides = array<i32>} : memref<22x128xf32, #tpu.memory_space<vmem>>, vector<1x128xf32>,
    %c64_152 = arith.constant 64 : index
    %c0_153 = arith.constant 0 : index
    %229 = vector.load %arg22[%c64_152, %c0_153] : memref<176x128xf32, #tpu.memory_space<vmem>>, vector<8x128xf32>
    %cst_154 = arith.constant dense<0xFF800000> : vector<128xf32>
    %230 = vector.multi_reduction <maximumf>, %229, %cst_154 [0] : vector<8x128xf32> to vector<128xf32>
    %231 = vector.shape_cast %230 : vector<128xf32> to vector<1x128xf32>
    %c8_155 = arith.constant 8 : index
    %c0_156 = arith.constant 0 : index
    %232 = vector.load %arg23[%c8_155, %c0_156] : memref<22x128xf32, #tpu.memory_space<vmem>>, vector<1x128xf32>
    tpu.vector_store %arg23[%c8_155, %c0_156], %231 {strides = array<i32>} : memref<22x128xf32, #tpu.memory_space<vmem>>, vector<1x128xf32>,
    %c72 = arith.constant 72 : index
    %c0_157 = arith.constant 0 : index
    %233 = vector.load %arg22[%c72, %c0_157] : memref<176x128xf32, #tpu.memory_space<vmem>>, vector<8x128xf32>
    %cst_158 = arith.constant dense<0xFF800000> : vector<128xf32>
    %234 = vector.multi_reduction <maximumf>, %233, %cst_158 [0] : vector<8x128xf32> to vector<128xf32>
    %235 = vector.shape_cast %234 : vector<128xf32> to vector<1x128xf32>
    %c9 = arith.constant 9 : index
    %c0_159 = arith.constant 0 : index
    %236 = vector.load %arg23[%c9, %c0_159] : memref<22x128xf32, #tpu.memory_space<vmem>>, vector<1x128xf32>
    tpu.vector_store %arg23[%c9, %c0_159], %235 {strides = array<i32>} : memref<22x128xf32, #tpu.memory_space<vmem>>, vector<1x128xf32>,
    %c80 = arith.constant 80 : index
    %c0_160 = arith.constant 0 : index
    %237 = vector.load %arg22[%c80, %c0_160] : memref<176x128xf32, #tpu.memory_space<vmem>>, vector<8x128xf32>
    %cst_161 = arith.constant dense<0xFF800000> : vector<128xf32>
    %238 = vector.multi_reduction <maximumf>, %237, %cst_161 [0] : vector<8x128xf32> to vector<128xf32>
    %239 = vector.shape_cast %238 : vector<128xf32> to vector<1x128xf32>
    %c10 = arith.constant 10 : index
    %c0_162 = arith.constant 0 : index
    %240 = vector.load %arg23[%c10, %c0_162] : memref<22x128xf32, #tpu.memory_space<vmem>>, vector<1x128xf32>
    tpu.vector_store %arg23[%c10, %c0_162], %239 {strides = array<i32>} : memref<22x128xf32, #tpu.memory_space<vmem>>, vector<1x128xf32>,
    %c88_163 = arith.constant 88 : index
    %c0_164 = arith.constant 0 : index
    %241 = vector.load %arg22[%c88_163, %c0_164] : memref<176x128xf32, #tpu.memory_space<vmem>>, vector<8x128xf32>
    %cst_165 = arith.constant dense<0xFF800000> : vector<128xf32>
    %242 = vector.multi_reduction <maximumf>, %241, %cst_165 [0] : vector<8x128xf32> to vector<128xf32>
    %243 = vector.shape_cast %242 : vector<128xf32> to vector<1x128xf32>
    %c11 = arith.constant 11 : index
    %c0_166 = arith.constant 0 : index
    %244 = vector.load %arg23[%c11, %c0_166] : memref<22x128xf32, #tpu.memory_space<vmem>>, vector<1x128xf32>
    tpu.vector_store %arg23[%c11, %c0_166], %243 {strides = array<i32>} : memref<22x128xf32, #tpu.memory_space<vmem>>, vector<1x128xf32>,
    %c96 = arith.constant 96 : index
    %c0_167 = arith.constant 0 : index
    %245 = vector.load %arg22[%c96, %c0_167] : memref<176x128xf32, #tpu.memory_space<vmem>>, vector<8x128xf32>
    %cst_168 = arith.constant dense<0xFF800000> : vector<128xf32>
    %246 = vector.multi_reduction <maximumf>, %245, %cst_168 [0] : vector<8x128xf32> to vector<128xf32>
    %247 = vector.shape_cast %246 : vector<128xf32> to vector<1x128xf32>
    %c12 = arith.constant 12 : index
    %c0_169 = arith.constant 0 : index
    %248 = vector.load %arg23[%c12, %c0_169] : memref<22x128xf32, #tpu.memory_space<vmem>>, vector<1x128xf32>
    tpu.vector_store %arg23[%c12, %c0_169], %247 {strides = array<i32>} : memref<22x128xf32, #tpu.memory_space<vmem>>, vector<1x128xf32>,
    %c104 = arith.constant 104 : index
    %c0_170 = arith.constant 0 : index
    %249 = vector.load %arg22[%c104, %c0_170] : memref<176x128xf32, #tpu.memory_space<vmem>>, vector<8x128xf32>
    %cst_171 = arith.constant dense<0xFF800000> : vector<128xf32>
    %250 = vector.multi_reduction <maximumf>, %249, %cst_171 [0] : vector<8x128xf32> to vector<128xf32>
    %251 = vector.shape_cast %250 : vector<128xf32> to vector<1x128xf32>
    %c13 = arith.constant 13 : index
    %c0_172 = arith.constant 0 : index
    %252 = vector.load %arg23[%c13, %c0_172] : memref<22x128xf32, #tpu.memory_space<vmem>>, vector<1x128xf32>
    tpu.vector_store %arg23[%c13, %c0_172], %251 {strides = array<i32>} : memref<22x128xf32, #tpu.memory_space<vmem>>, vector<1x128xf32>,
    %c112 = arith.constant 112 : index
    %c0_173 = arith.constant 0 : index
    %253 = vector.load %arg22[%c112, %c0_173] : memref<176x128xf32, #tpu.memory_space<vmem>>, vector<8x128xf32>
    %cst_174 = arith.constant dense<0xFF800000> : vector<128xf32>
    %254 = vector.multi_reduction <maximumf>, %253, %cst_174 [0] : vector<8x128xf32> to vector<128xf32>
    %255 = vector.shape_cast %254 : vector<128xf32> to vector<1x128xf32>
    %c14 = arith.constant 14 : index
    %c0_175 = arith.constant 0 : index
    %256 = vector.load %arg23[%c14, %c0_175] : memref<22x128xf32, #tpu.memory_space<vmem>>, vector<1x128xf32>
    tpu.vector_store %arg23[%c14, %c0_175], %255 {strides = array<i32>} : memref<22x128xf32, #tpu.memory_space<vmem>>, vector<1x128xf32>,
    %c120 = arith.constant 120 : index
    %c0_176 = arith.constant 0 : index
    %257 = vector.load %arg22[%c120, %c0_176] : memref<176x128xf32, #tpu.memory_space<vmem>>, vector<8x128xf32>
    %cst_177 = arith.constant dense<0xFF800000> : vector<128xf32>
    %258 = vector.multi_reduction <maximumf>, %257, %cst_177 [0] : vector<8x128xf32> to vector<128xf32>
    %259 = vector.shape_cast %258 : vector<128xf32> to vector<1x128xf32>
    %c15 = arith.constant 15 : index
    %c0_178 = arith.constant 0 : index
    %260 = vector.load %arg23[%c15, %c0_178] : memref<22x128xf32, #tpu.memory_space<vmem>>, vector<1x128xf32>
    tpu.vector_store %arg23[%c15, %c0_178], %259 {strides = array<i32>} : memref<22x128xf32, #tpu.memory_space<vmem>>, vector<1x128xf32>,
    %c128_179 = arith.constant 128 : index
    %c0_180 = arith.constant 0 : index
    %261 = vector.load %arg22[%c128_179, %c0_180] : memref<176x128xf32, #tpu.memory_space<vmem>>, vector<8x128xf32>
    %cst_181 = arith.constant dense<0xFF800000> : vector<128xf32>
    %262 = vector.multi_reduction <maximumf>, %261, %cst_181 [0] : vector<8x128xf32> to vector<128xf32>
    %263 = vector.shape_cast %262 : vector<128xf32> to vector<1x128xf32>
    %c16_182 = arith.constant 16 : index
    %c0_183 = arith.constant 0 : index
    %264 = vector.load %arg23[%c16_182, %c0_183] : memref<22x128xf32, #tpu.memory_space<vmem>>, vector<1x128xf32>
    tpu.vector_store %arg23[%c16_182, %c0_183], %263 {strides = array<i32>} : memref<22x128xf32, #tpu.memory_space<vmem>>, vector<1x128xf32>,
    %c136 = arith.constant 136 : index
    %c0_184 = arith.constant 0 : index
    %265 = vector.load %arg22[%c136, %c0_184] : memref<176x128xf32, #tpu.memory_space<vmem>>, vector<8x128xf32>
    %cst_185 = arith.constant dense<0xFF800000> : vector<128xf32>
    %266 = vector.multi_reduction <maximumf>, %265, %cst_185 [0] : vector<8x128xf32> to vector<128xf32>
    %267 = vector.shape_cast %266 : vector<128xf32> to vector<1x128xf32>
    %c17 = arith.constant 17 : index
    %c0_186 = arith.constant 0 : index
    %268 = vector.load %arg23[%c17, %c0_186] : memref<22x128xf32, #tpu.memory_space<vmem>>, vector<1x128xf32>
    tpu.vector_store %arg23[%c17, %c0_186], %267 {strides = array<i32>} : memref<22x128xf32, #tpu.memory_space<vmem>>, vector<1x128xf32>,
    %c144 = arith.constant 144 : index
    %c0_187 = arith.constant 0 : index
    %269 = vector.load %arg22[%c144, %c0_187] : memref<176x128xf32, #tpu.memory_space<vmem>>, vector<8x128xf32>
    %cst_188 = arith.constant dense<0xFF800000> : vector<128xf32>
    %270 = vector.multi_reduction <maximumf>, %269, %cst_188 [0] : vector<8x128xf32> to vector<128xf32>
    %271 = vector.shape_cast %270 : vector<128xf32> to vector<1x128xf32>
    %c18 = arith.constant 18 : index
    %c0_189 = arith.constant 0 : index
    %272 = vector.load %arg23[%c18, %c0_189] : memref<22x128xf32, #tpu.memory_space<vmem>>, vector<1x128xf32>
    tpu.vector_store %arg23[%c18, %c0_189], %271 {strides = array<i32>} : memref<22x128xf32, #tpu.memory_space<vmem>>, vector<1x128xf32>,
    %c152 = arith.constant 152 : index
    %c0_190 = arith.constant 0 : index
    %273 = vector.load %arg22[%c152, %c0_190] : memref<176x128xf32, #tpu.memory_space<vmem>>, vector<8x128xf32>
    %cst_191 = arith.constant dense<0xFF800000> : vector<128xf32>
    %274 = vector.multi_reduction <maximumf>, %273, %cst_191 [0] : vector<8x128xf32> to vector<128xf32>
    %275 = vector.shape_cast %274 : vector<128xf32> to vector<1x128xf32>
    %c19 = arith.constant 19 : index
    %c0_192 = arith.constant 0 : index
    %276 = vector.load %arg23[%c19, %c0_192] : memref<22x128xf32, #tpu.memory_space<vmem>>, vector<1x128xf32>
    tpu.vector_store %arg23[%c19, %c0_192], %275 {strides = array<i32>} : memref<22x128xf32, #tpu.memory_space<vmem>>, vector<1x128xf32>,
    %c160 = arith.constant 160 : index
    %c0_193 = arith.constant 0 : index
    %277 = vector.load %arg22[%c160, %c0_193] : memref<176x128xf32, #tpu.memory_space<vmem>>, vector<8x128xf32>
    %cst_194 = arith.constant dense<0xFF800000> : vector<128xf32>
    %278 = vector.multi_reduction <maximumf>, %277, %cst_194 [0] : vector<8x128xf32> to vector<128xf32>
    %279 = vector.shape_cast %278 : vector<128xf32> to vector<1x128xf32>
    %c20 = arith.constant 20 : index
    %c0_195 = arith.constant 0 : index
    %280 = vector.load %arg23[%c20, %c0_195] : memref<22x128xf32, #tpu.memory_space<vmem>>, vector<1x128xf32>
    tpu.vector_store %arg23[%c20, %c0_195], %279 {strides = array<i32>} : memref<22x128xf32, #tpu.memory_space<vmem>>, vector<1x128xf32>,
    %c168 = arith.constant 168 : index
    %c0_196 = arith.constant 0 : index
    %281 = vector.load %arg22[%c168, %c0_196] : memref<176x128xf32, #tpu.memory_space<vmem>>, vector<8x128xf32>
    %cst_197 = arith.constant dense<0xFF800000> : vector<128xf32>
    %282 = vector.multi_reduction <maximumf>, %281, %cst_197 [0] : vector<8x128xf32> to vector<128xf32>
    %283 = vector.shape_cast %282 : vector<128xf32> to vector<1x128xf32>
    %c21 = arith.constant 21 : index
    %c0_198 = arith.constant 0 : index
    %284 = vector.load %arg23[%c21, %c0_198] : memref<22x128xf32, #tpu.memory_space<vmem>>, vector<1x128xf32>
    tpu.vector_store %arg23[%c21, %c0_198], %283 {strides = array<i32>} : memref<22x128xf32, #tpu.memory_space<vmem>>, vector<1x128xf32>,
    %c0_199 = arith.constant 0 : index
    %c0_200 = arith.constant 0 : index
    %285 = vector.load %arg23[%c0_199, %c0_200] : memref<22x128xf32, #tpu.memory_space<vmem>>, vector<18x128xf32>
    %c1_201 = arith.constant 1 : index
    %c0_202 = arith.constant 0 : index
    %286 = vector.load %arg23[%c1_201, %c0_202] : memref<22x128xf32, #tpu.memory_space<vmem>>, vector<18x128xf32>
    %c2_203 = arith.constant 2 : index
    %c0_204 = arith.constant 0 : index
    %287 = vector.load %arg23[%c2_203, %c0_204] : memref<22x128xf32, #tpu.memory_space<vmem>>, vector<18x128xf32>
    %c3_205 = arith.constant 3 : index
    %c0_206 = arith.constant 0 : index
    %288 = vector.load %arg23[%c3_205, %c0_206] : memref<22x128xf32, #tpu.memory_space<vmem>>, vector<18x128xf32>
    %c4_207 = arith.constant 4 : index
    %c0_208 = arith.constant 0 : index
    %289 = vector.load %arg23[%c4_207, %c0_208] : memref<22x128xf32, #tpu.memory_space<vmem>>, vector<18x128xf32>
    %290 = tpu.concatenate %285, %286, %287, %288, %289 in 1 : vector<18x128xf32>, vector<18x128xf32>, vector<18x128xf32>, vector<18x128xf32>, vector<18x128xf32> -> vector<18x640xf32>
    %291 = arith.truncf %290 : vector<18x640xf32> to vector<18x640xbf16>
    %c0_209 = arith.constant 0 : index
    %c0_210 = arith.constant 0 : index
    %292 = vector.load %arg8[%c0_209, %c0_210] : memref<640x128xbf16, #tpu.memory_space<vmem>>, vector<640x128xbf16>
    %cst_211 = arith.constant dense<0.000000e+00> : vector<18x128xf32>
    %293 = tpu.matmul %291, %292, %cst_211 {dimension_numbers = #tpu.dot_dimension_numbers<[1], [0], [0], [1], [0, 0, 1, 1], [], []>} : vector<18x640xbf16>, vector<640x128xbf16>, vector<18x128xf32> -> vector<18x128xf32>
    %c0_212 = arith.constant 0 : index
    %c0_213 = arith.constant 0 : index
    %294 = vector.load %arg9[%c0_212, %c0_213] : memref<1x128xf32, #tpu.memory_space<vmem>>, vector<1x128xf32>
    %295 = vector.broadcast %294 : vector<1x128xf32> to vector<18x128xf32>
    %296 = arith.addf %293, %295 : vector<18x128xf32>
    %cst_214 = arith.constant 0.000000e+00 : f32
    %297 = vector.broadcast %cst_214 : f32 to vector<18x128xf32>
    %298 = arith.maximumf %296, %297 : vector<18x128xf32>
    %c0_215 = arith.constant 0 : index
    %c0_216 = arith.constant 0 : index
    %299 = vector.load %arg24[%c0_215, %c0_216] : memref<18x128xf32, #tpu.memory_space<vmem>>, vector<18x128xf32>
    tpu.vector_store %arg24[%c0_215, %c0_216], %298 {strides = array<i32>} : memref<18x128xf32, #tpu.memory_space<vmem>>, vector<18x128xf32>,
    %c0_217 = arith.constant 0 : index
    %c0_218 = arith.constant 0 : index
    %300 = vector.load %arg24[%c0_217, %c0_218] : memref<18x128xf32, #tpu.memory_space<vmem>>, vector<14x128xf32>
    %c1_219 = arith.constant 1 : index
    %c0_220 = arith.constant 0 : index
    %301 = vector.load %arg24[%c1_219, %c0_220] : memref<18x128xf32, #tpu.memory_space<vmem>>, vector<14x128xf32>
    %c2_221 = arith.constant 2 : index
    %c0_222 = arith.constant 0 : index
    %302 = vector.load %arg24[%c2_221, %c0_222] : memref<18x128xf32, #tpu.memory_space<vmem>>, vector<14x128xf32>
    %c3_223 = arith.constant 3 : index
    %c0_224 = arith.constant 0 : index
    %303 = vector.load %arg24[%c3_223, %c0_224] : memref<18x128xf32, #tpu.memory_space<vmem>>, vector<14x128xf32>
    %c4_225 = arith.constant 4 : index
    %c0_226 = arith.constant 0 : index
    %304 = vector.load %arg24[%c4_225, %c0_226] : memref<18x128xf32, #tpu.memory_space<vmem>>, vector<14x128xf32>
    %305 = tpu.concatenate %300, %301, %302, %303, %304 in 1 : vector<14x128xf32>, vector<14x128xf32>, vector<14x128xf32>, vector<14x128xf32>, vector<14x128xf32> -> vector<14x640xf32>
    %306 = arith.truncf %305 : vector<14x640xf32> to vector<14x640xbf16>
    %c0_227 = arith.constant 0 : index
    %c0_228 = arith.constant 0 : index
    %307 = vector.load %arg10[%c0_227, %c0_228] : memref<640x128xbf16, #tpu.memory_space<vmem>>, vector<640x128xbf16>
    %cst_229 = arith.constant dense<0.000000e+00> : vector<14x128xf32>
    %308 = tpu.matmul %306, %307, %cst_229 {dimension_numbers = #tpu.dot_dimension_numbers<[1], [0], [0], [1], [0, 0, 1, 1], [], []>} : vector<14x640xbf16>, vector<640x128xbf16>, vector<14x128xf32> -> vector<14x128xf32>
    %c0_230 = arith.constant 0 : index
    %c0_231 = arith.constant 0 : index
    %309 = vector.load %arg11[%c0_230, %c0_231] : memref<1x128xf32, #tpu.memory_space<vmem>>, vector<1x128xf32>
    %310 = vector.broadcast %309 : vector<1x128xf32> to vector<14x128xf32>
    %311 = arith.addf %308, %310 : vector<14x128xf32>
    %cst_232 = arith.constant 0.000000e+00 : f32
    %312 = vector.broadcast %cst_232 : f32 to vector<14x128xf32>
    %313 = arith.maximumf %311, %312 : vector<14x128xf32>
    %c0_233 = arith.constant 0 : index
    %c0_234 = arith.constant 0 : index
    %314 = vector.load %arg25[%c0_233, %c0_234] : memref<14x128xf32, #tpu.memory_space<vmem>>, vector<14x128xf32>
    tpu.vector_store %arg25[%c0_233, %c0_234], %313 {strides = array<i32>} : memref<14x128xf32, #tpu.memory_space<vmem>>, vector<14x128xf32>,
    %c0_235 = arith.constant 0 : index
    %c0_236 = arith.constant 0 : index
    %315 = vector.load %arg25[%c0_235, %c0_236] : memref<14x128xf32, #tpu.memory_space<vmem>>, vector<10x128xf32>
    %c1_237 = arith.constant 1 : index
    %c0_238 = arith.constant 0 : index
    %316 = vector.load %arg25[%c1_237, %c0_238] : memref<14x128xf32, #tpu.memory_space<vmem>>, vector<10x128xf32>
    %c2_239 = arith.constant 2 : index
    %c0_240 = arith.constant 0 : index
    %317 = vector.load %arg25[%c2_239, %c0_240] : memref<14x128xf32, #tpu.memory_space<vmem>>, vector<10x128xf32>
    %c3_241 = arith.constant 3 : index
    %c0_242 = arith.constant 0 : index
    %318 = vector.load %arg25[%c3_241, %c0_242] : memref<14x128xf32, #tpu.memory_space<vmem>>, vector<10x128xf32>
    %c4_243 = arith.constant 4 : index
    %c0_244 = arith.constant 0 : index
    %319 = vector.load %arg25[%c4_243, %c0_244] : memref<14x128xf32, #tpu.memory_space<vmem>>, vector<10x128xf32>
    %320 = tpu.concatenate %315, %316, %317, %318, %319 in 1 : vector<10x128xf32>, vector<10x128xf32>, vector<10x128xf32>, vector<10x128xf32>, vector<10x128xf32> -> vector<10x640xf32>
    %321 = arith.truncf %320 : vector<10x640xf32> to vector<10x640xbf16>
    %c0_245 = arith.constant 0 : index
    %c0_246 = arith.constant 0 : index
    %322 = vector.load %arg12[%c0_245, %c0_246] : memref<640x128xbf16, #tpu.memory_space<vmem>>, vector<640x128xbf16>
    %cst_247 = arith.constant dense<0.000000e+00> : vector<10x128xf32>
    %323 = tpu.matmul %321, %322, %cst_247 {dimension_numbers = #tpu.dot_dimension_numbers<[1], [0], [0], [1], [0, 0, 1, 1], [], []>} : vector<10x640xbf16>, vector<640x128xbf16>, vector<10x128xf32> -> vector<10x128xf32>
    %c0_248 = arith.constant 0 : index
    %c0_249 = arith.constant 0 : index
    %324 = vector.load %arg13[%c0_248, %c0_249] : memref<1x128xf32, #tpu.memory_space<vmem>>, vector<1x128xf32>
    %325 = vector.broadcast %324 : vector<1x128xf32> to vector<10x128xf32>
    %326 = arith.addf %323, %325 : vector<10x128xf32>
    %cst_250 = arith.constant 0.000000e+00 : f32
    %327 = vector.broadcast %cst_250 : f32 to vector<10x128xf32>
    %328 = arith.maximumf %326, %327 : vector<10x128xf32>
    %c0_251 = arith.constant 0 : index
    %c0_252 = arith.constant 0 : index
    %329 = vector.load %arg26[%c0_251, %c0_252] : memref<10x128xf32, #tpu.memory_space<vmem>>, vector<10x128xf32>
    tpu.vector_store %arg26[%c0_251, %c0_252], %328 {strides = array<i32>} : memref<10x128xf32, #tpu.memory_space<vmem>>, vector<10x128xf32>,
    %c0_253 = arith.constant 0 : index
    %c0_254 = arith.constant 0 : index
    %330 = vector.load %arg26[%c0_253, %c0_254] : memref<10x128xf32, #tpu.memory_space<vmem>>, vector<6x128xf32>
    %c1_255 = arith.constant 1 : index
    %c0_256 = arith.constant 0 : index
    %331 = vector.load %arg26[%c1_255, %c0_256] : memref<10x128xf32, #tpu.memory_space<vmem>>, vector<6x128xf32>
    %c2_257 = arith.constant 2 : index
    %c0_258 = arith.constant 0 : index
    %332 = vector.load %arg26[%c2_257, %c0_258] : memref<10x128xf32, #tpu.memory_space<vmem>>, vector<6x128xf32>
    %c3_259 = arith.constant 3 : index
    %c0_260 = arith.constant 0 : index
    %333 = vector.load %arg26[%c3_259, %c0_260] : memref<10x128xf32, #tpu.memory_space<vmem>>, vector<6x128xf32>
    %c4_261 = arith.constant 4 : index
    %c0_262 = arith.constant 0 : index
    %334 = vector.load %arg26[%c4_261, %c0_262] : memref<10x128xf32, #tpu.memory_space<vmem>>, vector<6x128xf32>
    %335 = tpu.concatenate %330, %331, %332, %333, %334 in 1 : vector<6x128xf32>, vector<6x128xf32>, vector<6x128xf32>, vector<6x128xf32>, vector<6x128xf32> -> vector<6x640xf32>
    %336 = arith.truncf %335 : vector<6x640xf32> to vector<6x640xbf16>
    %c0_263 = arith.constant 0 : index
    %c0_264 = arith.constant 0 : index
    %337 = vector.load %arg14[%c0_263, %c0_264] : memref<640x128xbf16, #tpu.memory_space<vmem>>, vector<640x128xbf16>
    %cst_265 = arith.constant dense<0.000000e+00> : vector<6x128xf32>
    %338 = tpu.matmul %336, %337, %cst_265 {dimension_numbers = #tpu.dot_dimension_numbers<[1], [0], [0], [1], [0, 0, 1, 1], [], []>} : vector<6x640xbf16>, vector<640x128xbf16>, vector<6x128xf32> -> vector<6x128xf32>
    %c0_266 = arith.constant 0 : index
    %c0_267 = arith.constant 0 : index
    %339 = vector.load %arg15[%c0_266, %c0_267] : memref<1x128xf32, #tpu.memory_space<vmem>>, vector<1x128xf32>
    %340 = vector.broadcast %339 : vector<1x128xf32> to vector<6x128xf32>
    %341 = arith.addf %338, %340 : vector<6x128xf32>
    %cst_268 = arith.constant 0.000000e+00 : f32
    %342 = vector.broadcast %cst_268 : f32 to vector<6x128xf32>
    %343 = arith.maximumf %341, %342 : vector<6x128xf32>
    %c0_269 = arith.constant 0 : index
    %c0_270 = arith.constant 0 : index
    %344 = vector.load %arg27[%c0_269, %c0_270] : memref<6x128xf32, #tpu.memory_space<vmem>>, vector<6x128xf32>
    tpu.vector_store %arg27[%c0_269, %c0_270], %343 {strides = array<i32>} : memref<6x128xf32, #tpu.memory_space<vmem>>, vector<6x128xf32>,
    %c0_271 = arith.constant 0 : index
    %c0_272 = arith.constant 0 : index
    %345 = vector.load %arg27[%c0_271, %c0_272] : memref<6x128xf32, #tpu.memory_space<vmem>>, vector<1x128xf32>
    %c1_273 = arith.constant 1 : index
    %c0_274 = arith.constant 0 : index
    %346 = vector.load %arg27[%c1_273, %c0_274] : memref<6x128xf32, #tpu.memory_space<vmem>>, vector<1x128xf32>
    %c2_275 = arith.constant 2 : index
    %c0_276 = arith.constant 0 : index
    %347 = vector.load %arg27[%c2_275, %c0_276] : memref<6x128xf32, #tpu.memory_space<vmem>>, vector<1x128xf32>
    %c3_277 = arith.constant 3 : index
    %c0_278 = arith.constant 0 : index
    %348 = vector.load %arg27[%c3_277, %c0_278] : memref<6x128xf32, #tpu.memory_space<vmem>>, vector<1x128xf32>
    %c4_279 = arith.constant 4 : index
    %c0_280 = arith.constant 0 : index
    %349 = vector.load %arg27[%c4_279, %c0_280] : memref<6x128xf32, #tpu.memory_space<vmem>>, vector<1x128xf32>
    %c5_281 = arith.constant 5 : index
    %c0_282 = arith.constant 0 : index
    %350 = vector.load %arg27[%c5_281, %c0_282] : memref<6x128xf32, #tpu.memory_space<vmem>>, vector<1x128xf32>
    %351 = tpu.concatenate %345, %346, %347, %348, %349, %350 in 1 : vector<1x128xf32>, vector<1x128xf32>, vector<1x128xf32>, vector<1x128xf32>, vector<1x128xf32>, vector<1x128xf32> -> vector<1x768xf32>
    %352 = arith.truncf %351 : vector<1x768xf32> to vector<1x768xbf16>
    %c0_283 = arith.constant 0 : index
    %c0_284 = arith.constant 0 : index
    %353 = vector.load %arg16[%c0_283, %c0_284] : memref<768x128xbf16, #tpu.memory_space<vmem>>, vector<768x128xbf16>
    %cst_285 = arith.constant dense<0.000000e+00> : vector<1x128xf32>
    %354 = tpu.matmul %352, %353, %cst_285 {dimension_numbers = #tpu.dot_dimension_numbers<[1], [0], [0], [1], [0, 0, 1, 1], [], []>} : vector<1x768xbf16>, vector<768x128xbf16>, vector<1x128xf32> -> vector<1x128xf32>
    %c0_286 = arith.constant 0 : index
    %c0_287 = arith.constant 0 : index
    %355 = vector.load %arg17[%c0_286, %c0_287] : memref<1x128xf32, #tpu.memory_space<vmem>>, vector<1x128xf32>
    %356 = arith.addf %354, %355 : vector<1x128xf32>
    %357 = arith.truncf %356 : vector<1x128xf32> to vector<1x128xbf16>
    %c0_288 = arith.constant 0 : index
    %c0_289 = arith.constant 0 : index
    %358 = vector.load %arg18[%c0_288, %c0_289] : memref<128x128xbf16, #tpu.memory_space<vmem>>, vector<128x128xbf16>
    %cst_290 = arith.constant dense<0.000000e+00> : vector<1x128xf32>
    %359 = tpu.matmul %357, %358, %cst_290 {dimension_numbers = #tpu.dot_dimension_numbers<[1], [0], [0], [1], [0, 0, 1, 1], [], []>} : vector<1x128xbf16>, vector<128x128xbf16>, vector<1x128xf32> -> vector<1x128xf32>
    %c0_291 = arith.constant 0 : index
    %c0_292 = arith.constant 0 : index
    %360 = vector.load %arg19[%c0_291, %c0_292] : memref<1x128xf32, #tpu.memory_space<vmem>>, vector<1x128xf32>
    %361 = arith.addf %359, %360 : vector<1x128xf32>
    %c0_293 = arith.constant 0 : index
    %c0_294 = arith.constant 0 : index
    %c0_295 = arith.constant 0 : index
    %362 = vector.load %arg20[%c0_293, %c0_294, %c0_295] : memref<1x1x128xf32, #tpu.memory_space<vmem>>, vector<1x1x128xf32>
    %363 = vector.shape_cast %362 : vector<1x1x128xf32> to vector<1x128xf32>
    %364 = vector.shape_cast %361 : vector<1x128xf32> to vector<1x1x128xf32>
    tpu.vector_store %arg20[%c0_293, %c0_294, %c0_295], %364 {strides = array<i32>} : memref<1x1x128xf32, #tpu.memory_space<vmem>>, vector<1x1x128xf32>,
    return
  }
  func.func @transform_0(%arg0: i32) -> (i32, i32, i32) {
    %c0_i32 = arith.constant 0 : i32
    %c0_i32_0 = arith.constant 0 : i32
    %c0_i32_1 = arith.constant 0 : i32
    return %arg0, %c0_i32, %c0_i32_0 : i32, i32, i32
  }
  func.func @transform_1(%arg0: i32) -> (i32, i32) {
    %c0_i32 = arith.constant 0 : i32
    %c0_i32_0 = arith.constant 0 : i32
    %c0_i32_1 = arith.constant 0 : i32
    return %c0_i32, %c0_i32_0 : i32, i32
  }
  func.func @transform_2(%arg0: i32) -> (i32, i32) {
    %c0_i32 = arith.constant 0 : i32
    %c0_i32_0 = arith.constant 0 : i32
    %c0_i32_1 = arith.constant 0 : i32
    return %c0_i32, %c0_i32_0 : i32, i32
  }
  func.func @transform_3(%arg0: i32) -> (i32, i32, i32) {
    %c0_i32 = arith.constant 0 : i32
    %c0_i32_0 = arith.constant 0 : i32
    %c0_i32_1 = arith.constant 0 : i32
    %c0_i32_2 = arith.constant 0 : i32
    return %c0_i32, %c0_i32_0, %c0_i32_1 : i32, i32, i32
  }
  func.func @transform_4(%arg0: i32) -> (i32, i32) {
    %c0_i32 = arith.constant 0 : i32
    %c0_i32_0 = arith.constant 0 : i32
    %c0_i32_1 = arith.constant 0 : i32
    return %c0_i32, %c0_i32_0 : i32, i32
  }
  func.func @transform_5(%arg0: i32) -> (i32, i32) {
    %c0_i32 = arith.constant 0 : i32
    %c0_i32_0 = arith.constant 0 : i32
    %c0_i32_1 = arith.constant 0 : i32
    return %c0_i32, %c0_i32_0 : i32, i32
  }
  func.func @transform_6(%arg0: i32) -> (i32, i32) {
    %c0_i32 = arith.constant 0 : i32
    %c0_i32_0 = arith.constant 0 : i32
    %c0_i32_1 = arith.constant 0 : i32
    return %c0_i32, %c0_i32_0 : i32, i32
  }
  func.func @transform_7(%arg0: i32) -> (i32, i32) {
    %c0_i32 = arith.constant 0 : i32
    %c0_i32_0 = arith.constant 0 : i32
    %c0_i32_1 = arith.constant 0 : i32
    return %c0_i32, %c0_i32_0 : i32, i32
  }
  func.func @transform_8(%arg0: i32) -> (i32, i32) {
    %c0_i32 = arith.constant 0 : i32
    %c0_i32_0 = arith.constant 0 : i32
    %c0_i32_1 = arith.constant 0 : i32
    return %c0_i32, %c0_i32_0 : i32, i32
  }
  func.func @transform_9(%arg0: i32) -> (i32, i32) {
    %c0_i32 = arith.constant 0 : i32
    %c0_i32_0 = arith.constant 0 : i32
    %c0_i32_1 = arith.constant 0 : i32
    return %c0_i32, %c0_i32_0 : i32, i32
  }
  func.func @transform_10(%arg0: i32) -> (i32, i32) {
    %c0_i32 = arith.constant 0 : i32
    %c0_i32_0 = arith.constant 0 : i32
    %c0_i32_1 = arith.constant 0 : i32
    return %c0_i32, %c0_i32_0 : i32, i32
  }
  func.func @transform_11(%arg0: i32) -> (i32, i32) {
    %c0_i32 = arith.constant 0 : i32
    %c0_i32_0 = arith.constant 0 : i32
    %c0_i32_1 = arith.constant 0 : i32
    return %c0_i32, %c0_i32_0 : i32, i32
  }
  func.func @transform_12(%arg0: i32) -> (i32, i32) {
    %c0_i32 = arith.constant 0 : i32
    %c0_i32_0 = arith.constant 0 : i32
    %c0_i32_1 = arith.constant 0 : i32
    return %c0_i32, %c0_i32_0 : i32, i32
  }
  func.func @transform_13(%arg0: i32) -> (i32, i32) {
    %c0_i32 = arith.constant 0 : i32
    %c0_i32_0 = arith.constant 0 : i32
    %c0_i32_1 = arith.constant 0 : i32
    return %c0_i32, %c0_i32_0 : i32, i32
  }
  func.func @transform_14(%arg0: i32) -> (i32, i32) {
    %c0_i32 = arith.constant 0 : i32
    %c0_i32_0 = arith.constant 0 : i32
    %c0_i32_1 = arith.constant 0 : i32
    return %c0_i32, %c0_i32_0 : i32, i32
  }
  func.func @transform_15(%arg0: i32) -> (i32, i32) {
    %c0_i32 = arith.constant 0 : i32
    %c0_i32_0 = arith.constant 0 : i32
    %c0_i32_1 = arith.constant 0 : i32
    return %c0_i32, %c0_i32_0 : i32, i32
  }
  func.func @transform_16(%arg0: i32) -> (i32, i32) {
    %c0_i32 = arith.constant 0 : i32
    %c0_i32_0 = arith.constant 0 : i32
    %c0_i32_1 = arith.constant 0 : i32
    return %c0_i32, %c0_i32_0 : i32, i32
  }
  func.func @transform_17(%arg0: i32) -> (i32, i32) {
    %c0_i32 = arith.constant 0 : i32
    %c0_i32_0 = arith.constant 0 : i32
    %c0_i32_1 = arith.constant 0 : i32
    return %c0_i32, %c0_i32_0 : i32, i32
  }
  func.func @transform_18(%arg0: i32) -> (i32, i32) {
    %c0_i32 = arith.constant 0 : i32
    %c0_i32_0 = arith.constant 0 : i32
    %c0_i32_1 = arith.constant 0 : i32
    return %c0_i32, %c0_i32_0 : i32, i32
  }
  func.func @transform_19(%arg0: i32) -> (i32, i32, i32) {
    %c0_i32 = arith.constant 0 : i32
    %c0_i32_0 = arith.constant 0 : i32
    %c0_i32_1 = arith.constant 0 : i32
    return %arg0, %c0_i32, %c0_i32_0 : i32, i32, i32
  }
}

</mosaic_0001>

<bundles_post_ra>
// kernel: paper_conv_forward.1
= control target key start
LH: loop header
LB: loop body
LE: loop exit
PB: predicated region body
PF: predicated region fallthrough
CT: control target
= control target key end

     0   :  { %s12669_s0 = inlined_call_operand.vmem [shape: f32[2,184,1], index: 0, kind: input, shape index: {}]   ;;  %s12670_s1 = inlined_call_operand.vmem [shape: f32[5,256], index: 1, kind: input, shape index: {}]   ;;  %s12671_s2 = inlined_call_operand.vmem [shape: f32[1,256], index: 2, kind: input, shape index: {}]   ;;  %s12672_s3 = inlined_call_operand.vmem [shape: bf16[5,256,128], index: 3, kind: input, shape index: {}]   ;;  %s12673_s4 = inlined_call_operand.vmem [shape: f32[1,128], index: 4, kind: input, shape index: {}]   ;;  %s12674_s5 = inlined_call_operand.vmem [shape: f32[1,128], index: 5, kind: input, shape index: {}]   ;;  %s12675_s6 = inlined_call_operand.vmem [shape: f32[1,128], index: 6, kind: input, shape index: {}]   ;;  %s12676_s7 = inlined_call_operand.vmem [shape: bf16[640,128], index: 7, kind: input, shape index: {}]   ;;  %s12677_s8 = inlined_call_operand.vmem [shape: f32[1,128], index: 8, kind: input, shape index: {}]   ;;  %s12678_s9 = inlined_call_operand.vmem [shape: bf16[640,128], index: 9, kind: input, shape index: {}]   ;;  %s12679_s10 = inlined_call_operand.vmem [shape: f32[1,128], index: 10, kind: input, shape index: {}]   ;;  %s12680_s11 = inlined_call_operand.vmem [shape: bf16[640,128], index: 11, kind: input, shape index: {}]   ;;  %s12681_s12 = inlined_call_operand.vmem [shape: f32[1,128], index: 12, kind: input, shape index: {}]   ;;  %s12682_s13 = inlined_call_operand.vmem [shape: bf16[640,128], index: 13, kind: input, shape index: {}]   ;;  %s12683_s14 = inlined_call_operand.vmem [shape: f32[1,128], index: 14, kind: input, shape index: {}]   ;;  %s12684_s15 = inlined_call_operand.vmem [shape: bf16[768,128], index: 15, kind: input, shape index: {}]   ;;  %s12685_s16 = inlined_call_operand.vmem [shape: f32[1,128], index: 16, kind: input, shape index: {}]   ;;  %s12686_s17 = inlined_call_operand.vmem [shape: bf16[128,128], index: 17, kind: input, shape index: {}]   ;;  %s12687_s18 = inlined_call_operand.vmem [shape: f32[1,128], index: 18, kind: input, shape index: {}]   ;;  %s12688_s19 = inlined_call_operand.hbm [shape: f32[2,1,128], index: 19, kind: output, shape index: {}]  }
   0x1   :  { %12718 = sst [smem:[#allocation45_spill]] %s12669_s0 }
   0x2   :  { %12719 = sst [smem:[#allocation46_spill]] %s12670_s1 }
   0x3   :  { %12720 = sst [smem:[#allocation47_spill]] %s12671_s2 }
   0x4   :  { %12721 = sst [smem:[#allocation48_spill]] %s12672_s3 }
   0x5   :  { %12722 = sst [smem:[#allocation49_spill]] %s12673_s4 }
   0x6   :  { %12723 = sst [smem:[#allocation50_spill]] %s12674_s5 }
   0x7   :  { %12724 = sst [smem:[#allocation51_spill]] %s12687_s18 }
   0x8   :  { %24 = vsyncpa [#allocation10], 0 }
   0x9   :  { %26 = vsyncpa [#allocation10 + $0x1], 0  ;;  %s9673_s0 = smov 0   ;;  %s9675_s30 = smov 0  }
   0xa   :  { %s9677_s20 = smov 0   ;;  %s9679_s21 = smov 0  }
   0xb LB: > { %12725 = sst [smem:[#allocation12_spill]] %s9558_s0  ;;  %s9694_s1 = sadd.s32 4294967295, %s9570_s21   ;;  %s9570_s21 = sphi %s9679_s21, %s12851_s21   ;;  %s9566_s20 = sphi %s9677_s20, %s12853_s20   ;;  %s9562_s30 = sphi %s9675_s30, %s12855_s30   ;;  %s9558_s0 = sphi %s9673_s0, %s12854_s0  }
   0xc   : > { %12726 = sst [smem:[#allocation13_spill]] %s9566_s20  ;;  %s7303_s22 = sadd.s32 4294967294, %s9570_s21  }
   0xd   : > { %12727 = sst [smem:[#allocation14_spill]] %s9570_s21  ;;  %s9698_s2 = sadd.s32 1, %s9570_s21  }
   0xe   : > { %12728 = sst [smem:[#allocation15_spill]] %s9698_s2  ;;  %s443_s23 = sadd.s32 1, %s9566_s20 }
   0xf   : > { %s440_s24 = ssub.s32 %s9570_s21, %s9698_s2  ;;  %p453_p0 = scmp.ne.s32.totalorder %s9566_s20, %s9562_s30 }
  0x10   : > { %p441_p1 = scmp.eq.s32.totalorder %s440_s24, 0  ;;  %p454_p2 = scmp.eq.s32.totalorder %s9694_s1, 1 }
  0x11   : > { %p459_p3 = scmp.ne.s32.totalorder %s9562_s30, %s9558_s0  ;;  %p460_p4 = scmp.eq.s32.totalorder %s7303_s22, 1 }
  0x12   : > { %s9709_s25 = scalar_select %p441_p1, %s9566_s20, %s443_s23  }
  0x13   : > { %p9711_p5 = por %p454_p2, %p453_p0  ;;  %p9715_p6 = por %p460_p4, %p459_p3 }
  0x14   : > { %12729 = sst [smem:[#allocation16_spill]] %s9709_s25  ;;  %p7306_p7 = scmp.ge.s32.totalorder %s9570_s21, 1 }
  0x15   : > { %s12730_s3 = scalar_select %p9711_p5, 1, 0 }
  0x16   : > { %s12732_s26 = scalar_select %p9715_p6, 1, 0 }
  0x17   : > { %12731 = sst [smem:[#allocation17_spill]] %s12730_s3  ;;  %p540_p8 = scmp.lt.s32.totalorder %s9570_s21, 3 }
  0x18   : > { %12733 = sst [smem:[#allocation18_spill]] %s12732_s26 }
  0x19   : > { %p541_p9 = pnand %p7306_p7, %p540_p8 }
  0x1b   : > { %544 = sbr.rel (%p541_p9) target bundleno = 1807 (0x70f), region = 96 }
  0x20   : > { %p595_p10 = scmp.lt.s32.totalorder %s9694_s1, 1  ;;  %v9572_v0 = vmov 0   ;;  %s12734_s23 = sld [smem:[#allocation45_spill]]  ;;  %vm2038_vm0 = vsmask.f32 7424  ;;  %vm2542_vm2 = vcmask 1046528  }
  0x21   : > { %9493 = vset.pattern.permute.xlu2 %v9572_v0  ;;  %9492 = vset.pattern.permute.xlu1 %v9572_v0  ;;  %s12735_s29 = sld [smem:[#allocation48_spill]]  ;;  %vm2801_vm1 = vsmask.f32 6400  ;;  %vm3108_vm3 = vcmask 1045504   ;;  %s7244_s2 = scalar_lea.hbm %s12688_s19, %s9694_s1 }
  0x22   : > { %9491 = vset.pattern.permute.xlu0 %v9572_v0  ;;  %s596_s27 = scalar_select %p595_p10, %s9694_s1, 1 }
  0x23   : > { %s12736_s0 = sld [smem:[#allocation46_spill]] }
  0x24   : > { %s9450_s28 = smul.u32 184, %s596_s27  ;;  %s12738_s27 = sld [smem:[#allocation47_spill]] }
  0x25   : > { %s12839_s4 = sld [smem:[#allocation49_spill]] }
  0x26   : > { %s9726_s24 = scalar_lea.vmem %s12734_s23, %s9450_s28  ;;  %s12840_s5 = sld [smem:[#allocation50_spill]] }
  0x27   : > { %v695_v1 = vld [vmem:[%s9726_s24 + $0x1] sm:$0xff]  ;;  %v612_v2 = vld [vmem:[%s9726_s24 + $0x10] sm:$0xff]  ;;  %v613_v5 = vld [vmem:[%s9726_s24 + $0x18] sm:$0xff]  ;;  %s593_s28 = sand.u32 1, %s9562_s30   ;;  %s9528_s23 = scalar_lea.hbm %s12688_s19, 2 }
  0x28   : > { %v610_v3 = vld [vmem:[%s9726_s24] sm:$0xff]  ;;  %705 = vperm.xlu1 %9492, %v695_v1   ;;  %630 = vperm.xlu2 %9493, %v612_v2   ;;  %v696_v4 = vld [vmem:[%s9726_s24 + $0x9] sm:$0xff]  ;;  %v697_v9 = vld [vmem:[%s9726_s24 + $0x11] sm:$0xff]  ;;  %s594_s21 = scalar_lea.vmem [#allocation9], %s593_s28 }
  0x29   : > { %620 = vperm.xlu0 %9491, %v610_v3   ;;  %v611_v6 = vld [vmem:[%s9726_s24 + $0x8] sm:$0xff]  ;;  %v698_v7 = vld [vmem:[%s9726_s24 + $0x19] sm:$0xff]  ;;  %v701_v32 = vld [vmem:[%s9726_s24 + $0x31] sm:$0xff]  ;;  %s12737_s18 = smov %s12736_s0  ;;  %s7246_s3 = sshll.u32 %s594_s21, 4  ;;  %s7247_s3 = int_to_ptr.vmem [resolvable:$true] %s7246_s3 }
  0x2a   : > { %v780_v8 = vld [vmem:[%s9726_s24 + $0x2] sm:$0xff]  ;;  %v782_v10 = vld [vmem:[%s9726_s24 + $0x12] sm:$0xff]  ;;  %v783_v11 = vld [vmem:[%s9726_s24 + $0x1a] sm:$0xff] }
  0x2b   : > { %v781_v12 = vld [vmem:[%s9726_s24 + $0xa] sm:$0xff]  ;;  %v867_v14 = vld [vmem:[%s9726_s24 + $0x13] sm:$0xff]  ;;  %v868_v18 = vld [vmem:[%s9726_s24 + $0x1b] sm:$0xff] }
  0x2c   : > { %v866_v13 = vld [vmem:[%s9726_s24 + $0xb] sm:$0xff]  ;;  %v865_v15 = vld [vmem:[%s9726_s24 + $0x3] sm:$0xff]  ;;  %v952_v21 = vld [vmem:[%s9726_s24 + $0x14] sm:$0xff] }
  0x2d   : > { %v950_v16 = vld [vmem:[%s9726_s24 + $0x4] sm:$0xff]  ;;  %v951_v17 = vld [vmem:[%s9726_s24 + $0xc] sm:$0xff]  ;;  %v953_v19 = vld [vmem:[%s9726_s24 + $0x1c] sm:$0xff] }
  0x2e   : > { %v614_v20 = vld [vmem:[%s9726_s24 + $0x20] sm:$0xff]  ;;  %v700_v23 = vld [vmem:[%s9726_s24 + $0x29] sm:$0xff]  ;;  %v617_v31 = vld [vmem:[%s9726_s24 + $0x38] sm:$0xff] }
  0x2f   : > { %v699_v22 = vld [vmem:[%s9726_s24 + $0x21] sm:$0xff]  ;;  %v785_v25 = vld [vmem:[%s9726_s24 + $0x2a] sm:$0xff]  ;;  %v786_v34 = vld [vmem:[%s9726_s24 + $0x32] sm:$0xff] }
  0x30   : > { %710 = vperm.xlu1 %9492, %v696_v4   ;;  %635 = vperm.xlu2 %9493, %v613_v5   ;;  %v615_v24 = vld [vmem:[%s9726_s24 + $0x28] sm:$0xff]  ;;  %v616_v33 = vld [vmem:[%s9726_s24 + $0x30] sm:$0xff]  ;;  %v787_v35 = vld [vmem:[%s9726_s24 + $0x3a] sm:$0xff] }
  0x31   : > { %625 = vperm.xlu0 %9491, %v611_v6   ;;  %v869_v26 = vld [vmem:[%s9726_s24 + $0x23] sm:$0xff]  ;;  %v955_v29 = vld [vmem:[%s9726_s24 + $0x2c] sm:$0xff]  ;;  %v702_v36 = vld [vmem:[%s9726_s24 + $0x39] sm:$0xff] }
  0x32   : > { %v784_v27 = vld [vmem:[%s9726_s24 + $0x22] sm:$0xff]  ;;  %v870_v30 = vld [vmem:[%s9726_s24 + $0x2b] sm:$0xff]  ;;  %v956_v39 = vld [vmem:[%s9726_s24 + $0x34] sm:$0xff] }
  0x33   : > { %v954_v28 = vld [vmem:[%s9726_s24 + $0x24] sm:$0xff]  ;;  %v872_v38 = vld [vmem:[%s9726_s24 + $0x3b] sm:$0xff]  ;;  %v871_v40 = vld [vmem:[%s9726_s24 + $0x33] sm:$0xff] }
  0x34   : > { %v1088_v42 = vld [vmem:[%s9726_s24 + $0x40] sm:$0xff]  ;;  %v1089_v43 = vld [vmem:[%s9726_s24 + $0x48] sm:$0xff]  ;;  %v9081_v44 = vld [vmem:[%s12735_s29 + $0x38] sm:$0xff] }
  0x35   : > { %v9089_v45 = vld [vmem:[%s12735_s29 + $0x78] sm:$0xff]  ;;  %2413 = vmatpush.bf16.msra.mxu2 %v9081_v44  ;;  %v9080_v47 = vld [vmem:[%s12735_s29 + $0x30] sm:$0xff]  ;;  %v1248_v51 = vld [vmem:[%s9726_s24 + $0x42] sm:$0xff] }
  0x36   : > { %v957_v46 = vld [vmem:[%s9726_s24 + $0x3c] sm:$0xff]  ;;  %2451 = vmatpush.bf16.msra.mxu3 %v9089_v45  ;;  %v9088_v48 = vld [vmem:[%s12735_s29 + $0x70] sm:$0xff]  ;;  %v9079_v52 = vld [vmem:[%s12735_s29 + $0x28] sm:$0xff] }
  0x37   : > { %v1169_v50 = vld [vmem:[%s9726_s24 + $0x49] sm:$0xff]  ;;  %v1168_v54 = vld [vmem:[%s9726_s24 + $0x41] sm:$0xff]  ;;  %v9097_v61 = vld [vmem:[%s12735_s29 + $0xb8] sm:$0xff] }
  0x38   : > { %720 = vperm.xlu1 %9492, %v698_v7   ;;  %790 = vperm.xlu2 %9493, %v780_v8   ;;  %v9087_v53 = vld [vmem:[%s12735_s29 + $0x68] sm:$0xff]  ;;  %v9078_v55 = vld [vmem:[%s12735_s29 + $0x20] sm:$0xff]  ;;  %v9105_v62 = vld [vmem:[%s12735_s29 + $0xf8] sm:$0xff] }
  0x39   : > { %715 = vperm.xlu0 %9491, %v697_v9   ;;  %2414 = vmatpush.bf16.msra.mxu2 %v9080_v47  ;;  %v9086_v56 = vld [vmem:[%s12735_s29 + $0x60] sm:$0xff]  ;;  %v1329_v63 = vld [vmem:[%s9726_s24 + $0x4b] sm:$0xff]  ;;  %v9077_v0 = vld [vmem:[%s12735_s29 + $0x18] sm:$0xff] }
  0x3a   : > { %2452 = vmatpush.bf16.msra.mxu3 %v9088_v48  ;;  %v1328_v60 = vld [vmem:[%s9726_s24 + $0x43] sm:$0xff]  ;;  %v9085_v1 = vld [vmem:[%s12735_s29 + $0x58] sm:$0xff]  ;;  %2241 = vmatpush.bf16.msra.mxu0 %v9097_v61  ;;  %v9096_v3 = vld [vmem:[%s12735_s29 + $0xb0] sm:$0xff] }
  0x3b   : > { %v1249_v2 = vld [vmem:[%s9726_s24 + $0x4a] sm:$0xff]  ;;  %2279 = vmatpush.bf16.msra.mxu1 %v9105_v62 }
  0x3c   : > { %v9104_v4 = vld [vmem:[%s12735_s29 + $0xf0] sm:$0xff]  ;;  %v7310_v45 = vld [vmem:[%s12737_s18 + $0x3] ss:$8 sm:$0x3] }
  0x3d   : > { %2415 = vmatpush.bf16.msra.mxu2 %v9079_v52  ;;  %v9076_v5 = vld [vmem:[%s12735_s29 + $0x10] sm:$0xff]  ;;  %v1251_v52 = vld [vmem:[%s9726_s24 + $0x5a] sm:$0xff]  ;;  %v9099_v61 = vld [vmem:[%s12735_s29 + $0xc8] sm:$0xff] }
  0x3e   : > { %2453 = vmatpush.bf16.msra.mxu3 %v9087_v53  ;;  %v9084_v8 = vld [vmem:[%s12735_s29 + $0x50] sm:$0xff]  ;;  %2242 = vmatpush.bf16.msra.mxu0 %v9096_v3  ;;  %v9942_v3 = vperm.slane %v7310_v45, 1 }
  0x3f   : > { %2280 = vmatpush.bf16.msra.mxu1 %v9104_v4  ;;  %v1330_v53 = vld [vmem:[%s9726_s24 + $0x53] sm:$0xff] }
  0x40   : > { %800 = vperm.xlu1 %9492, %v782_v10   ;;  %805 = vperm.xlu2 %9493, %v783_v11   ;;  %v1409_v10 = vld [vmem:[%s9726_s24 + $0x4c] sm:$0xff] }
  0x41   : > { %795 = vperm.xlu0 %9491, %v781_v12   ;;  %2416 = vmatpush.bf16.msra.mxu2 %v9078_v55  ;;  %v1090_v11 = vld [vmem:[%s9726_s24 + $0x50] sm:$0xff]  ;;  %v1408_v12 = vld [vmem:[%s9726_s24 + $0x44] sm:$0xff] }
  0x42   : > { %2454 = vmatpush.bf16.msra.mxu3 %v9086_v56  ;;  %v1250_v56 = vld [vmem:[%s9726_s24 + $0x52] sm:$0xff] }
  0x45   : > { %2417 = vmatpush.bf16.msra.mxu2 %v9077_v0 }
  0x46   : > { %2455 = vmatpush.bf16.msra.mxu3 %v9085_v1 }
  0x48   : > { %880 = vperm.xlu1 %9492, %v866_v13   ;;  %885 = vperm.xlu2 %9493, %v867_v14   ;;  %v9095_v13 = vld [vmem:[%s12735_s29 + $0xa8] sm:$0xff] }
  0x49   : > { %875 = vperm.xlu0 %9491, %v865_v15   ;;  %2418 = vmatpush.bf16.msra.mxu2 %v9076_v5  ;;  %v9103_v14 = vld [vmem:[%s12735_s29 + $0xe8] sm:$0xff] }
  0x4a   : > { %2456 = vmatpush.bf16.msra.mxu3 %v9084_v8  ;;  %v9075_v15 = vld [vmem:[%s12735_s29 + $0x8] sm:$0xff]  ;;  %2243 = vmatpush.bf16.msra.mxu0 %v9095_v13  ;;  %v9090_v13 = vld [vmem:[%s12735_s29 + $0x80] sm:$0xff] }
  0x4b   : > { %2281 = vmatpush.bf16.msra.mxu1 %v9103_v14  ;;  %v9098_v14 = vld [vmem:[%s12735_s29 + $0xc0] sm:$0xff] }
  0x4d   : > { %2419 = vmatpush.bf16.msra.mxu2 %v9075_v15 }
  0x50   : > { %960 = vperm.xlu1 %9492, %v950_v16   ;;  %965 = vperm.xlu2 %9493, %v951_v17   ;;  %v9083_v16 = vld [vmem:[%s12735_s29 + $0x48] sm:$0xff] }
  0x51   : > { %890 = vperm.xlu0 %9491, %v868_v18   ;;  %2457 = vmatpush.bf16.msra.mxu3 %v9083_v16 }
  0x58   : > { %975 = vperm.xlu1 %9492, %v953_v19   ;;  %640 = vperm.xlu2 %9493, %v614_v20   ;;  %v9094_v19 = vld [vmem:[%s12735_s29 + $0xa0] sm:$0xff] }
  0x59   : > { %970 = vperm.xlu0 %9491, %v952_v21   ;;  %v9102_v20 = vld [vmem:[%s12735_s29 + $0xe0] sm:$0xff]  ;;  %2244 = vmatpush.bf16.msra.mxu0 %v9094_v19 }
  0x5a   : > { %2282 = vmatpush.bf16.msra.mxu1 %v9102_v20 }
  0x60   : > { %725 = vperm.xlu1 %9492, %v699_v22   ;;  %730 = vperm.xlu2 %9493, %v700_v23   ;;  %v9074_v22 = vld [vmem:[%s12735_s29] sm:$0xff] }
  0x61   : > { %645 = vperm.xlu0 %9491, %v615_v24   ;;  %v9082_v23 = vld [vmem:[%s12735_s29 + $0x40] sm:$0xff]  ;;  %v1170_v24 = vld [vmem:[%s9726_s24 + $0x51] sm:$0xff]  ;;  %2420 = vmatpush.bf16.msra.mxu2 %v9074_v22 }
  0x62   : > { %2458 = vmatpush.bf16.msra.mxu3 %v9082_v23 }
  0x68   : > { %815 = vperm.xlu1 %9492, %v785_v25   ;;  %895 = vperm.xlu2 %9493, %v869_v26   ;;  %v1171_v25 = vld [vmem:[%s9726_s24 + $0x59] sm:$0xff] }
  0x69   : > { %810 = vperm.xlu0 %9491, %v784_v27   ;;  %v1091_v26 = vld [vmem:[%s9726_s24 + $0x58] sm:$0xff] }
  0x6a   : > { %v9093_v27 = vld [vmem:[%s12735_s29 + $0x98] sm:$0xff] }
  0x6b   : > { %2245 = vmatpush.bf16.msra.mxu0 %v9093_v27 }
  0x70   : > { %980 = vperm.xlu1 %9492, %v954_v28   ;;  %985 = vperm.xlu2 %9493, %v955_v29   ;;  %v9101_v28 = vld [vmem:[%s12735_s29 + $0xd8] sm:$0xff]  ;;  %v600_v29 = vld [vmem:[%s12736_s0] ss:$8 sm:$0x3]  ;;  %s12847_s0 = sld [smem:[#allocation51_spill]] }
  0x71   : > { %900 = vperm.xlu0 %9491, %v870_v30   ;;  %v7308_v30 = vld [vmem:[%s12737_s18 + $0x1] ss:$8 sm:$0x3]  ;;  %2283 = vmatpush.bf16.msra.mxu1 %v9101_v28 }
  0x78   : > { %655 = vperm.xlu1 %9492, %v617_v31   ;;  %735 = vperm.xlu2 %9493, %v701_v32   ;;  %v7309_v31 = vld [vmem:[%s12737_s18 + $0x2] ss:$8 sm:$0x3]  ;;  %v9889_v32 = vperm.slane %v600_v29, 0 }
  0x79   : > { %650 = vperm.xlu0 %9491, %v616_v33   ;;  %v9891_v33 = vperm.slane %v7308_v30, 0  ;;  %v9909_v44 = vperm.slane %v7309_v31, 1 }
  0x80   : > { %820 = vperm.xlu1 %9492, %v786_v34   ;;  %825 = vperm.xlu2 %9493, %v787_v35  }
  0x81   : > { %740 = vperm.xlu0 %9491, %v702_v36   ;;  %v9897_v36 = vperm.slane %v600_v29, 1 }
  0x82   : > { %v9764_v37 = vpop.permute.xlu2 %630 }
  0x88   : > { %910 = vperm.xlu1 %9492, %v872_v38   ;;  %990 = vperm.xlu2 %9493, %v956_v39   ;;  %v9899_v38 = vperm.slane %v7308_v30, 1 }
  0x89   : > { %905 = vperm.xlu0 %9491, %v871_v40   ;;  %v9092_v40 = vld [vmem:[%s12735_s29 + $0x90] sm:$0xff] }
  0x8a   : > { %v9769_v41 = vpop.permute.xlu2 %635  ;;  %2246 = vmatpush.bf16.msra.mxu0 %v9092_v40  ;;  %v668_v40 = vmul.f32 %v9897_v36, %v9764_v37 }
  0x90   : > { %1098 = vperm.xlu1 %9492, %v1088_v42   ;;  %1103 = vperm.xlu2 %9493, %v1089_v43   ;;  %v9100_v42 = vld [vmem:[%s12735_s29 + $0xd0] sm:$0xff]  ;;  %v9907_v43 = vperm.slane %v7309_v31, 0 }
  0x91   : > { %995 = vperm.xlu0 %9491, %v957_v46   ;;  %2284 = vmatpush.bf16.msra.mxu1 %v9100_v42  ;;  %v1410_v31 = vld [vmem:[%s9726_s24 + $0x54] sm:$0xff] }
  0x92   : > { %v9786_v49 = vpop.permute.xlu2 %790 }
  0x93   : > { %v834_v23 = vmul.f32 %v9909_v44, %v9786_v49 }
  0x95   : > { %2285 = vmatpush.bf16.msra.mxu1 %v9099_v61 }
  0x98   : > { %1183 = vperm.xlu1 %9492, %v1169_v50   ;;  %1258 = vperm.xlu2 %9493, %v1248_v51   ;;  %v7311_v51 = vld [vmem:[%s12737_s18 + $0x4] ss:$8 sm:$0x3] }
  0x99   : > { %1178 = vperm.xlu0 %9491, %v1168_v54   ;;  %v9946_v8 = vperm.slane %v7311_v51, 1  ;;  %2286 = vmatpush.bf16.msra.mxu1 %v9098_v14  ;;  %v1172_v14 = vld [vmem:[%s9726_s24 + $0x61] sm:$0xff] }
  0x9a   : > { %v9803_v57 = vpop.permute.xlu1 %705  ;;  %v9805_v58 = vpop.permute.xlu2 %805 }
  0x9b   : > { %v9807_v59 = vpop.permute.xlu0 %620  ;;  %v748_v54 = vmul.f32 %v9891_v33, %v9803_v57  ;;  %v749_v0 = vmul.f32 %v9899_v38, %v9803_v57  ;;  %v609_v57 = vld [vmem:[%s12738_s27] sm:$0x3]  ;;  %s7236_s27 = scalar_lea.sflag [#allocation10], %s593_s28 }
  0x9c   : > { %v663_v55 = vmul.f32 %v9889_v32, %v9807_v59  ;;  %v664_v1 = vmul.f32 %v9897_v36, %v9807_v59  ;;  %v667_v59 = vmul.f32 %v9889_v32, %v9764_v37 }
  0xa0   : > { %1338 = vperm.xlu1 %9492, %v1328_v60   ;;  %1343 = vperm.xlu2 %9493, %v1329_v63   ;;  %v9091_v60 = vld [vmem:[%s12735_s29 + $0x88] sm:$0xff] }
  0xa1   : > { %1263 = vperm.xlu0 %9491, %v1249_v2   ;;  %v9940_v2 = vperm.slane %v7310_v45, 0  ;;  %2247 = vmatpush.bf16.msra.mxu0 %v9091_v60 }
  0xa2   : > { %v711_v6 = vpop.permute.xlu1 %710  ;;  %v9833_v7 = vpop.permute.xlu2 %885 }
  0xa3   : > { %v626_v9 = vpop.permute.xlu0 %625  ;;  %v750_v46 = vmul.f32 %v9891_v33, %v711_v6  ;;  %v751_v47 = vmul.f32 %v9899_v38, %v711_v6  ;;  %v9944_v6 = vperm.slane %v7311_v51, 0 }
  0xa4   : > { %v665_v48 = vmul.f32 %v9889_v32, %v626_v9  ;;  %v666_v50 = vmul.f32 %v9897_v36, %v626_v9  ;;  %v833_v9 = vmul.f32 %v9907_v43, %v9786_v49  ;;  %v669_v49 = vmul.f32 %v9889_v32, %v9769_v41 }
  0xa5   : > { %2248 = vmatpush.bf16.msra.mxu0 %v9090_v13 }
  0xa6   : > { %v766_v4 = vadd.f32 %v750_v46, %v665_v48  ;;  %v767_v5 = vadd.f32 %v751_v47, %v666_v50  ;;  %v1331_v46 = vld [vmem:[%s9726_s24 + $0x5b] sm:$0xff] }
  0xa8   : > { %1423 = vperm.xlu1 %9492, %v1409_v10   ;;  %1108 = vperm.xlu2 %9493, %v1090_v11   ;;  %v764_v10 = vadd.f32 %v748_v54, %v663_v55 }
  0xa9   : > { %1418 = vperm.xlu0 %9491, %v1408_v12  }
  0xaa   : > { %v9853_v17 = vpop.permute.xlu1 %720  ;;  %v9855_v18 = vpop.permute.xlu2 %965  ;;  %v849_v50 = vadd.f32 %v833_v9, %v764_v10 }
  0xab   : > { %v9863_v21 = vpop.permute.xlu0 %715  ;;  %v1005_v27 = vmul.f32 %v9944_v6, %v9855_v18  ;;  %v1006_v28 = vmul.f32 %v9946_v8, %v9855_v18  ;;  %v670_v18 = vmul.f32 %v9897_v36, %v9769_v41  ;;  %v755_v54 = vmul.f32 %v9899_v38, %v9853_v17 }
  0xac   : > { %v752_v51 = vmul.f32 %v9891_v33, %v9863_v21  ;;  %v753_v37 = vmul.f32 %v9899_v38, %v9863_v21 }
  0xad   : > { %v771_v10 = vadd.f32 %v755_v54, %v670_v18 }
  0xae   : > { %v769_v9 = vadd.f32 %v753_v37, %v668_v40 }
  0xb0   : > { %1188 = vperm.xlu1 %9492, %v1170_v24   ;;  %1193 = vperm.xlu2 %9493, %v1171_v25   ;;  %v765_v24 = vadd.f32 %v749_v0, %v664_v1  ;;  %v9967_v25 = vperm.slane %v609_v57, 0 }
  0xb1   : > { %1113 = vperm.xlu0 %9491, %v1091_v26   ;;  %v9969_v26 = vperm.slane %v609_v57, 1  ;;  %v768_v57 = vadd.f32 %v752_v51, %v667_v59 }
  0xb2   : > { %v9893_v34 = vpop.permute.xlu1 %800  ;;  %v9895_v35 = vpop.permute.xlu2 %640 }
  0xb3   : > { %v796_v39 = vpop.permute.xlu0 %795  ;;  %v838_v21 = vmul.f32 %v9909_v44, %v9893_v34 }
  0xb4   : > { %v835_v62 = vmul.f32 %v9907_v43, %v796_v39  ;;  %v836_v63 = vmul.f32 %v9909_v44, %v796_v39  ;;  %v1411_v39 = vld [vmem:[%s9726_s24 + $0x5c] sm:$0xff] }
  0xb6   : > { %v851_v15 = vadd.f32 %v835_v62, %v766_v4  ;;  %v852_v16 = vadd.f32 %v836_v63, %v767_v5 }
  0xb8   : > { %1273 = vperm.xlu1 %9492, %v1251_v52   ;;  %1348 = vperm.xlu2 %9493, %v1330_v53   ;;  %v850_v52 = vadd.f32 %v834_v23, %v765_v24  ;;  %v754_v53 = vmul.f32 %v9891_v33, %v9853_v17  ;;  %v1092_v23 = vld [vmem:[%s9726_s24 + $0x60] sm:$0xff] }
  0xb9   : > { %1268 = vperm.xlu0 %9491, %v1250_v56   ;;  %v837_v56 = vmul.f32 %v9907_v43, %v9893_v34 }
  0xba   : > { %v881_v11 = vpop.permute.xlu1 %880  ;;  %v9955_v12 = vpop.permute.xlu2 %730  ;;  %v770_v34 = vadd.f32 %v754_v53, %v669_v49 }
  0xbb   : > { %v920_v19 = vmul.f32 %v9940_v2, %v881_v11  ;;  %v921_v20 = vmul.f32 %v9942_v3, %v881_v11  ;;  %v876_v22 = vpop.permute.xlu0 %875 }
  0xbc   : > { %v918_v42 = vmul.f32 %v9940_v2, %v876_v22  ;;  %v919_v45 = vmul.f32 %v9942_v3, %v876_v22  ;;  %v854_v22 = vadd.f32 %v838_v21, %v769_v9 }
  0xbd   : > { %v936_v29 = vadd.f32 %v920_v19, %v851_v15  ;;  %v937_v30 = vadd.f32 %v921_v20, %v852_v16  ;;  %v1093_v15 = vld [vmem:[%s9726_s24 + $0x68] sm:$0xff]  ;;  %v839_v16 = vmul.f32 %v9907_v43, %v9805_v58  ;;  %v840_v19 = vmul.f32 %v9909_v44, %v9805_v58 }
  0xbe   : > { %v934_v60 = vadd.f32 %v918_v42, %v849_v50  ;;  %v935_v61 = vadd.f32 %v919_v45, %v850_v52  ;;  %v853_v20 = vadd.f32 %v837_v56, %v768_v57  ;;  %v1174_v56 = vld [vmem:[%s9726_s24 + $0x71] sm:$0xff] }
  0xbf   : > { %v1021_v47 = vadd.f32 %v1005_v27, %v936_v29  ;;  %v1022_v48 = vadd.f32 %v1006_v28, %v937_v30  ;;  %v922_v29 = vmul.f32 %v9940_v2, %v9833_v7  ;;  %v923_v30 = vmul.f32 %v9942_v3, %v9833_v7 }
  0xc0   : > { %1428 = vperm.xlu1 %9492, %v1410_v31   ;;  %1433 = vperm.xlu2 %9493, %v1411_v39   ;;  %v855_v39 = vadd.f32 %v839_v16, %v770_v34  ;;  %v856_v40 = vadd.f32 %v840_v19, %v771_v10  ;;  %v671_v34 = vmul.f32 %v9889_v32, %v9895_v35 }
  0xc1   : > { %v1042_v41 = vadd.f32 %v9967_v25, %v1021_v47  ;;  %v1043_v55 = vadd.f32 %v9969_v26, %v1022_v48  ;;  %1353 = vperm.xlu0 %9491, %v1331_v46   ;;  %v938_v45 = vadd.f32 %v922_v29, %v853_v20  ;;  %v939_v46 = vadd.f32 %v923_v30, %v854_v22  ;;  %v1253_v30 = vld [vmem:[%s9726_s24 + $0x6a] sm:$0xff] }
  0xc2   : > { %v961_v62 = vpop.permute.xlu1 %960  ;;  %v10000_v63 = vpop.permute.xlu2 %895  ;;  %v672_v16 = vmul.f32 %v9897_v36, %v9895_v35  ;;  %v758_v19 = vmul.f32 %v9891_v33, %v9955_v12 }
  0xc3   : > { %v10002_v0 = vmax.f32 %v1042_v41, 0.0  ;;  %v10004_v17 = vmax.f32 %v1043_v55, 0.0  ;;  %v1003_v1 = vmul.f32 %v9944_v6, %v961_v62  ;;  %v1004_v4 = vmul.f32 %v9946_v8, %v961_v62  ;;  %v891_v5 = vpop.permute.xlu0 %890  ;;  %v1173_v55 = vld [vmem:[%s9726_s24 + $0x69] sm:$0xff] }
  0xc4   : > { %v924_v27 = vmul.f32 %v9940_v2, %v891_v5  ;;  %v925_v28 = vmul.f32 %v9942_v3, %v891_v5  ;;  %v10055_v35 = vmul.f32 %v9940_v2, %v10000_v63  ;;  %v10059_v29 = vmul.f32 %v9942_v3, %v10000_v63 }
  0xc5   : > { %v1019_v11 = vadd.f32 %v1003_v1, %v934_v60  ;;  %v1020_v13 = vadd.f32 %v1004_v4, %v935_v61  ;;  %v1094_v61 = vld [vmem:[%s9726_s24 + $0x70] sm:$0xff] }
  0xc6   : > { %v940_v18 = vadd.f32 %v924_v27, %v855_v39  ;;  %v941_v47 = vadd.f32 %v925_v28, %v856_v40 }
  0xc7   : > { %v1040_v24 = vadd.f32 %v9967_v25, %v1019_v11  ;;  %v1041_v59 = vadd.f32 %v9969_v26, %v1020_v13 }
  0xc8   : > { %1198 = vperm.xlu1 %9492, %v1172_v14   ;;  %1123 = vperm.xlu2 %9493, %v1093_v15  }
  0xc9   : > { %v1056_v58 = vmax.f32 %v1040_v24, 0.0  ;;  %v1057_v31 = vmax.f32 %v1041_v59, 0.0  ;;  %1118 = vperm.xlu0 %9491, %v1092_v23   ;;  %v759_v59 = vmul.f32 %v9899_v38, %v9955_v12 }
  0xca   : > { %v976_v49 = vpop.permute.xlu1 %975  ;;  %v10023_v42 = vpop.permute.xlu2 %985 }
  0xcb   : > { %1072 = vst [vmem:[#allocation2 + $0xb0] sm:$0xff] %v1056_v58  ;;  %v1009_v7 = vmul.f32 %v9944_v6, %v976_v49  ;;  %v1010_v48 = vmul.f32 %v9946_v8, %v976_v49  ;;  %v971_v50 = vpop.permute.xlu0 %970  ;;  %v1953_v52 = vpack.c.bf16 %v10002_v0, %v1056_v58  ;;  %v1954_v53 = vpack.c.bf16 %v10004_v17, %v1057_v31  ;;  %v1254_v58 = vld [vmem:[%s9726_s24 + $0x72] sm:$0xff] }
  0xcc   : > { %1073 = vst [vmem:[#allocation2 + $0xd0] sm:$0xff] %v1057_v31  ;;  %v1007_v51 = vmul.f32 %v9944_v6, %v971_v50  ;;  %v1008_v37 = vmul.f32 %v9946_v8, %v971_v50 }
  0xcd   : > { %v1025_v54 = vadd.f32 %v1009_v7, %v940_v18  ;;  %v1026_v41 = vadd.f32 %v1010_v48, %v941_v47  ;;  %2421 = vmatmul.bf16.vlgmr.msra.gmra.mxu2 %v1953_v52  ;;  %2459 = vmatmul.bf16.vlgmr.msra.gmra.mxu3 %v1954_v53 }
  0xce   : > { %v1023_v21 = vadd.f32 %v1007_v51, %v938_v45  ;;  %v1024_v60 = vadd.f32 %v1008_v37, %v939_v46  ;;  %v1252_v46 = vld [vmem:[%s9726_s24 + $0x62] sm:$0xff] }
  0xcf   : > { %v1046_v62 = vadd.f32 %v9967_v25, %v1025_v54  ;;  %v1047_v1 = vadd.f32 %v9969_v26, %v1026_v41 }
  0xd0   : > { %v1044_v4 = vadd.f32 %v9967_v25, %v1023_v21  ;;  %v1045_v5 = vadd.f32 %v9969_v26, %v1024_v60  ;;  %1203 = vperm.xlu1 %9492, %v1173_v55   ;;  %1208 = vperm.xlu2 %9493, %v1174_v56  }
  0xd1   : > { %v1062_v57 = vmax.f32 %v1046_v62, 0.0  ;;  %v1063_v9 = vmax.f32 %v1047_v1, 0.0  ;;  %1128 = vperm.xlu0 %9491, %v1094_v61  }
  0xd2   : > { %v1060_v10 = vmax.f32 %v1044_v4, 0.0  ;;  %v1061_v11 = vmax.f32 %v1045_v5, 0.0  ;;  %v726_v13 = vpop.permute.xlu1 %725  ;;  %v10040_v14 = vpop.permute.xlu2 %735  ;;  %v1997_v15 = vld [vmem:[#allocation2 + $0xb0] sm:$0xfe] }
  0xd3   : > { %v756_v20 = vmul.f32 %v9891_v33, %v726_v13  ;;  %v757_v22 = vmul.f32 %v9899_v38, %v726_v13  ;;  %v646_v23 = vpop.permute.xlu0 %645  ;;  %v1998_v24 = vld [vmem:[#allocation2 + $0xd0] sm:$0xfe]  ;;  %v2001_v28 = vpack.c.bf16 %v10002_v0, %v1997_v15 }
  0xd4   : > { %v10050_v27 = vpack.c.bf16 %v1062_v57, %v1060_v10  ;;  %v10063_v31 = vpack.c.bf16 %v1063_v9, %v1061_v11  ;;  %v2002_v39 = vpack.c.bf16 %v10004_v17, %v1998_v24  ;;  %v2760_v12 = vld [vmem:[#allocation2 + $0xb0] sm:$0xf8]  ;;  %v673_v49 = vmul.f32 %v9889_v32, %v646_v23 }
  0xd5   : > { %v772_v40 = vadd.f32 %v756_v20, %v671_v34  ;;  %v674_v45 = vmul.f32 %v9897_v36, %v646_v23  ;;  %v2042_v18 = vshll.u32 %v2001_v28, 16  ;;  %v773_v47 = vadd.f32 %v757_v22, %v672_v16  ;;  %v2761_v16 = vld [vmem:[#allocation2 + $0xd0] sm:$0xf8] }
  0xd6   : > { %v2047_v7 = vshll.u32 %v10050_v27, 16  ;;  %v2054_v48 = vshll.u32 %v2002_v39, 16  ;;  %v2059_v63 = vshll.u32 %v10063_v31, 16  ;;  %v2040_v50 = vshrl.u32 %v2001_v28, 16  ;;  %v1333_v28 = vld [vmem:[%s9726_s24 + $0x6b] sm:$0xff] }
  0xd7   : > { %v2044_v51 = vrot.slane %v2042_v18, 1  ;;  %v2063_v37 = vshrl.u32 %v10050_v27, 16  ;;  %v2764_v52 = vpack.c.bf16 %v10002_v0, %v2760_v12  ;;  %v2052_v54 = vshrl.u32 %v2002_v39, 16 }
  0xd8   : > { %1283 = vperm.xlu1 %9492, %v1253_v30   ;;  %1288 = vperm.xlu2 %9493, %v1254_v58   ;;  %v10073_v53 = vrot.slane %v2047_v7, 1  ;;  %v2056_v41 = vrot.slane %v2054_v48, 1  ;;  %v2071_v55 = vshrl.u32 %v10063_v31, 16  ;;  %v10078_v61 = vrot.slane %v2059_v63, 1  ;;  %v1334_v30 = vld [vmem:[%s9726_s24 + $0x73] sm:$0xff] }
  0xd9   : > { %1278 = vperm.xlu0 %9491, %v1252_v46   ;;  %v2045_v60 = vor.u32 %v2044_v51, %v2040_v50  ;;  %v2803_v62 = vshrl.u32 %v2764_v52, 16  ;;  %v2811_v1 = vrot.slane %v2047_v7, 2  ;;  %v2806_v9 = vshll.u32 %v2764_v52, 16  ;;  %v2489_v58 = vld [vmem:[#allocation2 + $0xb0] sm:$0xfc]  ;;  %v1332_v46 = vld [vmem:[%s9726_s24 + $0x63] sm:$0xff] }
  0xda   : > { %v816_v56 = vpop.permute.xlu1 %815  ;;  %v10076_v21 = vpop.permute.xlu2 %825  ;;  %v2810_v34 = vrot.slane %v2063_v37, 1  ;;  %v2057_v15 = vor.u32 %v2056_v41, %v2052_v54  ;;  %v10090_v20 = vmul.f32 %v9944_v6, %v10023_v42  ;;  %v10094_v22 = vmul.f32 %v9946_v8, %v10023_v42 }
  0xdb   : > { %v843_v4 = vmul.f32 %v9907_v43, %v816_v56  ;;  %v844_v5 = vmul.f32 %v9909_v44, %v816_v56  ;;  %v811_v57 = vpop.permute.xlu0 %810  ;;  %v2050_v13 = vsel %vm2038_vm0, %v2045_v60, %v10073_v53  ;;  %v774_v23 = vadd.f32 %v758_v19, %v673_v49 }
  0xdc   : > { %v841_v10 = vmul.f32 %v9907_v43, %v811_v57  ;;  %v842_v11 = vmul.f32 %v9909_v44, %v811_v57  ;;  %v775_v24 = vadd.f32 %v759_v59, %v674_v45  ;;  %2249 = vmatmul.bf16.vlgmr.msra.gmra.mxu0 %v2050_v13  ;;  %v2062_v18 = vsel %vm2038_vm0, %v2057_v15, %v10078_v61 }
  0xdd   : > { %2426 = vmatmul.bf16.gmra.mxu2 %v10050_v27  ;;  %2464 = vmatmul.bf16.gmra.mxu3 %v10063_v31  ;;  %v2805_v7 = vrot.slane %v2803_v62, 1  ;;  %v2808_v42 = vrot.slane %v2806_v9, 2  ;;  %v10103_v48 = vor.u32 %v2811_v1, %v2810_v34  ;;  %v2765_v19 = vpack.c.bf16 %v10004_v17, %v2761_v16 }
  0xde   : > { %v857_v39 = vadd.f32 %v841_v10, %v772_v40  ;;  %v858_v12 = vadd.f32 %v842_v11, %v773_v47  ;;  %2287 = vmatmul.bf16.vlgmr.msra.gmra.mxu1 %v2062_v18  ;;  %v2822_v59 = vrot.slane %v2071_v55, 1  ;;  %v2490_v40 = vld [vmem:[#allocation2 + $0xd0] sm:$0xfc]  ;;  %v859_v49 = vadd.f32 %v843_v4, %v774_v23 }
  0xdf   : > { %v860_v45 = vadd.f32 %v844_v5, %v775_v24  ;;  %v2823_v47 = vrot.slane %v2059_v63, 2  ;;  %v2493_v50 = vpack.c.bf16 %v10002_v0, %v2489_v58  ;;  %v2809_v51 = vor.u32 %v2808_v42, %v2805_v7  ;;  %v1413_v24 = vld [vmem:[%s9726_s24 + $0x6c] sm:$0xff]  ;;  %v3064_v42 = vld [vmem:[#allocation2 + $0xd0] sm:$0xf0] }
  0xe0   : > { %1363 = vperm.xlu1 %9492, %v1333_v28   ;;  %1368 = vperm.xlu2 %9493, %v1334_v30   ;;  %v2815_v52 = vshrl.u32 %v2765_v19, 16  ;;  %v2818_v54 = vshll.u32 %v2765_v19, 16  ;;  %v2544_v41 = vrot.slane %v10050_v27, 1  ;;  %v942_v60 = vadd.f32 %v10055_v35, %v857_v39  ;;  %v3063_v35 = vld [vmem:[#allocation2 + $0xb0] sm:$0xf0] }
  0xe1   : > { %1358 = vperm.xlu0 %9491, %v1332_v46   ;;  %v10113_v1 = vor.u32 %v2823_v47, %v2822_v59  ;;  %v2543_v4 = vrot.slane %v2493_v50, 1  ;;  %v2494_v63 = vpack.c.bf16 %v10004_v17, %v2490_v40  ;;  %v943_v5 = vadd.f32 %v10059_v29, %v858_v12  ;;  %v1414_v28 = vld [vmem:[%s9726_s24 + $0x74] sm:$0xff]  ;;  %v1412_v46 = vld [vmem:[%s9726_s24 + $0x64] sm:$0xff] }
  0xe2   : > { %v981_v56 = vpop.permute.xlu1 %980  ;;  %v10111_v62 = vpop.permute.xlu2 %990  ;;  %v2547_v10 = vrot.slane %v10063_v31, 1  ;;  %v10124_v15 = vsel %vm2801_vm1, %v2809_v51, %v10103_v48  ;;  %v2817_v16 = vrot.slane %v2815_v52, 1  ;;  %v2820_v30 = vrot.slane %v2818_v54, 2 }
  0xe3   : > { %v1011_v57 = vmul.f32 %v9944_v6, %v981_v56  ;;  %v1012_v9 = vmul.f32 %v9946_v8, %v981_v56  ;;  %v901_v34 = vpop.permute.xlu0 %900  ;;  %v10131_v58 = vsel %vm2542_vm2, %v2543_v4, %v2544_v41  ;;  %v2546_v18 = vrot.slane %v2494_v63, 1 }
  0xe4   : > { %v928_v11 = vmul.f32 %v9940_v2, %v901_v34  ;;  %v929_v13 = vmul.f32 %v9942_v3, %v901_v34  ;;  %v3067_v7 = vpack.c.bf16 %v10002_v0, %v3063_v35  ;;  %v2821_v40 = vor.u32 %v2820_v30, %v2817_v16  ;;  %v1175_v35 = vld [vmem:[%s9726_s24 + $0x79] sm:$0xff] }
  0xe5   : > { %v1027_v23 = vadd.f32 %v1011_v57, %v942_v60  ;;  %v1028_v29 = vadd.f32 %v1012_v9, %v943_v5  ;;  %v3110_v47 = vrot.slane %v10050_v27, 2  ;;  %v3113_v57 = vrot.slane %v10063_v31, 2  ;;  %v9121_v30 = vld [vmem:[%s12735_s29 + $0x178] sm:$0xff] }
  0xe6   : > { %v944_v39 = vadd.f32 %v928_v11, %v859_v49  ;;  %v945_v12 = vadd.f32 %v929_v13, %v860_v45  ;;  %v10143_v49 = vsel %vm2542_vm2, %v2546_v18, %v2547_v10  ;;  %v3109_v0 = vrot.slane %v3067_v7, 2  ;;  %v9129_v11 = vld [vmem:[%s12735_s29 + $0x1b8] sm:$0xff]  ;;  %2711 = vmatpush.bf16.msrb.mxu1 %v9121_v30  ;;  %v9128_v30 = vld [vmem:[%s12735_s29 + $0x1b0] sm:$0xff] }
  0xe7   : > { %v1048_v19 = vadd.f32 %v9967_v25, %v1027_v23  ;;  %v1049_v59 = vadd.f32 %v9969_v26, %v1028_v29  ;;  %v10147_v54 = vsel %vm2801_vm1, %v2821_v40, %v10113_v1  ;;  %v9137_v13 = vld [vmem:[%s12735_s29 + $0x1f8] sm:$0xff]  ;;  %2976 = vmatpush.bf16.msrb.mxu2 %v9129_v11 }
  0xe8   : > { %v1029_v50 = vadd.f32 %v10090_v20, %v944_v39  ;;  %v1030_v51 = vadd.f32 %v10094_v22, %v945_v12  ;;  %1443 = vperm.xlu1 %9492, %v1413_v24   ;;  %1448 = vperm.xlu2 %9493, %v1414_v28   ;;  %v3068_v20 = vpack.c.bf16 %v10004_v17, %v3064_v42  ;;  %v1536_v17 = vld [vmem:[%s9726_s24 + $0x80] sm:$0xff]  ;;  %v1095_v23 = vld [vmem:[%s9726_s24 + $0x78] sm:$0xff] }
  0xe9   : > { %v1064_v45 = vmax.f32 %v1048_v19, 0.0  ;;  %v1065_v52 = vmax.f32 %v1049_v59, 0.0  ;;  %1438 = vperm.xlu0 %9491, %v1412_v46   ;;  %v10159_v63 = vsel %vm3108_vm3, %v3109_v0, %v3110_v47  ;;  %v9113_v28 = vld [vmem:[%s12735_s29 + $0x138] sm:$0xff]  ;;  %3014 = vmatpush.bf16.msrb.mxu3 %v9137_v13  ;;  %v2065_v42 = vor.u32 %v2063_v37, %v10073_v53 }
  0xea   : > { %v1050_v22 = vadd.f32 %v9967_v25, %v1029_v50  ;;  %v1051_v56 = vadd.f32 %v9969_v26, %v1030_v51  ;;  %v10152_v60 = vpop.permute.xlu1 %655  ;;  %v10154_v4 = vpop.permute.xlu2 %1103  ;;  %12739 = vst [vmem:[#allocation19_spill] sm:$0xff] %v10159_v63  ;;  %v3112_v16 = vrot.slane %v3068_v20, 2  ;;  %v2073_v19 = vor.u32 %v2071_v55, %v10078_v61  ;;  %2673 = vmatpush.bf16.msrb.mxu0 %v9113_v28 }
  0xeb   : > { %v651_v5 = vpop.permute.xlu0 %650  ;;  %v760_v20 = vmul.f32 %v9891_v33, %v10040_v14  ;;  %2977 = vmatpush.bf16.msrb.mxu2 %v9128_v30  ;;  %v1746_v30 = vld [vmem:[%s9726_s24 + $0x83] sm:$0xff] }
  0xec   : > { %v1066_v9 = vmax.f32 %v1050_v22, 0.0  ;;  %v1067_v34 = vmax.f32 %v1051_v56, 0.0  ;;  %v10184_v39 = vsel %vm3108_vm3, %v3112_v16, %v3113_v57  ;;  %v675_v7 = vmul.f32 %v9889_v32, %v651_v5 }
  0xed   : > { %12740 = vst [vmem:[#allocation20_spill] sm:$0xff] %v10184_v39  ;;  %v676_v16 = vmul.f32 %v9897_v36, %v651_v5  ;;  %v9120_v5 = vld [vmem:[%s12735_s29 + $0x170] sm:$0xff]  ;;  %v1680_v39 = vld [vmem:[%s9726_s24 + $0xa2] sm:$0xff] }
  0xee   : > { %v10171_v29 = vpack.c.bf16 %v1066_v9, %v1064_v45  ;;  %v10173_v24 = vpack.c.bf16 %v1067_v34, %v1065_v52  ;;  %v761_v9 = vmul.f32 %v9899_v38, %v10040_v14  ;;  %v1255_v34 = vld [vmem:[%s9726_s24 + $0x7a] sm:$0xff]  ;;  %v9136_v14 = vld [vmem:[%s12735_s29 + $0x1f0] sm:$0xff]  ;;  %2712 = vmatpush.bf16.msrb.mxu1 %v9120_v5 }
  0xef   : > { %3015 = vmatpush.bf16.msrb.mxu3 %v9136_v14  ;;  %v1415_v14 = vld [vmem:[%s9726_s24 + $0x7c] sm:$0xff] }
  0xf0   : > { %1213 = vperm.xlu1 %9492, %v1175_v35   ;;  %1545 = vperm.xlu2 %9493, %v1536_v17   ;;  %v2067_v12 = vshll.u32 %v10171_v29, 16  ;;  %v2075_v46 = vshll.u32 %v10173_v24, 16  ;;  %v2079_v18 = vshrl.u32 %v10171_v29, 16  ;;  %v2087_v59 = vshrl.u32 %v10173_v24, 16  ;;  %v1676_v35 = vld [vmem:[%s9726_s24 + $0x82] sm:$0xff] }
  0xf1   : > { %1133 = vperm.xlu0 %9491, %v1095_v23   ;;  %2431 = vmatmul.bf16.gmra.mxu2 %v10171_v29  ;;  %v12704_v61 = vrot.slane %v10171_v29, 1  ;;  %v12703_v45 = vrot.slane %v10173_v24, 1  ;;  %v12700_v52 = vrot.slane %v10171_v29, 2  ;;  %v1606_v17 = vld [vmem:[%s9726_s24 + $0x81] sm:$0xff]  ;;  %v12699_v13 = vrot.slane %v10173_v24, 2 }
  0xf2   : > { %v821_v40 = vpop.permute.xlu1 %820  ;;  %v10198_v50 = vpop.permute.xlu2 %1258  ;;  %2469 = vmatmul.bf16.gmra.mxu3 %v10173_v24  ;;  %v10201_v51 = vrot.slane %v2067_v12, 1  ;;  %v10203_v0 = vrot.slane %v2075_v46, 1  ;;  %v2826_v37 = vrot.slane %v2079_v18, 1  ;;  %v2827_v53 = vrot.slane %v2067_v12, 2  ;;  %v9112_v12 = vld [vmem:[%s12735_s29 + $0x130] sm:$0xff]  ;;  %v1335_v5 = vld [vmem:[%s9726_s24 + $0x7b] sm:$0xff] }
  0xf3   : > { %v741_v55 = vpop.permute.xlu0 %740  ;;  %v2830_v11 = vrot.slane %v2087_v59, 1  ;;  %v776_v23 = vadd.f32 %v760_v20, %v675_v7  ;;  %v845_v28 = vmul.f32 %v9907_v43, %v821_v40  ;;  %v2831_v7 = vrot.slane %v2075_v46, 2  ;;  %2674 = vmatpush.bf16.msrb.mxu0 %v9112_v12 }
  0xf4   : > { %v2070_v22 = vsel %vm2038_vm0, %v2065_v42, %v10201_v51  ;;  %v2078_v56 = vsel %vm2038_vm0, %v2073_v19, %v10203_v0  ;;  %v10235_v42 = vor.u32 %v2827_v53, %v2826_v37  ;;  %v10245_v19 = vsel %vm2542_vm2, %v2544_v41, %v12704_v61 }
  0xf5   : > { %2254 = vmatmul.bf16.gmra.mxu0 %v2070_v22  ;;  %2292 = vmatmul.bf16.gmra.mxu1 %v2078_v56  ;;  %v10252_v20 = vsel %vm2542_vm2, %v2547_v10, %v12703_v45  ;;  %v10259_v46 = vsel %vm3108_vm3, %v3110_v47, %v12700_v52  ;;  %v846_v37 = vmul.f32 %v9909_v44, %v821_v40 }
  0xf6   : > { %12741 = vst [vmem:[#allocation21_spill] sm:$0xff] %v10252_v20  ;;  %v762_v53 = vmul.f32 %v9891_v33, %v741_v55  ;;  %v10266_v41 = vsel %vm2801_vm1, %v10103_v48, %v10235_v42  ;;  %v763_v10 = vmul.f32 %v9899_v38, %v741_v55  ;;  %v10269_v22 = vor.u32 %v2831_v7, %v2830_v11 }
  0xf7   : > { %12742 = vst [vmem:[#allocation22_spill] sm:$0xff] %v10259_v46  ;;  %v10276_v27 = vsel %vm3108_vm3, %v3113_v57, %v12699_v13  ;;  %v777_v47 = vadd.f32 %v761_v9, %v676_v16  ;;  %v677_v48 = vmul.f32 %v9889_v32, %v10152_v60  ;;  %v678_v55 = vmul.f32 %v9897_v36, %v10152_v60 }
  0xf8   : > { %1293 = vperm.xlu1 %9492, %v1255_v34   ;;  %1685 = vperm.xlu2 %9493, %v1676_v35   ;;  %12743 = vst [vmem:[#allocation23_spill] sm:$0xff] %v10276_v27  ;;  %v861_v34 = vadd.f32 %v845_v28, %v776_v23  ;;  %v1015_v60 = vmul.f32 %v9944_v6, %v10111_v62  ;;  %v1748_v27 = vld [vmem:[%s9726_s24 + $0x93] sm:$0xff] }
  0xf9   : > { %1615 = vperm.xlu0 %9491, %v1606_v17   ;;  %v862_v57 = vadd.f32 %v846_v37, %v777_v47  ;;  %v10289_v17 = vsel %vm2801_vm1, %v10113_v1, %v10269_v22  ;;  %v778_v11 = vadd.f32 %v762_v53, %v677_v48  ;;  %v779_v16 = vadd.f32 %v763_v10, %v678_v55 }
  0xfa   : > { %v911_v40 = vpop.permute.xlu1 %910  ;;  %v10278_v56 = vpop.permute.xlu2 %1343  ;;  %v1016_v23 = vmul.f32 %v9946_v8, %v10111_v62  ;;  %v847_v7 = vmul.f32 %v9907_v43, %v10076_v21  ;;  %v848_v1 = vmul.f32 %v9909_v44, %v10076_v21 }
  0xfb   : > { %v906_v31 = vpop.permute.xlu0 %905  ;;  %v932_v37 = vmul.f32 %v9940_v2, %v911_v40  ;;  %v933_v53 = vmul.f32 %v9942_v3, %v911_v40 }
  0xfc   : > { %v930_v9 = vmul.f32 %v9940_v2, %v906_v31  ;;  %v931_v35 = vmul.f32 %v9942_v3, %v906_v31  ;;  %v863_v62 = vadd.f32 %v847_v7, %v778_v11  ;;  %v864_v48 = vadd.f32 %v848_v1, %v779_v16  ;;  %v1538_v16 = vld [vmem:[%s9726_s24 + $0x90] sm:$0xff]  ;;  %v9135_v7 = vld [vmem:[%s12735_s29 + $0x1e8] sm:$0xff] }
  0xfd   : > { %v9111_v1 = vld [vmem:[%s12735_s29 + $0x128] sm:$0xff]  ;;  %3016 = vmatpush.bf16.msrb.mxu3 %v9135_v7 }
  0xfe   : > { %v946_v28 = vadd.f32 %v930_v9, %v861_v34  ;;  %v947_v12 = vadd.f32 %v931_v35, %v862_v57  ;;  %v948_v57 = vadd.f32 %v932_v37, %v863_v62  ;;  %v949_v40 = vadd.f32 %v933_v53, %v864_v48  ;;  %v9119_v37 = vld [vmem:[%s12735_s29 + $0x168] sm:$0xff]  ;;  %2675 = vmatpush.bf16.msrb.mxu0 %v9111_v1 }
  0xff   : > { %2713 = vmatpush.bf16.msrb.mxu1 %v9119_v37 }
 0x100   : > { %v1031_v10 = vadd.f32 %v1015_v60, %v946_v28  ;;  %v1032_v47 = vadd.f32 %v1016_v23, %v947_v12  ;;  %1755 = vperm.xlu1 %9492, %v1746_v30   ;;  %1453 = vperm.xlu2 %9493, %v1415_v14   ;;  %v1537_v60 = vld [vmem:[%s9726_s24 + $0x88] sm:$0xff] }
 0x101   : > { %1373 = vperm.xlu0 %9491, %v1335_v5   ;;  %v1816_v23 = vld [vmem:[%s9726_s24 + $0x84] sm:$0xff] }
 0x102   : > { %v1052_v55 = vadd.f32 %v9967_v25, %v1031_v10  ;;  %v1053_v34 = vadd.f32 %v9969_v26, %v1032_v47  ;;  %v10306_v31 = vpop.permute.xlu1 %1098  ;;  %v10308_v21 = vpop.permute.xlu2 %1108  ;;  %v9127_v5 = vld [vmem:[%s12735_s29 + $0x1a8] sm:$0xff] }
 0x103   : > { %v996_v9 = vpop.permute.xlu0 %995  ;;  %2978 = vmatpush.bf16.msrb.mxu2 %v9127_v5 }
 0x104   : > { %v1068_v35 = vmax.f32 %v1052_v55, 0.0  ;;  %v1069_v30 = vmax.f32 %v1053_v34, 0.0  ;;  %v1017_v14 = vmul.f32 %v9944_v6, %v996_v9  ;;  %v1018_v11 = vmul.f32 %v9946_v8, %v996_v9 }
 0x105   : > { %v1138_v9 = vmul.f32 %v10154_v4, %v9889_v32 }
 0x106   : > { %v1033_v28 = vadd.f32 %v1017_v14, %v948_v57  ;;  %v1034_v12 = vadd.f32 %v1018_v11, %v949_v40  ;;  %v1139_v14 = vmul.f32 %v10154_v4, %v9897_v36  ;;  %v1608_v11 = vld [vmem:[%s9726_s24 + $0x91] sm:$0xff]  ;;  %v9126_v4 = vld [vmem:[%s12735_s29 + $0x1a0] sm:$0xff] }
 0x107   : > { %2979 = vmatpush.bf16.msrb.mxu2 %v9126_v4 }
 0x108   : > { %v1054_v53 = vadd.f32 %v9967_v25, %v1033_v28  ;;  %v1055_v10 = vadd.f32 %v9969_v26, %v1034_v12  ;;  %1550 = vperm.xlu1 %9492, %v1537_v60   ;;  %1555 = vperm.xlu2 %9493, %v1538_v16   ;;  %v1677_v60 = vld [vmem:[%s9726_s24 + $0x8a] sm:$0xff]  ;;  %v9134_v12 = vld [vmem:[%s12735_s29 + $0x1e0] sm:$0xff] }
 0x109   : > { %1825 = vperm.xlu0 %9491, %v1816_v23   ;;  %v1607_v16 = vld [vmem:[%s9726_s24 + $0x89] sm:$0xff]  ;;  %v2089_v23 = vor.u32 %v2087_v59, %v10203_v0  ;;  %3017 = vmatpush.bf16.msrb.mxu3 %v9134_v12 }
 0x10a   : > { %v1070_v47 = vmax.f32 %v1054_v53, 0.0  ;;  %v1071_v62 = vmax.f32 %v1055_v10, 0.0  ;;  %v1184_v48 = vpop.permute.xlu1 %1183  ;;  %v10329_v55 = vpop.permute.xlu2 %1193  ;;  %v9118_v10 = vld [vmem:[%s12735_s29 + $0x160] sm:$0xff]  ;;  %v1747_v53 = vld [vmem:[%s9726_s24 + $0x8b] sm:$0xff] }
 0x10b   : > { %v1179_v34 = vpop.permute.xlu0 %1178  ;;  %v1219_v5 = vmul.f32 %v1184_v48, %v9899_v38  ;;  %2714 = vmatpush.bf16.msrb.mxu1 %v9118_v10 }
 0x10c   : > { %v10331_v57 = vpack.c.bf16 %v1070_v47, %v1068_v35  ;;  %v10333_v40 = vpack.c.bf16 %v1071_v62, %v1069_v30  ;;  %v2081_v35 = vor.u32 %v2079_v18, %v10201_v51  ;;  %v9110_v18 = vld [vmem:[%s12735_s29 + $0x120] sm:$0xff]  ;;  %v1218_v51 = vmul.f32 %v1184_v48, %v9891_v33 }
 0x10d   : > { %v1216_v7 = vmul.f32 %v1179_v34, %v9891_v33  ;;  %2676 = vmatpush.bf16.msrb.mxu0 %v9110_v18 }
 0x10e   : > { %2436 = vmatmul.bf16.gmra.mxu2 %v10331_v57  ;;  %2474 = vmatmul.bf16.gmra.mxu3 %v10333_v40  ;;  %v2083_v30 = vshll.u32 %v10331_v57, 16  ;;  %v2091_v28 = vshll.u32 %v10333_v40, 16  ;;  %v12702_v59 = vshrl.u32 %v10331_v57, 16  ;;  %v12701_v0 = vshrl.u32 %v10333_v40, 16 }
 0x110   : > { %1625 = vperm.xlu1 %9492, %v1608_v11   ;;  %1690 = vperm.xlu2 %9493, %v1677_v60   ;;  %v10366_v1 = vrot.slane %v2083_v30, 1  ;;  %v10368_v37 = vrot.slane %v2091_v28, 1  ;;  %v2834_v47 = vrot.slane %v12702_v59, 1  ;;  %v2835_v62 = vrot.slane %v2083_v30, 2 }
 0x111   : > { %1620 = vperm.xlu0 %9491, %v1607_v16   ;;  %v2838_v48 = vrot.slane %v12701_v0, 1  ;;  %v2839_v11 = vrot.slane %v2091_v28, 2  ;;  %v1217_v60 = vmul.f32 %v1179_v34, %v9899_v38  ;;  %v1296_v28 = vmul.f32 %v10198_v50, %v9907_v43 }
 0x112   : > { %v1339_v13 = vpop.permute.xlu1 %1338  ;;  %v10379_v52 = vpop.permute.xlu2 %1348  ;;  %v2086_v16 = vsel %vm2038_vm0, %v2081_v35, %v10366_v1  ;;  %v2094_v4 = vsel %vm2038_vm0, %v2089_v23, %v10368_v37  ;;  %v1136_v34 = vmul.f32 %v10306_v31, %v9889_v32  ;;  %v1137_v0 = vmul.f32 %v10306_v31, %v9897_v36 }
 0x113   : > { %v1264_v59 = vpop.permute.xlu0 %1263  ;;  %2259 = vmatmul.bf16.gmra.mxu0 %v2086_v16  ;;  %v1234_v23 = vadd.f32 %v1218_v51, %v1138_v9  ;;  %2297 = vmatmul.bf16.gmra.mxu1 %v2094_v4  ;;  %v10395_v45 = vor.u32 %v2835_v62, %v2834_v47  ;;  %v1235_v30 = vadd.f32 %v1219_v5, %v1139_v14  ;;  %v12744_v31 = vrot.slane %v10331_v57, 1 }
 0x114   : > { %v1298_v12 = vmul.f32 %v1264_v59, %v9907_v43  ;;  %v1299_v18 = vmul.f32 %v1264_v59, %v9909_v44  ;;  %v1232_v61 = vadd.f32 %v1216_v7, %v1136_v34  ;;  %v10399_v46 = vor.u32 %v2839_v11, %v2838_v48  ;;  %v1678_v59 = vld [vmem:[%s9726_s24 + $0x92] sm:$0xff] }
 0x115   : > { %v12745_v16 = vrot.slane %v10171_v29, 1  ;;  %v1233_v51 = vadd.f32 %v1217_v60, %v1137_v0  ;;  %v10412_v14 = vsel %vm2801_vm1, %v10235_v42, %v10395_v45  ;;  %v12747_v5 = vrot.slane %v10333_v40, 1 }
 0x116   : > { %v1314_v35 = vadd.f32 %v1298_v12, %v1234_v23  ;;  %v12748_v7 = vrot.slane %v10173_v24, 1  ;;  %v1315_v47 = vadd.f32 %v1299_v18, %v1235_v30  ;;  %v10424_v62 = vsel %vm2801_vm1, %v10269_v22, %v10399_v46 }
 0x117   : > { %v10406_v9 = vsel %vm2542_vm2, %v12745_v16, %v12744_v31  ;;  %v12750_v0 = vrot.slane %v10331_v57, 2  ;;  %v12751_v48 = vrot.slane %v10171_v29, 2  ;;  %v12709_v11 = vrot.slane %v10333_v40, 2 }
 0x118   : > { %12746 = vst [vmem:[#allocation24_spill] sm:$0xff] %v10406_v9  ;;  %v10419_v10 = vsel %vm2542_vm2, %v12748_v7, %v12747_v5  ;;  %v1297_v60 = vmul.f32 %v10198_v50, %v9909_v44  ;;  %v1376_v4 = vmul.f32 %v1339_v13, %v9940_v2  ;;  %v1377_v30 = vmul.f32 %v1339_v13, %v9942_v3 }
 0x119   : > { %12749 = vst [vmem:[#allocation25_spill] sm:$0xff] %v10419_v10  ;;  %v10431_v42 = vsel %vm3108_vm3, %v12751_v48, %v12750_v0  ;;  %1760 = vperm.xlu1 %9492, %v1747_v53   ;;  %1765 = vperm.xlu2 %9493, %v1748_v27   ;;  %v1378_v22 = vmul.f32 %v10278_v56, %v9940_v2  ;;  %v12753_v34 = vrot.slane %v10173_v24, 2  ;;  %v1539_v0 = vld [vmem:[%s9726_s24 + $0x98] sm:$0xff] }
 0x11a   : > { %12752 = vst [vmem:[#allocation26_spill] sm:$0xff] %v10431_v42  ;;  %v1379_v29 = vmul.f32 %v10278_v56, %v9942_v3  ;;  %1695 = vperm.xlu0 %9491, %v1678_v59   ;;  %v1312_v50 = vadd.f32 %v1296_v28, %v1232_v61  ;;  %v1313_v13 = vadd.f32 %v1297_v60, %v1233_v51  ;;  %v1424_v53 = vpop.permute.xlu1 %1423  ;;  %v10449_v27 = vpop.permute.xlu2 %1433  ;;  %v1818_v51 = vld [vmem:[%s9726_s24 + $0x94] sm:$0xff] }
 0x11b   : > { %v10447_v23 = vsel %vm3108_vm3, %v12753_v34, %v12709_v11  ;;  %v1394_v12 = vadd.f32 %v1378_v22, %v1314_v35  ;;  %v1458_v56 = vmul.f32 %v1424_v53, %v9944_v6  ;;  %v1459_v31 = vmul.f32 %v1424_v53, %v9946_v8  ;;  %v1419_v16 = vpop.permute.xlu0 %1418  ;;  %v1817_v34 = vld [vmem:[%s9726_s24 + $0x8c] sm:$0xff]  ;;  %v9109_v22 = vld [vmem:[%s12735_s29 + $0x118] sm:$0xff] }
 0x11c   : > { %12754 = vst [vmem:[#allocation27_spill] sm:$0xff] %v10447_v23  ;;  %v1395_v18 = vadd.f32 %v1379_v29, %v1315_v47  ;;  %v1392_v59 = vadd.f32 %v1376_v4, %v1312_v50  ;;  %v1393_v24 = vadd.f32 %v1377_v30, %v1313_v13  ;;  %v1456_v5 = vmul.f32 %v1419_v16, %v9944_v6  ;;  %v9125_v4 = vld [vmem:[%s12735_s29 + $0x198] sm:$0xff] }
 0x11d   : > { %v1457_v7 = vmul.f32 %v1419_v16, %v9946_v8  ;;  %v1474_v61 = vadd.f32 %v1458_v56, %v1394_v12  ;;  %v9133_v30 = vld [vmem:[%s12735_s29 + $0x1d8] sm:$0xff]  ;;  %2980 = vmatpush.bf16.msrb.mxu2 %v9125_v4  ;;  %2677 = vmatpush.bf16.msrb.mxu0 %v9109_v22  ;;  %v1540_v4 = vld [vmem:[%s9726_s24 + $0xa0] sm:$0xff] }
 0x11e   : > { %v1475_v28 = vadd.f32 %v1459_v31, %v1395_v18  ;;  %v1472_v48 = vadd.f32 %v1456_v5, %v1392_v59  ;;  %v9117_v12 = vld [vmem:[%s12735_s29 + $0x158] sm:$0xff]  ;;  %3018 = vmatpush.bf16.msrb.mxu3 %v9133_v30 }
 0x11f   : > { %v1473_v60 = vadd.f32 %v1457_v7, %v1393_v24  ;;  %v1490_v35 = vadd.f32 %v1474_v61, %v9967_v25  ;;  %v9124_v7 = vld [vmem:[%s12735_s29 + $0x190] sm:$0xff]  ;;  %2715 = vmatpush.bf16.msrb.mxu1 %v9117_v12  ;;  %v9123_v12 = vld [vmem:[%s12735_s29 + $0x188] sm:$0xff] }
 0x120   : > { %v1491_v47 = vadd.f32 %v1475_v28, %v9969_v26  ;;  %v1488_v29 = vadd.f32 %v1472_v48, %v9967_v25  ;;  %v9132_v61 = vld [vmem:[%s12735_s29 + $0x1d0] sm:$0xff]  ;;  %v1609_v28 = vld [vmem:[%s9726_s24 + $0x99] sm:$0xff] }
 0x121   : > { %v1489_v50 = vadd.f32 %v1473_v60, %v9969_v26  ;;  %1835 = vperm.xlu1 %9492, %v1818_v51   ;;  %1560 = vperm.xlu2 %9493, %v1539_v0   ;;  %v1506_v13 = vmax.f32 %v1490_v35, 0.0  ;;  %v1610_v51 = vld [vmem:[%s9726_s24 + $0xa1] sm:$0xff]  ;;  %v12755_v0 = vshrl.u32 %v10331_v57, 16  ;;  %v12756_v60 = vshrl.u32 %v10333_v40, 16 }
 0x122   : > { %v1507_v53 = vmax.f32 %v1491_v47, 0.0  ;;  %1830 = vperm.xlu0 %9491, %v1817_v34   ;;  %v1504_v18 = vmax.f32 %v1488_v29, 0.0  ;;  %v1189_v31 = vpop.permute.xlu1 %1188  ;;  %v10474_v16 = vpop.permute.xlu2 %1123  ;;  %2981 = vmatpush.bf16.msrb.mxu2 %v9124_v7 }
 0x123   : > { %v1505_v56 = vmax.f32 %v1489_v50, 0.0  ;;  %v1114_v59 = vpop.permute.xlu0 %1113  ;;  %v2097_v48 = vor.u32 %v12755_v0, %v10366_v1  ;;  %v2105_v34 = vor.u32 %v12756_v60, %v10368_v37  ;;  %v1220_v35 = vmul.f32 %v1189_v31, %v9891_v33  ;;  %3019 = vmatpush.bf16.msrb.mxu3 %v9132_v61 }
 0x124   : > { %v10476_v24 = vpack.c.bf16 %v1506_v13, %v1504_v18  ;;  %v1221_v47 = vmul.f32 %v1189_v31, %v9899_v38  ;;  %v9131_v31 = vld [vmem:[%s12735_s29 + $0x1c8] sm:$0xff]  ;;  %v12759_v0 = vrot.slane %v10333_v40, 1 }
 0x125   : > { %v10478_v5 = vpack.c.bf16 %v1507_v53, %v1505_v56 }
 0x126   : > { %2441 = vmatmul.bf16.gmra.mxu2 %v10476_v24  ;;  %v2099_v30 = vshll.u32 %v10476_v24, 16  ;;  %v12708_v1 = vshrl.u32 %v10476_v24, 16  ;;  %v12706_v29 = vrot.slane %v10476_v24, 1 }
 0x127   : > { %2479 = vmatmul.bf16.gmra.mxu3 %v10478_v5  ;;  %v2107_v22 = vshll.u32 %v10478_v5, 16  ;;  %v12705_v37 = vshrl.u32 %v10478_v5, 16  ;;  %v12707_v50 = vrot.slane %v10478_v5, 1  ;;  %2982 = vmatpush.bf16.msrb.mxu2 %v9123_v12  ;;  %v1679_v12 = vld [vmem:[%s9726_s24 + $0x9a] sm:$0xff] }
 0x128   : > { %v10505_v13 = vrot.slane %v2099_v30, 1  ;;  %v2843_v18 = vrot.slane %v2099_v30, 2  ;;  %v2842_v7 = vrot.slane %v12708_v1, 1  ;;  %3020 = vmatpush.bf16.msrb.mxu3 %v9131_v31 }
 0x129   : > { %1630 = vperm.xlu1 %9492, %v1609_v28   ;;  %1635 = vperm.xlu2 %9493, %v1610_v51   ;;  %v10507_v53 = vrot.slane %v2107_v22, 1  ;;  %v2847_v56 = vrot.slane %v2107_v22, 2  ;;  %v2846_v61 = vrot.slane %v12705_v37, 1  ;;  %v12757_v28 = vrot.slane %v10331_v57, 1 }
 0x12a   : > { %1565 = vperm.xlu0 %9491, %v1540_v4   ;;  %v10531_v60 = vsel %vm2542_vm2, %v12759_v0, %v12707_v50  ;;  %v1274_v4 = vpop.permute.xlu1 %1273  ;;  %v10533_v30 = vpop.permute.xlu2 %1208  ;;  %v2102_v22 = vsel %vm2038_vm0, %v2097_v48, %v10505_v13  ;;  %v1222_v0 = vmul.f32 %v10329_v55, %v9891_v33  ;;  %v10547_v11 = vor.u32 %v2843_v18, %v2842_v7 }
 0x12b   : > { %v10524_v51 = vsel %vm2542_vm2, %v12757_v28, %v12706_v29  ;;  %12760 = vst [vmem:[#allocation29_spill] sm:$0xff] %v10531_v60  ;;  %v2110_v37 = vsel %vm2038_vm0, %v2105_v34, %v10507_v53  ;;  %v1140_v28 = vmul.f32 %v10308_v21, %v9889_v32  ;;  %v1141_v29 = vmul.f32 %v10308_v21, %v9897_v36  ;;  %v1269_v50 = vpop.permute.xlu0 %1268  ;;  %v1749_v21 = vld [vmem:[%s9726_s24 + $0x9b] sm:$0xff] }
 0x12c   : > { %12758 = vst [vmem:[#allocation28_spill] sm:$0xff] %v10524_v51  ;;  %2264 = vmatmul.bf16.gmra.mxu0 %v2102_v22  ;;  %v1300_v1 = vmul.f32 %v1269_v50, %v9907_v43  ;;  %v1301_v48 = vmul.f32 %v1269_v50, %v9909_v44  ;;  %2302 = vmatmul.bf16.gmra.mxu1 %v2110_v37  ;;  %v12711_v34 = vrot.slane %v10476_v24, 2  ;;  %v9122_v22 = vld [vmem:[%s12735_s29 + $0x180] sm:$0xff]  ;;  %v12710_v60 = vrot.slane %v10478_v5, 2 }
 0x12d   : > { %v1236_v23 = vadd.f32 %v1220_v35, %v1140_v28  ;;  %v1237_v42 = vadd.f32 %v1221_v47, %v1141_v29  ;;  %v10555_v63 = vor.u32 %v2847_v56, %v2846_v61  ;;  %v1142_v37 = vmul.f32 %v1114_v59, %v9889_v32  ;;  %v9130_v35 = vld [vmem:[%s12735_s29 + $0x1c0] sm:$0xff]  ;;  %2983 = vmatpush.bf16.msrb.mxu2 %v9122_v22 }
 0x12e   : > { %v1143_v50 = vmul.f32 %v1114_v59, %v9897_v36  ;;  %v10567_v47 = vsel %vm2801_vm1, %v10395_v45, %v10547_v11  ;;  %v12762_v29 = vrot.slane %v10331_v57, 2  ;;  %v12765_v7 = vrot.slane %v10333_v40, 2  ;;  %3021 = vmatpush.bf16.msrb.mxu3 %v9130_v35 }
 0x12f   : > { %12761 = vst [vmem:[#allocation30_spill] sm:$0xff] %v10567_v47  ;;  %v1316_v56 = vadd.f32 %v1300_v1, %v1236_v23  ;;  %v1317_v31 = vadd.f32 %v1301_v48, %v1237_v42  ;;  %v10579_v59 = vsel %vm2801_vm1, %v10399_v46, %v10555_v63  ;;  %v1223_v57 = vmul.f32 %v10329_v55, %v9899_v38 }
 0x130   : > { %v10574_v18 = vsel %vm3108_vm3, %v12762_v29, %v12711_v34  ;;  %12764 = vst [vmem:[#allocation32_spill] sm:$0xff] %v10579_v59  ;;  %v10586_v45 = vsel %vm3108_vm3, %v12765_v7, %v12710_v60  ;;  %v1302_v61 = vmul.f32 %v1274_v4, %v9907_v43  ;;  %v1303_v23 = vmul.f32 %v1274_v4, %v9909_v44  ;;  %v1820_v7 = vld [vmem:[%s9726_s24 + $0xa4] sm:$0xff] }
 0x131   : > { %12763 = vst [vmem:[#allocation31_spill] sm:$0xff] %v10574_v18  ;;  %1705 = vperm.xlu1 %9492, %v1680_v39   ;;  %1770 = vperm.xlu2 %9493, %v1749_v21   ;;  %v1380_v46 = vmul.f32 %v10379_v52, %v9940_v2  ;;  %v1381_v42 = vmul.f32 %v10379_v52, %v9942_v3  ;;  %v9108_v52 = vld [vmem:[%s12735_s29 + $0x110] sm:$0xff] }
 0x132   : > { %12766 = vst [vmem:[#allocation33_spill] sm:$0xff] %v10586_v45  ;;  %1700 = vperm.xlu0 %9491, %v1679_v12   ;;  %v1238_v40 = vadd.f32 %v1222_v0, %v1142_v37  ;;  %v1239_v1 = vadd.f32 %v1223_v57, %v1143_v50  ;;  %v1429_v28 = vpop.permute.xlu1 %1428  ;;  %v10596_v48 = vpop.permute.xlu2 %1288  ;;  %v9116_v0 = vld [vmem:[%s12735_s29 + $0x150] sm:$0xff]  ;;  %2678 = vmatpush.bf16.msrb.mxu0 %v9108_v52 }
 0x133   : > { %v1396_v55 = vadd.f32 %v1380_v46, %v1316_v56  ;;  %v1397_v4 = vadd.f32 %v1381_v42, %v1317_v31  ;;  %v1460_v39 = vmul.f32 %v1429_v28, %v9944_v6  ;;  %v1461_v21 = vmul.f32 %v1429_v28, %v9946_v8  ;;  %v1354_v29 = vpop.permute.xlu0 %1353  ;;  %v1819_v31 = vld [vmem:[%s9726_s24 + $0x9c] sm:$0xff]  ;;  %2716 = vmatpush.bf16.msrb.mxu1 %v9116_v0 }
 0x134   : > { %v1318_v22 = vadd.f32 %v1302_v61, %v1238_v40  ;;  %v1319_v37 = vadd.f32 %v1303_v23, %v1239_v1  ;;  %v1382_v50 = vmul.f32 %v1354_v29, %v9940_v2  ;;  %v1383_v12 = vmul.f32 %v1354_v29, %v9942_v3  ;;  %v1750_v61 = vld [vmem:[%s9726_s24 + $0xa3] sm:$0xff] }
 0x135   : > { %v1476_v35 = vadd.f32 %v1460_v39, %v1396_v55  ;;  %v1477_v56 = vadd.f32 %v1461_v21, %v1397_v4  ;;  %v1462_v57 = vmul.f32 %v10449_v27, %v9944_v6  ;;  %v1463_v46 = vmul.f32 %v10449_v27, %v9946_v8  ;;  %v9107_v23 = vld [vmem:[%s12735_s29 + $0x108] sm:$0xff] }
 0x136   : > { %v1398_v42 = vadd.f32 %v1382_v50, %v1318_v22  ;;  %v1399_v28 = vadd.f32 %v1383_v12, %v1319_v37  ;;  %v9115_v40 = vld [vmem:[%s12735_s29 + $0x148] sm:$0xff]  ;;  %2679 = vmatpush.bf16.msrb.mxu0 %v9107_v23  ;;  %v1229_v23 = vmul.f32 %v10533_v30, %v9899_v38 }
 0x137   : > { %v1492_v1 = vadd.f32 %v1476_v35, %v9967_v25  ;;  %v1493_v55 = vadd.f32 %v1477_v56, %v9969_v26  ;;  %2717 = vmatpush.bf16.msrb.mxu1 %v9115_v40  ;;  %v1542_v35 = vld [vmem:[%s9726_s24 + $0xb0] sm:$0xf] }
 0x138   : > { %v1478_v4 = vadd.f32 %v1462_v57, %v1398_v42  ;;  %v1479_v39 = vadd.f32 %v1463_v46, %v1399_v28  ;;  %v1611_v56 = vld [vmem:[%s9726_s24 + $0xa9] sm:$0xff] }
 0x139   : > { %1840 = vperm.xlu1 %9492, %v1819_v31   ;;  %1845 = vperm.xlu2 %9493, %v1820_v7   ;;  %v10623_v27 = vmax.f32 %v1492_v1, 0.0  ;;  %v10625_v21 = vmax.f32 %v1493_v55, 0.0  ;;  %v1541_v57 = vld [vmem:[%s9726_s24 + $0xa8] sm:$0xff] }
 0x13a   : > { %1775 = vperm.xlu0 %9491, %v1750_v61   ;;  %v1494_v29 = vadd.f32 %v1478_v4, %v9967_v25  ;;  %v1495_v52 = vadd.f32 %v1479_v39, %v9969_v26  ;;  %v10629_v0 = vpop.permute.xlu1 %1198  ;;  %v1369_v22 = vpop.permute.xlu2 %1368  ;;  %v1228_v61 = vmul.f32 %v10533_v30, %v9891_v33  ;;  %v1681_v55 = vld [vmem:[%s9726_s24 + $0xaa] sm:$0xff]  ;;  %v1682_v4 = vld [vmem:[%s9726_s24 + $0xb2] sm:$0xf]  ;;  %v1308_v39 = vmul.f32 %v10596_v48, %v9907_v43 }
 0x13b   : > { %v10631_v37 = vpop.permute.xlu0 %1118  ;;  %v1963_v31 = vpack.c.bf16 %v10623_v27, %v10623_v27  ;;  %v1964_v7 = vpack.c.bf16 %v10625_v21, %v10625_v21  ;;  %v1225_v10 = vmul.f32 %v10629_v0, %v9899_v38 }
 0x13c   : > { %v1510_v50 = vmax.f32 %v1494_v29, 0.0  ;;  %v1511_v12 = vmax.f32 %v1495_v52, 0.0  ;;  %v1612_v29 = vld [vmem:[%s9726_s24 + $0xb1] sm:$0xf] }
 0x13d   : > { %2446 = vmatmul.bf16.gmra.mxu2 %v1963_v31  ;;  %2484 = vmatmul.bf16.gmra.mxu3 %v1964_v7  ;;  %v9106_v7 = vld [vmem:[%s12735_s29 + $0x100] sm:$0xff] }
 0x13e   : > { %1526 = vst [vmem:[#allocation2 + $0x20] sm:$0xff] %v1510_v50  ;;  %2680 = vmatpush.bf16.msrb.mxu0 %v9106_v7 }
 0x13f   : > { %1527 = vst [vmem:[#allocation2 + $0xe0] sm:$0xff] %v1511_v12  ;;  %v1309_v12 = vmul.f32 %v10596_v48, %v9909_v44  ;;  %v9177_v48 = vld [vmem:[%s12735_s29 + $0xb8] sm:$0xff] }
 0x140   : > { %3698 = vmatpush.bf16.msra.mxu2 %v9177_v48 }
 0x141   : > { %1575 = vperm.xlu1 %9492, %v1542_v35   ;;  %1640 = vperm.xlu2 %9493, %v1611_v56  }
 0x142   : > { %1570 = vperm.xlu0 %9491, %v1541_v57   ;;  %v10640_v46 = vpop.permute.xlu1 %1203  ;;  %v1449_v42 = vpop.permute.xlu2 %1448  ;;  %v9114_v57 = vld [vmem:[%s12735_s29 + $0x140] sm:$0xff] }
 0x143   : > { %v1129_v28 = vpop.permute.xlu0 %1128  ;;  %v1468_v45 = vmul.f32 %v1449_v42, %v9944_v6  ;;  %2718 = vmatpush.bf16.msrb.mxu1 %v9114_v57 }
 0x144   : > { %v1148_v40 = vmul.f32 %v1129_v28, %v9889_v32  ;;  %v1149_v1 = vmul.f32 %v1129_v28, %v9897_v36  ;;  %v1388_v28 = vmul.f32 %v1369_v22, %v9940_v2 }
 0x145   : > { %v1999_v52 = vld [vmem:[#allocation2 + $0x20] sm:$0x1] }
 0x146   : > { %v2762_v50 = vld [vmem:[#allocation2 + $0x20] sm:$0x7]  ;;  %v1244_v35 = vadd.f32 %v1228_v61, %v1148_v40  ;;  %v1245_v56 = vadd.f32 %v1229_v23, %v1149_v1  ;;  %v10656_v31 = vpack.c.bf16 %v1999_v52, %v10623_v27  ;;  %v9185_v61 = vld [vmem:[%s12735_s29 + $0xf8] sm:$0xff]  ;;  %v1389_v40 = vmul.f32 %v1369_v22, %v9942_v3 }
 0x147   : > { %v2000_v30 = vld [vmem:[#allocation2 + $0xe0] sm:$0x1]  ;;  %v2766_v23 = vpack.c.bf16 %v2762_v50, %v10623_v27  ;;  %v1469_v50 = vmul.f32 %v1449_v42, %v9946_v8  ;;  %v12767_v42 = vshrl.u32 %v10476_v24, 16  ;;  %3736 = vmatpush.bf16.msra.mxu3 %v9185_v61  ;;  %v1144_v61 = vmul.f32 %v10631_v37, %v9889_v32 }
 0x148   : > { %v10666_v60 = vpack.c.bf16 %v2000_v30, %v10625_v21  ;;  %v1324_v1 = vadd.f32 %v1308_v39, %v1244_v35  ;;  %v1325_v52 = vadd.f32 %v1309_v12, %v1245_v56  ;;  %v2115_v34 = vshll.u32 %v10656_v31, 16  ;;  %v2763_v51 = vld [vmem:[#allocation2 + $0xe0] sm:$0x7] }
 0x149   : > { %1710 = vperm.xlu1 %9492, %v1681_v55   ;;  %1715 = vperm.xlu2 %9493, %v1682_v4   ;;  %v10679_v30 = vmul.f32 %v10474_v16, %v9889_v32  ;;  %v2491_v35 = vld [vmem:[#allocation2 + $0x20] sm:$0x3]  ;;  %v2113_v7 = vor.u32 %v12767_v42, %v10505_v13  ;;  %v1752_v42 = vld [vmem:[%s9726_s24 + $0xb3] sm:$0xf] }
 0x14a   : > { %1645 = vperm.xlu0 %9491, %v1612_v29   ;;  %v2123_v18 = vshll.u32 %v10666_v60, 16  ;;  %v1404_v22 = vadd.f32 %v1388_v28, %v1324_v1  ;;  %v1405_v39 = vadd.f32 %v1389_v40, %v1325_v52  ;;  %v10684_v12 = vpop.permute.xlu1 %1283  ;;  %v10686_v55 = vpop.permute.xlu2 %1545  ;;  %v10688_v4 = vrot.slane %v2115_v34, 1 }
 0x14b   : > { %v1224_v29 = vmul.f32 %v10629_v0, %v9891_v33  ;;  %v10692_v56 = vpop.permute.xlu0 %1278  ;;  %v12768_v28 = vshrl.u32 %v10478_v5, 16  ;;  %v2851_v34 = vshrl.u32 %v2766_v23, 16  ;;  %v2854_v1 = vshll.u32 %v2766_v23, 16  ;;  %v1821_v0 = vld [vmem:[%s9726_s24 + $0xac] sm:$0xff] }
 0x14c   : > { %v1484_v57 = vadd.f32 %v1468_v45, %v1404_v22  ;;  %v1485_v48 = vadd.f32 %v1469_v50, %v1405_v39  ;;  %v2767_v52 = vpack.c.bf16 %v2763_v51, %v10625_v21  ;;  %v2118_v9 = vsel %vm2038_vm0, %v2113_v7, %v10688_v4  ;;  %v1751_v50 = vld [vmem:[%s9726_s24 + $0xab] sm:$0xff]  ;;  %v2492_v22 = vld [vmem:[#allocation2 + $0xe0] sm:$0x3] }
 0x14d   : > { %v2121_v40 = vor.u32 %v12768_v28, %v10507_v53  ;;  %v10705_v13 = vrot.slane %v2123_v18, 1  ;;  %v2495_v53 = vpack.c.bf16 %v2491_v35, %v10623_v27  ;;  %v1145_v45 = vmul.f32 %v10631_v37, %v9897_v36  ;;  %2269 = vmatmul.bf16.gmra.mxu0 %v2118_v9  ;;  %2984 = vmatmul.bf16.vlgmr.msrb.gmra.mxu2 %v10124_v15  ;;  %v3065_v7 = vld [vmem:[#allocation2 + $0x20] sm:$0xf] }
 0x14e   : > { %v1500_v23 = vadd.f32 %v1484_v57, %v9967_v25  ;;  %v1501_v51 = vadd.f32 %v1485_v48, %v9969_v26  ;;  %v1226_v18 = vmul.f32 %v10640_v46, %v9891_v33  ;;  %v1227_v39 = vmul.f32 %v10640_v46, %v9899_v38  ;;  %3022 = vmatmul.bf16.vlgmr.msrb.gmra.mxu3 %v10147_v54  ;;  %v3066_v28 = vld [vmem:[#allocation2 + $0xe0] sm:$0xf]  ;;  %v9145_v48 = vld [vmem:[%s12735_s29 + $0x238] sm:$0xff] }
 0x14f   : > { %v2126_v35 = vsel %vm2038_vm0, %v2121_v40, %v10705_v13  ;;  %v2853_v37 = vrot.slane %v2851_v34, 1  ;;  %v9153_v46 = vld [vmem:[%s12735_s29 + $0x278] sm:$0xff]  ;;  %v2856_v40 = vrot.slane %v2854_v1, 2  ;;  %v2860_v20 = vshrl.u32 %v2767_v52, 16  ;;  %3239 = vmatpush.bf16.msra.mxu0 %v9145_v48 }
 0x150   : > { %v1516_v9 = vmax.f32 %v1500_v23, 0.0  ;;  %v1517_v57 = vmax.f32 %v1501_v51, 0.0  ;;  %2307 = vmatmul.bf16.gmra.mxu1 %v2126_v35  ;;  %v1147_v15 = vmul.f32 %v10474_v16, %v9897_v36  ;;  %v2863_v54 = vshll.u32 %v2767_v52, 16 }
 0x151   : > { %1785 = vperm.xlu1 %9492, %v1752_v42   ;;  %1850 = vperm.xlu2 %9493, %v1821_v0   ;;  %v10733_v34 = vrot.slane %v2495_v53, 1  ;;  %v2496_v42 = vpack.c.bf16 %v2492_v22, %v10625_v21  ;;  %v10736_v51 = vor.u32 %v2856_v40, %v2853_v37  ;;  %v2862_v35 = vrot.slane %v2860_v20, 1 }
 0x152   : > { %1780 = vperm.xlu0 %9491, %v1751_v50   ;;  %1532 = vst [vmem:[#allocation2 + $0x168] sm:$0xff] %v1516_v9  ;;  %v1364_v23 = vpop.permute.xlu1 %1363  ;;  %3277 = vmatpush.bf16.msra.mxu1 %v9153_v46  ;;  %v3069_v1 = vpack.c.bf16 %v3065_v7, %v10623_v27  ;;  %v1240_v59 = vadd.f32 %v1224_v29, %v1144_v61  ;;  %v10741_v50 = vpop.permute.xlu2 %1685  ;;  %v2127_v22 = vshrl.u32 %v10656_v31, 16  ;;  %v2865_v27 = vrot.slane %v2863_v54, 2 }
 0x153   : > { %v1241_v47 = vadd.f32 %v1225_v10, %v1145_v45  ;;  %v1242_v16 = vadd.f32 %v1226_v18, %v10679_v30  ;;  %1533 = vst [vmem:[#allocation2 + $0xe8] sm:$0xff] %v1517_v57  ;;  %v1359_v52 = vpop.permute.xlu0 %1358  ;;  %v3070_v53 = vpack.c.bf16 %v3066_v28, %v10625_v21  ;;  %v1243_v0 = vadd.f32 %v1227_v39, %v1147_v15  ;;  %v1822_v45 = vld [vmem:[%s9726_s24 + $0xb4] sm:$0xf]  ;;  %s7248_s24 = sshll.u32 %s7244_s2, 4  ;;  %s7249_s24 = int_to_ptr.hbm [resolvable:$true] %s7248_s24 }
 0x154   : > { %v10747_v20 = vsel %vm2801_vm1, %v10547_v11, %v10736_v51  ;;  %v1306_v10 = vmul.f32 %v10684_v12, %v9907_v43  ;;  %v1307_v30 = vmul.f32 %v10684_v12, %v9909_v44  ;;  %v12769_v21 = vrot.slane %v10476_v24, 1 }
 0x155   : > { %v10759_v61 = vrot.slane %v2496_v42, 1  ;;  %v1304_v31 = vmul.f32 %v10692_v56, %v9907_v43  ;;  %v1305_v11 = vmul.f32 %v10692_v56, %v9909_v44  ;;  %v10766_v18 = vor.u32 %v2865_v27, %v2862_v35 }
 0x156   : > { %v10757_v29 = vsel %vm2542_vm2, %v12769_v21, %v10733_v34  ;;  %v10768_v39 = vrot.slane %v3069_v1, 2  ;;  %v1386_v12 = vmul.f32 %v1364_v23, %v9940_v2  ;;  %v1387_v37 = vmul.f32 %v1364_v23, %v9942_v3 }
 0x157   : > { %v12771_v7 = vrot.slane %v10478_v5, 1  ;;  %v10778_v9 = vrot.slane %v3070_v53, 2  ;;  %v1384_v57 = vmul.f32 %v1359_v52, %v9940_v2  ;;  %v1385_v56 = vmul.f32 %v1359_v52, %v9942_v3 }
 0x158   : > { %12770 = vst [vmem:[#allocation34_spill] sm:$0xff] %v10768_v39  ;;  %v10785_v48 = vsel %vm2801_vm1, %v10555_v63, %v10766_v18  ;;  %v12773_v46 = vrot.slane %v10476_v24, 2  ;;  %v1322_v15 = vadd.f32 %v1306_v10, %v1242_v16  ;;  %v1323_v54 = vadd.f32 %v1307_v30, %v1243_v0 }
 0x159   : > { %v10776_v28 = vsel %vm2542_vm2, %v12771_v7, %v10759_v61  ;;  %12772 = vst [vmem:[#allocation35_spill] sm:$0xff] %v10778_v9  ;;  %v12775_v42 = vrot.slane %v10478_v5, 2  ;;  %v1320_v35 = vadd.f32 %v1304_v31, %v1240_v59  ;;  %v1321_v1 = vadd.f32 %v1305_v11, %v1241_v47  ;;  %v2250_v10 = vpop.f32.mrf.mxu0 }
 0x15a   : > { %v10791_v40 = vsel %vm3108_vm3, %v12773_v46, %v10768_v39  ;;  %1855 = vperm.xlu0 %9491, %v1822_v45   ;;  %v1444_v52 = vpop.permute.xlu1 %1443  ;;  %v2129_v63 = vor.u32 %v2127_v22, %v10688_v4  ;;  %v2130_v53 = vshrl.u32 %v10666_v60, 16  ;;  %v1402_v24 = vadd.f32 %v1386_v12, %v1322_v15  ;;  %v2422_v22 = vpop.f32.mrf.mxu2  ;;  %v9176_v15 = vld [vmem:[%s12735_s29 + $0xb0] sm:$0xff] }
 0x15b   : > { %12774 = vst [vmem:[#allocation36_spill] sm:$0xff] %v10791_v40  ;;  %v10797_v23 = vsel %vm3108_vm3, %v12775_v42, %v10778_v9  ;;  %v1403_v27 = vadd.f32 %v1387_v37, %v1323_v54  ;;  %v1466_v21 = vmul.f32 %v1444_v52, %v9944_v6  ;;  %v1467_v16 = vmul.f32 %v1444_v52, %v9946_v8  ;;  %v1439_v0 = vpop.permute.xlu0 %1438  ;;  %v2288_v47 = vpop.f32.mrf.mxu1  ;;  %v9184_v54 = vld [vmem:[%s12735_s29 + $0xf0] sm:$0xff] }
 0x15c   : > { %12776 = vst [vmem:[#allocation37_spill] sm:$0xff] %v10797_v23  ;;  %v1400_v30 = vadd.f32 %v1384_v57, %v1320_v35  ;;  %v1401_v5 = vadd.f32 %v1385_v56, %v1321_v1  ;;  %v1464_v45 = vmul.f32 %v1439_v0, %v9944_v6  ;;  %v1465_v59 = vmul.f32 %v1439_v0, %v9946_v8  ;;  %v10805_v60 = vpop.permute.xlu2 %1453  ;;  %v2460_v42 = vpop.f32.mrf.mxu3  ;;  %v9183_v0 = vld [vmem:[%s12735_s29 + $0xe8] sm:$0xff] }
 0x15d   : > { %v1482_v31 = vadd.f32 %v1466_v21, %v1402_v24  ;;  %v1483_v11 = vadd.f32 %v1467_v16, %v1403_v27  ;;  %v2289_v4 = vadd.f32 %v2288_v47, %v2250_v10  ;;  %2274 = vmatmul.bf16.gmra.mxu0 %v2129_v63  ;;  %v2132_v7 = vor.u32 %v2130_v53, %v10705_v13  ;;  %v9144_v13 = vld [vmem:[%s12735_s29 + $0x230] sm:$0xff]  ;;  %v9175_v16 = vld [vmem:[%s12735_s29 + $0xa8] sm:$0xff] }
 0x15e   : > { %v1480_v12 = vadd.f32 %v1464_v45, %v1400_v30  ;;  %v1481_v37 = vadd.f32 %v1465_v59, %v1401_v5  ;;  %2989 = vmatmul.bf16.gmra.mxu2 %v10266_v41  ;;  %3027 = vmatmul.bf16.gmra.mxu3 %v10289_v17  ;;  %v9152_v41 = vld [vmem:[%s12735_s29 + $0x270] sm:$0xff]  ;;  %v9143_v10 = vld [vmem:[%s12735_s29 + $0x228] sm:$0xff] }
 0x15f   : > { %v1498_v46 = vadd.f32 %v1482_v31, %v9967_v25  ;;  %v1499_v57 = vadd.f32 %v1483_v11, %v9969_v26  ;;  %v2423_v56 = vadd.f32 %v2422_v22, %v2289_v4  ;;  %3699 = vmatpush.bf16.msra.mxu2 %v9176_v15  ;;  %3737 = vmatpush.bf16.msra.mxu3 %v9184_v54  ;;  %v9151_v30 = vld [vmem:[%s12735_s29 + $0x268] sm:$0xff] }
 0x160   : > { %v1496_v35 = vadd.f32 %v1480_v12, %v9967_v25  ;;  %v1497_v1 = vadd.f32 %v1481_v37, %v9969_v26  ;;  %2312 = vmatmul.bf16.gmra.mxu1 %v2132_v7  ;;  %3240 = vmatpush.bf16.msra.mxu0 %v9144_v13  ;;  %v3396_v59 = vld [vmem:[#allocation2 + $0x168] sm:$0xff]  ;;  %v1578_v7 = vmul.f32 %v10686_v55, %v9889_v32 }
 0x161   : > { %v1514_v17 = vmax.f32 %v1498_v46, 0.0  ;;  %v1515_v52 = vmax.f32 %v1499_v57, 0.0  ;;  %v10826_v63 = vadd.f32 %v2460_v42, %v2423_v56  ;;  %3278 = vmatpush.bf16.msra.mxu1 %v9152_v41  ;;  %v3397_v47 = vld [vmem:[#allocation2 + $0xe8] sm:$0xff]  ;;  %v10848_v31 = vpop.f32.mrf.mxu0  ;;  %v1579_v42 = vmul.f32 %v10686_v55, %v9897_v36 }
 0x162   : > { %v10828_v53 = vmax.f32 %v1496_v35, 0.0  ;;  %v10830_v24 = vmax.f32 %v1497_v1, 0.0  ;;  %v1214_v27 = vpop.permute.xlu1 %1213  ;;  %v10854_v12 = vpop.f32.mrf.mxu2 }
 0x163   : > { %12777 = vst [vmem:[#allocation38_spill] sm:$0xff] %v10826_v63  ;;  %v1134_v21 = vpop.permute.xlu0 %1133  ;;  %3700 = vmatpush.bf16.msra.mxu2 %v9175_v16  ;;  %3738 = vmatpush.bf16.msra.mxu3 %v9183_v0  ;;  %v10850_v4 = vpack.c.bf16 %v3396_v59, %v1514_v17  ;;  %v10852_v22 = vpack.c.bf16 %v3397_v47, %v1515_v52  ;;  %v10856_v37 = vpop.f32.mrf.mxu1  ;;  %v9150_v0 = vld [vmem:[%s12735_s29 + $0x260] sm:$0xff] }
 0x164   : > { %1528 = vst [vmem:[#allocation2 + $0xf0] sm:$0xff] %v10828_v53  ;;  %v10846_v5 = vpop.permute.xlu2 %1555  ;;  %3241 = vmatpush.bf16.msra.mxu0 %v9143_v10  ;;  %v10861_v57 = vpop.f32.mrf.mxu3  ;;  %v1230_v56 = vmul.f32 %v1214_v27, %v9891_v33  ;;  %v1231_v15 = vmul.f32 %v1214_v27, %v9899_v38  ;;  %v1150_v54 = vmul.f32 %v1134_v21, %v9889_v32  ;;  %v9142_v27 = vld [vmem:[%s12735_s29 + $0x220] sm:$0xff] }
 0x165   : > { %1529 = vst [vmem:[#allocation2 + $0x158] sm:$0xff] %v10830_v24  ;;  %3279 = vmatpush.bf16.msra.mxu1 %v9151_v30  ;;  %v1151_v13 = vmul.f32 %v1134_v21, %v9897_v36  ;;  %v1718_v17 = vmul.f32 %v10741_v50, %v9907_v43  ;;  %v1719_v52 = vmul.f32 %v10741_v50, %v9909_v44  ;;  %v4215_v10 = vld [vmem:[#allocation2 + $0x20] sm:$0xf8]  ;;  %v12782_v9 = vshrl.u32 %v10852_v22, 16 }
 0x166   : > { %12778 = vst [vmem:[#allocation39_spill] sm:$0xff] %v10854_v12  ;;  %v1470_v50 = vmul.f32 %v10805_v60, %v9944_v6  ;;  %v1471_v21 = vmul.f32 %v10805_v60, %v9946_v8  ;;  %v1246_v30 = vadd.f32 %v1230_v56, %v1150_v54  ;;  %v4219_v41 = vpack.c.bf16 %v10828_v53, %v4215_v10  ;;  %v4216_v60 = vld [vmem:[#allocation2 + $0xe0] sm:$0xf8] }
 0x167   : > { %12779 = vst [vmem:[#allocation40_spill] sm:$0xff] %v10856_v37  ;;  %v4275_v56 = vrot.slane %v12782_v9, 1 }
 0x168   : > { %12780 = vst [vmem:[#allocation41_spill] sm:$0xff] %v10861_v57  ;;  %3242 = vmatpush.bf16.msra.mxu0 %v9142_v27  ;;  %v4256_v63 = vshrl.u32 %v4219_v41, 16 }
 0x169   : > { %3280 = vmatpush.bf16.msra.mxu1 %v9150_v0 }
 0x16a   : > { %v1294_v45 = vpop.permute.xlu1 %1293  ;;  %v2427_v57 = vpop.f32.mrf.mxu2  ;;  %v4258_v0 = vrot.slane %v4256_v63, 1 }
 0x16b   : > { %v1616_v11 = vpop.permute.xlu0 %1615  ;;  %v1311_v55 = vmul.f32 %v1294_v45, %v9909_v44 }
 0x16c   : > { %v1648_v46 = vmul.f32 %v1616_v11, %v9891_v33  ;;  %v10899_v59 = vpop.permute.xlu2 %1690 }
 0x16d   : > { %2681 = vmatmul.bf16.vlgmr.msrb.gmra.mxu0 %v10131_v58  ;;  %v1310_v58 = vmul.f32 %v1294_v45, %v9907_v43  ;;  %v1247_v45 = vadd.f32 %v1231_v15, %v1151_v13  ;;  %v12783_v15 = vshll.u32 %v10850_v4, 16  ;;  %v4220_v13 = vpack.c.bf16 %v10830_v24, %v4216_v60 }
 0x16e   : > { %2994 = vmatmul.bf16.gmra.mxu2 %v10412_v14  ;;  %3032 = vmatmul.bf16.gmra.mxu3 %v10424_v62  ;;  %v9174_v14 = vld [vmem:[%s12735_s29 + $0xa0] sm:$0xff]  ;;  %v1662_v16 = vadd.f32 %v1648_v46, %v1578_v7  ;;  %v12781_v7 = vshrl.u32 %v10850_v4, 16 }
 0x16f   : > { %v9182_v62 = vld [vmem:[%s12735_s29 + $0xe0] sm:$0xff]  ;;  %3701 = vmatpush.bf16.msra.mxu2 %v9174_v14  ;;  %v4264_v54 = vrot.slane %v12783_v15, 2  ;;  %v1326_v14 = vadd.f32 %v1310_v58, %v1246_v30  ;;  %v4259_v15 = vshll.u32 %v4219_v41, 16  ;;  %v4268_v30 = vshrl.u32 %v4220_v13, 16 }
 0x170   : > { %2719 = vmatmul.bf16.vlgmr.msrb.gmra.mxu1 %v10143_v49  ;;  %v1649_v49 = vmul.f32 %v1616_v11, %v9899_v38  ;;  %3739 = vmatpush.bf16.msra.mxu3 %v9182_v62  ;;  %v4263_v46 = vrot.slane %v12781_v7, 1  ;;  %v1327_v62 = vadd.f32 %v1311_v55, %v1247_v45  ;;  %v1732_v23 = vadd.f32 %v1718_v17, %v1662_v16  ;;  %v2465_v45 = vpop.f32.mrf.mxu3 }
 0x172   : > { %v1756_v47 = vpop.permute.xlu1 %1755  ;;  %v2255_v11 = vpop.f32.mrf.mxu0  ;;  %v1663_v27 = vadd.f32 %v1649_v49, %v1579_v42  ;;  %v10914_v55 = vor.u32 %v4264_v54, %v4263_v46  ;;  %v4261_v42 = vrot.slane %v4259_v15, 2  ;;  %v12788_v15 = vld [vmem:[#allocation32_spill] sm:$0xff] }
 0x173   : > { %v1374_v1 = vpop.permute.xlu0 %1373  ;;  %v2293_v39 = vpop.f32.mrf.mxu1  ;;  %v1788_v7 = vmul.f32 %v1756_v47, %v9940_v2  ;;  %v1789_v60 = vmul.f32 %v1756_v47, %v9942_v3 }
 0x174   : > { %v1390_v35 = vmul.f32 %v1374_v1, %v9940_v2  ;;  %v1391_v10 = vmul.f32 %v1374_v1, %v9942_v3  ;;  %v2294_v40 = vadd.f32 %v2293_v39, %v2255_v11  ;;  %v1733_v17 = vadd.f32 %v1719_v52, %v1663_v27  ;;  %v10924_v63 = vpop.permute.xlu2 %1765  ;;  %v9173_v27 = vld [vmem:[%s12735_s29 + $0x98] sm:$0xff] }
 0x175   : > { %v4271_v39 = vshll.u32 %v4220_v13, 16  ;;  %v1802_v11 = vadd.f32 %v1788_v7, %v1732_v23  ;;  %v9181_v7 = vld [vmem:[%s12735_s29 + $0xd8] sm:$0xff]  ;;  %3702 = vmatpush.bf16.msra.mxu2 %v9173_v27 }
 0x176   : > { %v1406_v9 = vadd.f32 %v1390_v35, %v1326_v14  ;;  %v1407_v12 = vadd.f32 %v1391_v10, %v1327_v62  ;;  %v2428_v58 = vadd.f32 %v2427_v57, %v2294_v40  ;;  %v12785_v35 = vshll.u32 %v10852_v22, 16  ;;  %3740 = vmatpush.bf16.msra.mxu3 %v9181_v7 }
 0x177   : > { %v4262_v57 = vor.u32 %v4261_v42, %v4258_v0  ;;  %v1803_v46 = vadd.f32 %v1789_v60, %v1733_v17 }
 0x178   : > { %v1486_v1 = vadd.f32 %v1470_v50, %v1406_v9  ;;  %v1487_v37 = vadd.f32 %v1471_v21, %v1407_v12  ;;  %v10916_v49 = vadd.f32 %v2465_v45, %v2428_v58  ;;  %v4276_v16 = vrot.slane %v12785_v35, 2  ;;  %v12787_v9 = vld [vmem:[#allocation30_spill] sm:$0xff]  ;;  %v9149_v45 = vld [vmem:[%s12735_s29 + $0x258] sm:$0xff]  ;;  %v10956_v35 = vpop.f32.mrf.mxu2 }
 0x179   : > { %v4270_v12 = vrot.slane %v4268_v30, 1  ;;  %v10930_v14 = vsel %vm2801_vm1, %v4262_v57, %v10914_v55  ;;  %v12789_v30 = vld [vmem:[#allocation21_spill] sm:$0xff]  ;;  %3281 = vmatpush.bf16.msra.mxu1 %v9149_v45  ;;  %12791 = vst [vmem:[#allocation32_spill] sm:$0xff] %v10956_v35  ;;  %v9172_v57 = vld [vmem:[%s12735_s29 + $0x90] sm:$0xff] }
 0x17a   : > { %12784 = vst [vmem:[#allocation42_spill] sm:$0xff] %v10916_v49  ;;  %v1502_v41 = vadd.f32 %v1486_v1, %v9967_v25  ;;  %v1503_v47 = vadd.f32 %v1487_v37, %v9969_v26  ;;  %v10922_v40 = vpop.permute.xlu1 %1550  ;;  %v4273_v37 = vrot.slane %v4271_v39, 2  ;;  %v10932_v62 = vor.u32 %v4276_v16, %v4275_v56  ;;  %v10958_v16 = vpop.f32.mrf.mxu3  ;;  %3703 = vmatpush.bf16.msra.mxu2 %v9172_v57 }
 0x17b   : > { %v1826_v50 = vpop.permute.xlu0 %1825  ;;  %12786 = vst [vmem:[#allocation43_spill] sm:$0xff] %v10930_v14  ;;  %v1580_v27 = vmul.f32 %v10922_v40, %v9889_v32  ;;  %v1581_v45 = vmul.f32 %v10922_v40, %v9897_v36 }
 0x17c   : > { %v1518_v52 = vmax.f32 %v1502_v41, 0.0  ;;  %v1519_v21 = vmax.f32 %v1503_v47, 0.0  ;;  %v1858_v54 = vmul.f32 %v1826_v50, %v9944_v6  ;;  %v1859_v13 = vmul.f32 %v1826_v50, %v9946_v8  ;;  %12792 = vst [vmem:[#allocation21_spill] sm:$0xff] %v10958_v16  ;;  %v10962_v47 = vpop.permute.xlu2 %1560 }
 0x17d   : > { %2686 = vmatmul.bf16.gmra.mxu0 %v10245_v19  ;;  %v4274_v60 = vor.u32 %v4273_v37, %v4270_v12  ;;  %v9141_v19 = vld [vmem:[%s12735_s29 + $0x218] sm:$0xff]  ;;  %v9148_v12 = vld [vmem:[%s12735_s29 + $0x250] sm:$0xff] }
 0x17e   : > { %v1872_v10 = vadd.f32 %v1858_v54, %v1802_v11  ;;  %v1873_v23 = vadd.f32 %v1859_v13, %v1803_v46  ;;  %2999 = vmatmul.bf16.gmra.mxu2 %v12787_v9  ;;  %3037 = vmatmul.bf16.gmra.mxu3 %v12788_v15  ;;  %v9180_v11 = vld [vmem:[%s12735_s29 + $0xd0] sm:$0xff]  ;;  %v10981_v13 = vpop.f32.mrf.mxu1 }
 0x17f   : > { %v10954_v1 = vsel %vm2801_vm1, %v4274_v60, %v10932_v62  ;;  %3243 = vmatpush.bf16.msra.mxu0 %v9141_v19  ;;  %v9140_v46 = vld [vmem:[%s12735_s29 + $0x210] sm:$0xff]  ;;  %3741 = vmatpush.bf16.msra.mxu3 %v9180_v11 }
 0x180   : > { %v1886_v56 = vadd.f32 %v1872_v10, %v9967_v25  ;;  %v1887_v58 = vadd.f32 %v1873_v23, %v9969_v26  ;;  %2724 = vmatmul.bf16.gmra.mxu1 %v12789_v30  ;;  %12790 = vst [vmem:[#allocation30_spill] sm:$0xff] %v10954_v1  ;;  %v1720_v30 = vmul.f32 %v10899_v59, %v9907_v43  ;;  %v12793_v1 = vld [vmem:[#allocation24_spill] sm:$0xff] }
 0x181   : > { %3282 = vmatpush.bf16.msra.mxu1 %v9148_v12 }
 0x182   : > { %v1900_v0 = vmax.f32 %v1886_v56, 0.0  ;;  %v1901_v42 = vmax.f32 %v1887_v58, 0.0  ;;  %v1626_v17 = vpop.permute.xlu1 %1625  ;;  %v1582_v56 = vmul.f32 %v10846_v5, %v9889_v32  ;;  %v1583_v58 = vmul.f32 %v10846_v5, %v9897_v36  ;;  %v2470_v57 = vpop.f32.mrf.mxu3 }
 0x183   : > { %v1621_v39 = vpop.permute.xlu0 %1620  ;;  %v1652_v37 = vmul.f32 %v1626_v17, %v9891_v33  ;;  %v1653_v10 = vmul.f32 %v1626_v17, %v9899_v38  ;;  %3244 = vmatpush.bf16.msra.mxu0 %v9140_v46 }
 0x184   : > { %v10960_v41 = vpack.c.bf16 %v1900_v0, %v1518_v52  ;;  %v10973_v50 = vpack.c.bf16 %v1901_v42, %v1519_v21  ;;  %v10978_v52 = vpop.f32.mrf.mxu0  ;;  %v1650_v54 = vmul.f32 %v1621_v39, %v9891_v33  ;;  %v1651_v7 = vmul.f32 %v1621_v39, %v9899_v38  ;;  %v2432_v0 = vpop.f32.mrf.mxu2 }
 0x185   : > { %v1666_v11 = vadd.f32 %v1652_v37, %v1582_v56  ;;  %v1667_v46 = vadd.f32 %v1653_v10, %v1583_v58  ;;  %v11018_v56 = vpop.permute.xlu2 %1635 }
 0x186   : > { %v12716_v21 = vshll.u32 %v10960_v41, 16  ;;  %v12715_v23 = vshrl.u32 %v10960_v41, 16  ;;  %v1664_v42 = vadd.f32 %v1650_v54, %v1580_v27  ;;  %v1665_v15 = vadd.f32 %v1651_v7, %v1581_v45  ;;  %v12796_v45 = vld [vmem:[#allocation25_spill] sm:$0xff] }
 0x187   : > { %v12794_v40 = vshrl.u32 %v10973_v50, 16  ;;  %v12795_v27 = vshll.u32 %v10973_v50, 16  ;;  %v1721_v7 = vmul.f32 %v10899_v59, %v9909_v44 }
 0x188   : > { %v4279_v12 = vrot.slane %v12715_v23, 1  ;;  %v4280_v5 = vrot.slane %v12716_v21, 2 }
 0x189   : > { %v4283_v54 = vrot.slane %v12794_v40, 1 }
 0x18a   : > { %v11014_v10 = vor.u32 %v4280_v5, %v4279_v12 }
 0x18b   : > { %v1761_v9 = vpop.permute.xlu1 %1760 }
 0x18c   : > { %v1696_v19 = vpop.permute.xlu0 %1695  ;;  %v1790_v60 = vmul.f32 %v1761_v9, %v9940_v2  ;;  %v1791_v58 = vmul.f32 %v1761_v9, %v9942_v3  ;;  %v11031_v59 = vsel %vm2801_vm1, %v10914_v55, %v11014_v10 }
 0x18d   : > { %v1722_v17 = vmul.f32 %v1696_v19, %v9907_v43  ;;  %v1723_v39 = vmul.f32 %v1696_v19, %v9909_v44  ;;  %2691 = vmatmul.bf16.gmra.mxu0 %v12793_v1  ;;  %v4284_v19 = vrot.slane %v12795_v27, 2  ;;  %v1734_v1 = vadd.f32 %v1720_v30, %v1664_v42  ;;  %12797 = vst [vmem:[#allocation24_spill] sm:$0xff] %v11031_v59 }
 0x18e   : > { %3004 = vmatmul.bf16.gmra.mxu2 %v10747_v20  ;;  %3042 = vmatmul.bf16.gmra.mxu3 %v10785_v48  ;;  %v1792_v20 = vmul.f32 %v10924_v63, %v9940_v2  ;;  %v1793_v48 = vmul.f32 %v10924_v63, %v9942_v3  ;;  %v1735_v30 = vadd.f32 %v1721_v7, %v1665_v15 }
 0x18f   : > { %v1736_v14 = vadd.f32 %v1722_v17, %v1666_v11  ;;  %v1737_v37 = vadd.f32 %v1723_v39, %v1667_v46  ;;  %v11022_v27 = vor.u32 %v4284_v19, %v4283_v54  ;;  %v1804_v42 = vadd.f32 %v1790_v60, %v1734_v1 }
 0x190   : > { %2729 = vmatmul.bf16.gmra.mxu1 %v12796_v45  ;;  %v2260_v40 = vpop.f32.mrf.mxu0  ;;  %v2298_v17 = vpop.f32.mrf.mxu1  ;;  %v1805_v19 = vadd.f32 %v1791_v58, %v1735_v30  ;;  %v3456_v30 = vld [vmem:[#allocation2 + $0x20] sm:$0xfe] }
 0x191   : > { %v2299_v39 = vadd.f32 %v2298_v17, %v2260_v40  ;;  %v11036_v11 = vsel %vm2801_vm1, %v10932_v62, %v11022_v27  ;;  %v1806_v46 = vadd.f32 %v1792_v20, %v1736_v14  ;;  %v1807_v12 = vadd.f32 %v1793_v48, %v1737_v37  ;;  %v9171_v62 = vld [vmem:[%s12735_s29 + $0x88] sm:$0xff]  ;;  %v2434_v37 = vpop.f32.mrf.mxu2  ;;  %v2472_v58 = vpop.f32.mrf.mxu3 }
 0x192   : > { %12798 = vst [vmem:[#allocation25_spill] sm:$0xff] %v11036_v11  ;;  %v9179_v14 = vld [vmem:[%s12735_s29 + $0xc8] sm:$0xff]  ;;  %3704 = vmatpush.bf16.msra.mxu2 %v9171_v62 }
 0x193   : > { %v1836_v9 = vpop.permute.xlu1 %1835  ;;  %v2433_v60 = vadd.f32 %v2432_v0, %v2299_v39  ;;  %3742 = vmatpush.bf16.msra.mxu3 %v9179_v14  ;;  %v9139_v17 = vld [vmem:[%s12735_s29 + $0x208] sm:$0xff]  ;;  %v3457_v14 = vld [vmem:[#allocation2 + $0xe0] sm:$0xfe] }
 0x194   : > { %v1862_v5 = vmul.f32 %v1836_v9, %v9944_v6  ;;  %v1863_v63 = vmul.f32 %v1836_v9, %v9946_v8  ;;  %v1831_v54 = vpop.permute.xlu0 %1830  ;;  %3245 = vmatpush.bf16.msra.mxu0 %v9139_v17 }
 0x195   : > { %v1860_v55 = vmul.f32 %v1831_v54, %v9944_v6  ;;  %v1861_v15 = vmul.f32 %v1831_v54, %v9946_v8  ;;  %v11048_v20 = vadd.f32 %v2470_v57, %v2433_v60  ;;  %v9170_v57 = vld [vmem:[%s12735_s29 + $0x80] sm:$0xff] }
 0x196   : > { %v1876_v7 = vadd.f32 %v1862_v5, %v1806_v46  ;;  %v1877_v1 = vadd.f32 %v1863_v63, %v1807_v12  ;;  %v9178_v46 = vld [vmem:[%s12735_s29 + $0xc0] sm:$0xff]  ;;  %v9147_v12 = vld [vmem:[%s12735_s29 + $0x248] sm:$0xff]  ;;  %3705 = vmatpush.bf16.msra.mxu2 %v9170_v57 }
 0x197   : > { %v1874_v45 = vadd.f32 %v1860_v55, %v1804_v42  ;;  %v1875_v40 = vadd.f32 %v1861_v15, %v1805_v19  ;;  %12799 = vst [vmem:[#allocation44_spill] sm:$0xff] %v11048_v20  ;;  %v3460_v19 = vpack.c.bf16 %v10828_v53, %v3456_v30  ;;  %v11067_v55 = vpop.permute.xlu2 %1770  ;;  %3283 = vmatpush.bf16.msra.mxu1 %v9147_v12  ;;  %v12800_v30 = vld [vmem:[#allocation28_spill] sm:$0xff]  ;;  %v12802_v57 = vld [vmem:[#allocation29_spill] sm:$0xff] }
 0x198   : > { %v1890_v48 = vadd.f32 %v1876_v7, %v9967_v25  ;;  %v1891_v0 = vadd.f32 %v1877_v1, %v9969_v26  ;;  %v2262_v42 = vpop.f32.mrf.mxu0  ;;  %v2300_v54 = vpop.f32.mrf.mxu1  ;;  %3743 = vmatpush.bf16.msra.mxu3 %v9178_v46  ;;  %v9146_v12 = vld [vmem:[%s12735_s29 + $0x240] sm:$0xff] }
 0x199   : > { %v1888_v9 = vadd.f32 %v1874_v45, %v9967_v25  ;;  %v1889_v39 = vadd.f32 %v1875_v40, %v9969_v26  ;;  %v2301_v1 = vadd.f32 %v2300_v54, %v2262_v42  ;;  %v3461_v40 = vpack.c.bf16 %v10830_v24, %v3457_v14  ;;  %v11074_v53 = vpop.f32.mrf.mxu2 }
 0x19a   : > { %v1904_v5 = vmax.f32 %v1890_v48, 0.0  ;;  %v1905_v63 = vmax.f32 %v1891_v0, 0.0  ;;  %v3499_v48 = vshll.u32 %v3460_v19, 16  ;;  %v1585_v14 = vmul.f32 %v10962_v47, %v9897_v36 }
 0x19b   : > { %v1902_v15 = vmax.f32 %v1888_v9, 0.0  ;;  %v1903_v60 = vmax.f32 %v1889_v39, 0.0  ;;  %v1631_v7 = vpop.permute.xlu1 %1630  ;;  %v2435_v45 = vadd.f32 %v2434_v37, %v2301_v1  ;;  %v11079_v39 = vpop.f32.mrf.mxu3  ;;  %v3511_v46 = vshll.u32 %v3461_v40, 16  ;;  %3284 = vmatpush.bf16.msra.mxu1 %v9146_v12 }
 0x19c   : > { %v1566_v62 = vpop.permute.xlu0 %1565  ;;  %v1654_v42 = vmul.f32 %v1631_v7, %v9891_v33 }
 0x19d   : > { %v11070_v0 = vpack.c.bf16 %v1904_v5, %v1902_v15  ;;  %v11072_v17 = vpack.c.bf16 %v1905_v63, %v1903_v60  ;;  %2696 = vmatmul.bf16.gmra.mxu0 %v12800_v30  ;;  %v11077_v9 = vadd.f32 %v2472_v58, %v2435_v45  ;;  %v9138_v58 = vld [vmem:[%s12735_s29 + $0x200] sm:$0xff]  ;;  %v1584_v63 = vmul.f32 %v10962_v47, %v9889_v32 }
 0x19e   : > { %3009 = vmatmul.bf16.gmra.mxu2 %v10736_v51  ;;  %3047 = vmatmul.bf16.gmra.mxu3 %v10766_v18  ;;  %v1655_v51 = vmul.f32 %v1631_v7, %v9899_v38  ;;  %v3501_v18 = vrot.slane %v3499_v48, 1  ;;  %v3497_v15 = vshrl.u32 %v3460_v19, 16  ;;  %v12803_v45 = vshll.u32 %v10850_v4, 16 }
 0x19f   : > { %12801 = vst [vmem:[#allocation28_spill] sm:$0xff] %v11077_v9  ;;  %v12717_v37 = vshll.u32 %v11070_v0, 16  ;;  %v12714_v24 = vshrl.u32 %v11070_v0, 16  ;;  %3246 = vmatpush.bf16.msra.mxu0 %v9138_v58  ;;  %v3509_v30 = vshrl.u32 %v3461_v40, 16  ;;  %v1846_v19 = vpop.permute.xlu2 %1845  ;;  %v1668_v58 = vadd.f32 %v1654_v42, %v1584_v63 }
 0x1a0   : > { %2734 = vmatmul.bf16.gmra.mxu1 %v12802_v57  ;;  %v11105_v48 = vrot.slane %v12803_v45, 1  ;;  %v3513_v23 = vrot.slane %v3511_v46, 1  ;;  %v1669_v21 = vadd.f32 %v1655_v51, %v1585_v14  ;;  %v12804_v5 = vshll.u32 %v10852_v22, 16 }
 0x1a1   : > { %v4287_v60 = vrot.slane %v12714_v24, 1  ;;  %v4288_v1 = vrot.slane %v12717_v37, 2  ;;  %v3502_v37 = vor.u32 %v3501_v18, %v3497_v15  ;;  %v12805_v11 = vshrl.u32 %v11072_v17, 16  ;;  %v2439_v15 = vpop.f32.mrf.mxu2 }
 0x1a2   : > { %v11112_v47 = vrot.slane %v12804_v5, 1  ;;  %v1586_v40 = vmul.f32 %v1566_v62, %v9889_v32  ;;  %v1587_v57 = vmul.f32 %v1566_v62, %v9897_v36  ;;  %v1656_v63 = vmul.f32 %v11018_v56, %v9891_v33 }
 0x1a3   : > { %v1706_v54 = vpop.permute.xlu1 %1705  ;;  %v4291_v45 = vrot.slane %v12805_v11, 1  ;;  %v11118_v42 = vor.u32 %v4288_v1, %v4287_v60  ;;  %v1657_v46 = vmul.f32 %v11018_v56, %v9899_v38  ;;  %v12806_v18 = vshll.u32 %v11072_v17, 16  ;;  %v2477_v56 = vpop.f32.mrf.mxu3 }
 0x1a4   : > { %v1701_v7 = vpop.permute.xlu0 %1700  ;;  %v1794_v11 = vmul.f32 %v11067_v55, %v9940_v2  ;;  %v1726_v14 = vmul.f32 %v1706_v54, %v9907_v43  ;;  %v1727_v62 = vmul.f32 %v1706_v54, %v9909_v44 }
 0x1a5   : > { %v1724_v12 = vmul.f32 %v1701_v7, %v9907_v43  ;;  %v1725_v24 = vmul.f32 %v1701_v7, %v9909_v44  ;;  %v4292_v5 = vrot.slane %v12806_v18, 2  ;;  %v11133_v1 = vsel %vm2801_vm1, %v11014_v10, %v11118_v42 }
 0x1a6   : > { %12807 = vst [vmem:[#allocation29_spill] sm:$0xff] %v11133_v1  ;;  %v3507_v7 = vsel %vm2038_vm0, %v3502_v37, %v11105_v48  ;;  %v1670_v18 = vadd.f32 %v1656_v63, %v1586_v40  ;;  %v1671_v9 = vadd.f32 %v1657_v46, %v1587_v57  ;;  %v1866_v46 = vmul.f32 %v1846_v19, %v9944_v6 }
 0x1a7   : > { %v1738_v59 = vadd.f32 %v1724_v12, %v1668_v58  ;;  %v1739_v51 = vadd.f32 %v1725_v24, %v1669_v21  ;;  %v1795_v21 = vmul.f32 %v11067_v55, %v9942_v3  ;;  %v3514_v58 = vor.u32 %v3513_v23, %v3509_v30 }
 0x1a8   : > { %v11139_v12 = vor.u32 %v4292_v5, %v4291_v45  ;;  %v1740_v37 = vadd.f32 %v1726_v14, %v1670_v18  ;;  %v1741_v23 = vadd.f32 %v1727_v62, %v1671_v9  ;;  %v11155_v5 = vpop.permute.xlu2 %1640 }
 0x1a9   : > { %v2265_v60 = vpop.f32.mrf.mxu0  ;;  %v2303_v24 = vpop.f32.mrf.mxu1  ;;  %v1808_v20 = vadd.f32 %v1794_v11, %v1738_v59  ;;  %v1809_v35 = vadd.f32 %v1795_v21, %v1739_v51  ;;  %v3519_v63 = vsel %vm2038_vm0, %v3514_v58, %v11112_v47  ;;  %v1867_v51 = vmul.f32 %v1846_v19, %v9946_v8 }
 0x1aa   : > { %v2304_v16 = vadd.f32 %v2303_v24, %v2265_v60  ;;  %v11146_v55 = vsel %vm2801_vm1, %v11022_v27, %v11139_v12 }
 0x1ab   : > { %v1841_v54 = vpop.permute.xlu1 %1840 }
 0x1ac   : > { %v1864_v10 = vmul.f32 %v1841_v54, %v9944_v6  ;;  %v1865_v1 = vmul.f32 %v1841_v54, %v9946_v8  ;;  %v1776_v49 = vpop.permute.xlu0 %1775  ;;  %v2438_v40 = vadd.f32 %v11074_v53, %v2304_v16  ;;  %v9201_v16 = vld [vmem:[%s12735_s29 + $0x178] sm:$0xff] }
 0x1ad   : > { %v1796_v30 = vmul.f32 %v1776_v49, %v9940_v2  ;;  %v1797_v57 = vmul.f32 %v1776_v49, %v9942_v3  ;;  %2701 = vmatmul.bf16.gmra.mxu0 %v10757_v29  ;;  %v11170_v29 = vpop.f32.mrf.mxu2  ;;  %4166 = vmatpush.bf16.msrb.mxu3 %v9201_v16 }
 0x1ae   : > { %v1878_v45 = vadd.f32 %v1864_v10, %v1808_v20  ;;  %v1879_v59 = vadd.f32 %v1865_v1, %v1809_v35  ;;  %3706 = vmatmul.bf16.vlgmr.msra.gmra.mxu2 %v3507_v7  ;;  %3744 = vmatmul.bf16.vlgmr.msra.gmra.mxu3 %v3519_v63  ;;  %v9193_v35 = vld [vmem:[%s12735_s29 + $0x138] sm:$0xff]  ;;  %v11167_v20 = vadd.f32 %v11079_v39, %v2438_v40  ;;  %v11172_v1 = vpop.f32.mrf.mxu3  ;;  %v9200_v40 = vld [vmem:[%s12735_s29 + $0x170] sm:$0xff] }
 0x1af   : > { %v1810_v27 = vadd.f32 %v1796_v30, %v1740_v37  ;;  %v1811_v11 = vadd.f32 %v1797_v57, %v1741_v23  ;;  %4128 = vmatpush.bf16.msrb.mxu2 %v9193_v35  ;;  %v9161_v37 = vld [vmem:[%s12735_s29 + $0x38] sm:$0xff]  ;;  %v9160_v63 = vld [vmem:[%s12735_s29 + $0x30] sm:$0xff]  ;;  %v12809_v35 = vshll.u32 %v10973_v50, 16 }
 0x1b0   : > { %v1892_v9 = vadd.f32 %v1878_v45, %v9967_v25  ;;  %v1893_v49 = vadd.f32 %v1879_v59, %v9969_v26  ;;  %2739 = vmatmul.bf16.gmra.mxu1 %v10776_v28  ;;  %v9169_v23 = vld [vmem:[%s12735_s29 + $0x78] sm:$0xff]  ;;  %3870 = vmatpush.bf16.msrb.mxu0 %v9161_v37  ;;  %v11190_v59 = vpop.permute.xlu2 %1715 }
 0x1b1   : > { %v1880_v53 = vadd.f32 %v1866_v46, %v1810_v27  ;;  %v1881_v19 = vadd.f32 %v1867_v51, %v1811_v11  ;;  %v2267_v14 = vpop.f32.mrf.mxu0  ;;  %v2305_v21 = vpop.f32.mrf.mxu1  ;;  %3908 = vmatpush.bf16.msrb.mxu1 %v9169_v23  ;;  %v11214_v16 = vrot.slane %v12809_v35, 1  ;;  %4167 = vmatpush.bf16.msrb.mxu3 %v9200_v40 }
 0x1b2   : > { %v1906_v62 = vmax.f32 %v1892_v9, 0.0  ;;  %v1907_v60 = vmax.f32 %v1893_v49, 0.0  ;;  %v2306_v58 = vadd.f32 %v2305_v21, %v2267_v14  ;;  %v12808_v9 = vshll.u32 %v10960_v41, 16 }
 0x1b3   : > { %v1894_v24 = vadd.f32 %v1880_v53, %v9967_v25  ;;  %v1895_v7 = vadd.f32 %v1881_v19, %v9969_v26  ;;  %v11176_v39 = vpop.permute.xlu1 %1575 }
 0x1b4   : > { %v1571_v18 = vpop.permute.xlu0 %1570  ;;  %v2440_v10 = vadd.f32 %v2439_v15, %v2306_v58  ;;  %v9192_v15 = vld [vmem:[%s12735_s29 + $0x130] sm:$0xff]  ;;  %v11210_v49 = vrot.slane %v12808_v9, 1  ;;  %3871 = vmatpush.bf16.msrb.mxu0 %v9160_v63  ;;  %v12811_v58 = vshrl.u32 %v10852_v22, 16  ;;  %v9199_v9 = vld [vmem:[%s12735_s29 + $0x168] sm:$0xff] }
 0x1b5   : > { %v1908_v54 = vmax.f32 %v1894_v24, 0.0  ;;  %v1909_v28 = vmax.f32 %v1895_v7, 0.0  ;;  %v11206_v27 = vpop.f32.mrf.mxu2  ;;  %4129 = vmatpush.bf16.msrb.mxu2 %v9192_v15  ;;  %v12810_v24 = vshrl.u32 %v10850_v4, 16  ;;  %4168 = vmatpush.bf16.msrb.mxu3 %v9199_v9 }
 0x1b6   : > { %v11188_v45 = vadd.f32 %v2477_v56, %v2440_v10  ;;  %v9168_v56 = vld [vmem:[%s12735_s29 + $0x70] sm:$0xff]  ;;  %v11216_v53 = vpop.f32.mrf.mxu3  ;;  %v1589_v10 = vmul.f32 %v1571_v18, %v9897_v36 }
 0x1b7   : > { %v11184_v30 = vpack.c.bf16 %v1908_v54, %v1906_v62  ;;  %v11186_v57 = vpack.c.bf16 %v1909_v28, %v1907_v60  ;;  %3909 = vmatpush.bf16.msrb.mxu1 %v9168_v56  ;;  %v3522_v7 = vor.u32 %v12810_v24, %v11105_v48  ;;  %v3530_v54 = vor.u32 %v12811_v58, %v11112_v47  ;;  %v9191_v56 = vld [vmem:[%s12735_s29 + $0x128] sm:$0xff] }
 0x1b8   : > { %v1588_v28 = vmul.f32 %v1571_v18, %v9889_v32  ;;  %v1658_v18 = vmul.f32 %v11155_v5, %v9891_v33  ;;  %v1590_v58 = vmul.f32 %v11176_v39, %v9889_v32  ;;  %v1730_v32 = vmul.f32 %v11190_v59, %v9907_v43 }
 0x1b9   : > { %v3556_v46 = vshll.u32 %v11184_v30, 16  ;;  %v3568_v51 = vshrl.u32 %v11184_v30, 16  ;;  %v3564_v14 = vshll.u32 %v11186_v57, 16  ;;  %v3576_v62 = vshrl.u32 %v11186_v57, 16  ;;  %4130 = vmatpush.bf16.msrb.mxu2 %v9191_v56 }
 0x1ba   : > { %v3527_v37 = vsel %vm2038_vm0, %v3522_v7, %v11210_v49  ;;  %v3535_v23 = vsel %vm2038_vm0, %v3530_v54, %v11214_v16 }
 0x1bb   : > { %v1711_v11 = vpop.permute.xlu1 %1710  ;;  %v4295_v60 = vrot.slane %v3568_v51, 1  ;;  %v4296_v21 = vrot.slane %v3556_v46, 2  ;;  %v4299_v48 = vrot.slane %v3576_v62, 1  ;;  %v4300_v47 = vrot.slane %v3564_v14, 2 }
 0x1bc   : > { %v1646_v19 = vpop.permute.xlu0 %1645  ;;  %v1728_v40 = vmul.f32 %v1711_v11, %v9907_v43  ;;  %v1729_v63 = vmul.f32 %v1711_v11, %v9909_v44 }
 0x1bd   : > { %2706 = vmatmul.bf16.gmra.mxu0 %v10733_v34  ;;  %v11237_v15 = vor.u32 %v4296_v21, %v4295_v60  ;;  %v1659_v34 = vmul.f32 %v11155_v5, %v9899_v38  ;;  %v1660_v35 = vmul.f32 %v1646_v19, %v9891_v33  ;;  %v1661_v60 = vmul.f32 %v1646_v19, %v9899_v38 }
 0x1be   : > { %3711 = vmatmul.bf16.gmra.mxu2 %v3527_v37  ;;  %3749 = vmatmul.bf16.gmra.mxu3 %v3535_v23  ;;  %v11263_v11 = vor.u32 %v4300_v47, %v4299_v48  ;;  %v1672_v21 = vadd.f32 %v1658_v18, %v1588_v28  ;;  %v1591_v33 = vmul.f32 %v11176_v39, %v9897_v36  ;;  %v9159_v39 = vld [vmem:[%s12735_s29 + $0x28] sm:$0xff] }
 0x1bf   : > { %v11261_v5 = vsel %vm2801_vm1, %v11118_v42, %v11237_v15  ;;  %v1673_v24 = vadd.f32 %v1659_v34, %v1589_v10  ;;  %v1674_v48 = vadd.f32 %v1660_v35, %v1590_v58  ;;  %3872 = vmatpush.bf16.msrb.mxu0 %v9159_v39 }
 0x1c0   : > { %2744 = vmatmul.bf16.gmra.mxu1 %v10759_v61  ;;  %v1851_v61 = vpop.permute.xlu2 %1850  ;;  %v11265_v7 = vpop.f32.mrf.mxu2  ;;  %v11276_v42 = vsel %vm2801_vm1, %v11139_v12, %v11263_v11  ;;  %v1742_v54 = vadd.f32 %v1728_v40, %v1672_v21  ;;  %v1675_v36 = vadd.f32 %v1661_v60, %v1591_v33  ;;  %v9167_v12 = vld [vmem:[%s12735_s29 + $0x68] sm:$0xff] }
 0x1c1   : > { %v11271_v19 = vpop.f32.mrf.mxu3  ;;  %v1743_v28 = vadd.f32 %v1729_v63, %v1673_v24  ;;  %v1868_v47 = vmul.f32 %v1851_v61, %v9944_v6  ;;  %v1869_v18 = vmul.f32 %v1851_v61, %v9946_v8  ;;  %v1731_v63 = vmul.f32 %v11190_v59, %v9909_v44  ;;  %3910 = vmatpush.bf16.msrb.mxu1 %v9167_v12 }
 0x1c2   : > { %v1744_v60 = vadd.f32 %v1730_v32, %v1674_v48  ;;  %v12812_v24 = vshll.u32 %v11070_v0, 16  ;;  %v12813_v61 = vshll.u32 %v11072_v17, 16 }
 0x1c3   : > { %v1786_v10 = vpop.permute.xlu1 %1785  ;;  %v1745_v21 = vadd.f32 %v1731_v63, %v1675_v36 }
 0x1c4   : > { %v1781_v38 = vpop.permute.xlu0 %1780  ;;  %v1800_v43 = vmul.f32 %v1786_v10, %v9940_v2  ;;  %v1801_v56 = vmul.f32 %v1786_v10, %v9942_v3  ;;  %v3542_v58 = vrot.slane %v12812_v24, 1  ;;  %v3550_v33 = vrot.slane %v12813_v61, 1 }
 0x1c5   : > { %v1798_v37 = vmul.f32 %v1781_v38, %v9940_v2  ;;  %v1799_v23 = vmul.f32 %v1781_v38, %v9942_v3  ;;  %v12814_v10 = vshrl.u32 %v10960_v41, 16 }
 0x1c6   : > { %v1814_v2 = vadd.f32 %v1800_v43, %v1744_v60  ;;  %v9198_v60 = vld [vmem:[%s12735_s29 + $0x160] sm:$0xff] }
 0x1c7   : > { %v1812_v34 = vadd.f32 %v1798_v37, %v1742_v54  ;;  %v1813_v40 = vadd.f32 %v1799_v23, %v1743_v28  ;;  %v1815_v54 = vadd.f32 %v1801_v56, %v1745_v21  ;;  %v3538_v37 = vor.u32 %v12814_v10, %v11210_v49  ;;  %v9158_v21 = vld [vmem:[%s12735_s29 + $0x20] sm:$0xff]  ;;  %4169 = vmatpush.bf16.msrb.mxu3 %v9198_v60 }
 0x1c8   : > { %v2449_v59 = vpop.f32.mrf.mxu2  ;;  %v12815_v23 = vshrl.u32 %v10973_v50, 16  ;;  %3873 = vmatpush.bf16.msrb.mxu0 %v9158_v21 }
 0x1c9   : > { %v1882_v9 = vadd.f32 %v1868_v47, %v1812_v34  ;;  %v1883_v35 = vadd.f32 %v1869_v18, %v1813_v40  ;;  %v2487_v47 = vpop.f32.mrf.mxu3  ;;  %v3543_v34 = vsel %vm2038_vm0, %v3538_v37, %v3542_v58  ;;  %v11347_v37 = vrot.slane %v3556_v46, 1 }
 0x1ca   : > { %v2270_v3 = vpop.f32.mrf.mxu0  ;;  %v3546_v32 = vor.u32 %v12815_v23, %v11214_v16  ;;  %v12816_v16 = vld [vmem:[#allocation19_spill] sm:$0xff]  ;;  %v11351_v23 = vrot.slane %v3564_v14, 1 }
 0x1cb   : > { %v1896_v38 = vadd.f32 %v1882_v9, %v9967_v25  ;;  %v1897_v44 = vadd.f32 %v1883_v35, %v9969_v26  ;;  %v12817_v9 = vld [vmem:[#allocation20_spill] sm:$0xff]  ;;  %v9190_v35 = vld [vmem:[%s12735_s29 + $0x120] sm:$0xff] }
 0x1cc   : > { %v1856_v28 = vpop.permute.xlu0 %1855  ;;  %v3551_v40 = vsel %vm2038_vm0, %v3546_v32, %v3550_v33  ;;  %4131 = vmatpush.bf16.msrb.mxu2 %v9190_v35 }
 0x1cd   : > { %v11306_v48 = vmax.f32 %v1896_v38, 0.0  ;;  %v11308_v36 = vmax.f32 %v1897_v44, 0.0  ;;  %v1870_v39 = vmul.f32 %v1856_v28, %v9944_v6  ;;  %v1871_v12 = vmul.f32 %v1856_v28, %v9946_v8  ;;  %v2308_v18 = vpop.f32.mrf.mxu1  ;;  %3247 = vmatmul.bf16.vlgmr.msra.gmra.mxu0 %v12816_v16  ;;  %v9189_v28 = vld [vmem:[%s12735_s29 + $0x118] sm:$0xff] }
 0x1ce   : > { %v2309_v49 = vadd.f32 %v2308_v18, %v2270_v3  ;;  %3716 = vmatmul.bf16.gmra.mxu2 %v3543_v34  ;;  %3754 = vmatmul.bf16.gmra.mxu3 %v3551_v40  ;;  %v12819_v18 = vshrl.u32 %v11072_v17, 16 }
 0x1cf   : > { %1924 = vst [vmem:[#allocation2 + $0x18] sm:$0xff] %v11306_v48  ;;  %v1884_v63 = vadd.f32 %v1870_v39, %v1814_v2  ;;  %v1885_v43 = vadd.f32 %v1871_v12, %v1815_v54  ;;  %v12818_v12 = vshrl.u32 %v11070_v0, 16 }
 0x1d0   : > { %1925 = vst [vmem:[#allocation2 + $0x150] sm:$0xff] %v11308_v36  ;;  %v2443_v6 = vadd.f32 %v11170_v29, %v2309_v49  ;;  %3285 = vmatmul.bf16.vlgmr.msra.gmra.mxu1 %v12817_v9  ;;  %v2985_v24 = vpop.f32.mrf.mxu2  ;;  %4132 = vmatpush.bf16.msrb.mxu2 %v9189_v28  ;;  %v3562_v34 = vor.u32 %v12819_v18, %v3550_v33  ;;  %v12821_v33 = vld [vmem:[#allocation23_spill] sm:$0xff] }
 0x1d1   : > { %v1898_v8 = vadd.f32 %v1884_v63, %v9967_v25  ;;  %v1899_v56 = vadd.f32 %v1885_v43, %v9969_v26  ;;  %v9166_v25 = vld [vmem:[%s12735_s29 + $0x60] sm:$0xff]  ;;  %v3023_v44 = vpop.f32.mrf.mxu3  ;;  %v3554_v47 = vor.u32 %v12818_v12, %v3542_v58  ;;  %v9196_v12 = vld [vmem:[%s12735_s29 + $0x150] sm:$0xff] }
 0x1d2   : > { %v11334_v61 = vadd.f32 %v11172_v1, %v2443_v6  ;;  %v2272_v38 = vpop.f32.mrf.mxu0  ;;  %3911 = vmatpush.bf16.msrb.mxu1 %v9166_v25  ;;  %v11336_v2 = vadd.f32 %v3023_v44, %v2985_v24  ;;  %v9197_v1 = vld [vmem:[%s12735_s29 + $0x158] sm:$0xff]  ;;  %v12820_v63 = vld [vmem:[#allocation22_spill] sm:$0xff] }
 0x1d3   : > { %v1912_v29 = vmax.f32 %v1898_v8, 0.0  ;;  %v1913_v26 = vmax.f32 %v1899_v56, 0.0  ;;  %4170 = vmatpush.bf16.msrb.mxu3 %v9197_v1  ;;  %v3559_v14 = vsel %vm2038_vm0, %v3554_v47, %v11347_v37  ;;  %v9157_v8 = vld [vmem:[%s12735_s29 + $0x18] sm:$0xff]  ;;  %v9156_v47 = vld [vmem:[%s12735_s29 + $0x10] sm:$0xff] }
 0x1d4   : > { %v9165_v56 = vld [vmem:[%s12735_s29 + $0x58] sm:$0xff]  ;;  %3874 = vmatpush.bf16.msrb.mxu0 %v9157_v8  ;;  %v3578_v8 = vor.u32 %v3576_v62, %v11351_v23  ;;  %v12824_v62 = vld [vmem:[#allocation38_spill] sm:$0xff] }
 0x1d5   : > { %1926 = vst [vmem:[#allocation2 + $0xa8] sm:$0xf] %v1912_v29  ;;  %v2310_v59 = vpop.f32.mrf.mxu1 }
 0x1d6   : > { %1927 = vst [vmem:[#allocation2 + $0x30] sm:$0xf] %v1913_v26  ;;  %v2311_v54 = vadd.f32 %v2310_v59, %v2272_v38  ;;  %3912 = vmatpush.bf16.msrb.mxu1 %v9165_v56 }
 0x1d7   : > { %4171 = vmatpush.bf16.msrb.mxu3 %v9196_v12 }
 0x1d8   : > { %v2445_v3 = vadd.f32 %v11206_v27, %v2311_v54  ;;  %v2987_v10 = vpop.f32.mrf.mxu2  ;;  %3875 = vmatpush.bf16.msrb.mxu0 %v9156_v47 }
 0x1d9   : > { %v3025_v39 = vpop.f32.mrf.mxu3 }
 0x1da   : > { %v11354_v27 = vadd.f32 %v11216_v53, %v2445_v3  ;;  %v2275_v32 = vpop.f32.mrf.mxu0  ;;  %v11360_v46 = vadd.f32 %v3025_v39, %v2987_v10  ;;  %v3567_v53 = vsel %vm2038_vm0, %v3562_v34, %v11351_v23 }
 0x1dc   : > { %v3458_v43 = vld [vmem:[#allocation2 + $0xa8] sm:$0x1] }
 0x1dd   : > { %v2313_v40 = vpop.f32.mrf.mxu1  ;;  %3252 = vmatmul.bf16.gmra.mxu0 %v12820_v63  ;;  %v4217_v16 = vld [vmem:[#allocation2 + $0xa8] sm:$0x7]  ;;  %v3459_v58 = vld [vmem:[#allocation2 + $0x30] sm:$0x1]  ;;  %v11376_v9 = vpack.c.bf16 %v3458_v43, %v11306_v48 }
 0x1de   : > { %v2314_v49 = vadd.f32 %v2313_v40, %v2275_v32  ;;  %3721 = vmatmul.bf16.gmra.mxu2 %v3559_v14  ;;  %3759 = vmatmul.bf16.gmra.mxu3 %v3567_v53  ;;  %v4221_v35 = vpack.c.bf16 %v4217_v16, %v11306_v48  ;;  %v4218_v60 = vld [vmem:[#allocation2 + $0x30] sm:$0x7]  ;;  %v11380_v25 = vpack.c.bf16 %v3459_v58, %v11308_v36 }
 0x1df   : > { %v4222_v44 = vpack.c.bf16 %v4218_v60, %v11308_v36  ;;  %v3572_v3 = vshll.u32 %v11376_v9, 16  ;;  %v12822_v60 = vld [vmem:[#allocation40_spill] sm:$0xff] }
 0x1e0   : > { %v2448_v6 = vadd.f32 %v11265_v7, %v2314_v49  ;;  %3290 = vmatmul.bf16.gmra.mxu1 %v12821_v33  ;;  %v4304_v26 = vshrl.u32 %v4221_v35, 16  ;;  %v4307_v38 = vshll.u32 %v4221_v35, 16  ;;  %v3580_v1 = vshll.u32 %v11380_v25, 16  ;;  %v9164_v49 = vld [vmem:[%s12735_s29 + $0x50] sm:$0xff] }
 0x1e1   : > { %v2990_v21 = vpop.f32.mrf.mxu2  ;;  %v3028_v24 = vpop.f32.mrf.mxu3  ;;  %v4313_v32 = vshrl.u32 %v4222_v44, 16  ;;  %v4316_v39 = vshll.u32 %v4222_v44, 16  ;;  %v3574_v14 = vrot.slane %v3572_v3, 1  ;;  %3913 = vmatpush.bf16.msrb.mxu1 %v9164_v49  ;;  %v3570_v33 = vor.u32 %v3568_v51, %v11347_v37  ;;  %v9163_v49 = vld [vmem:[%s12735_s29 + $0x48] sm:$0xff] }
 0x1e2   : > { %v11383_v7 = vadd.f32 %v11271_v19, %v2448_v6  ;;  %v2277_v29 = vpop.f32.mrf.mxu0  ;;  %v11386_v54 = vadd.f32 %v3028_v24, %v2990_v21  ;;  %v4306_v28 = vrot.slane %v4304_v26, 1  ;;  %v4309_v10 = vrot.slane %v4307_v38, 2  ;;  %v9188_v19 = vld [vmem:[%s12735_s29 + $0x110] sm:$0xff]  ;;  %v12823_v26 = vld [vmem:[#allocation26_spill] sm:$0xff] }
 0x1e3   : > { %v4315_v34 = vrot.slane %v4313_v32, 1  ;;  %v4318_v40 = vrot.slane %v4316_v39, 2  ;;  %v3582_v53 = vrot.slane %v3580_v1, 1  ;;  %4133 = vmatpush.bf16.msrb.mxu2 %v9188_v19  ;;  %v2291_v21 = vadd.f32 %v12822_v60, %v10848_v31  ;;  %v12825_v24 = vld [vmem:[#allocation27_spill] sm:$0xff]  ;;  %v12827_v39 = vld [vmem:[#allocation41_spill] sm:$0xff] }
 0x1e4   : > { %v11399_v18 = vor.u32 %v4309_v10, %v4306_v28  ;;  %v3575_v51 = vsel %vm2038_vm0, %v3570_v33, %v3574_v14  ;;  %v9195_v31 = vld [vmem:[%s12735_s29 + $0x148] sm:$0xff]  ;;  %v3584_v33 = vshrl.u32 %v11376_v9, 16 }
 0x1e5   : > { %v2315_v59 = vpop.f32.mrf.mxu1  ;;  %v11409_v16 = vor.u32 %v4318_v40, %v4315_v34  ;;  %v3583_v37 = vsel %vm2038_vm0, %v3578_v8, %v3582_v53  ;;  %v12826_v38 = vld [vmem:[#allocation39_spill] sm:$0xff]  ;;  %4172 = vmatpush.bf16.msrb.mxu3 %v9195_v31  ;;  %v9186_v34 = vld [vmem:[%s12735_s29 + $0x100] sm:$0xff]  ;;  %v3587_v8 = vshrl.u32 %v11380_v25, 16  ;;  %3914 = vmatpush.bf16.msrb.mxu1 %v9163_v49 }
 0x1e6   : > { %v11407_v43 = vsel %vm2801_vm1, %v11237_v15, %v11399_v18  ;;  %v2425_v44 = vadd.f32 %v12826_v38, %v2291_v21  ;;  %v9194_v40 = vld [vmem:[%s12735_s29 + $0x140] sm:$0xff] }
 0x1e7   : > { %v11420_v56 = vsel %vm2801_vm1, %v11263_v11, %v11409_v16  ;;  %v9187_v11 = vld [vmem:[%s12735_s29 + $0x108] sm:$0xff]  ;;  %v9154_v25 = vld [vmem:[%s12735_s29] sm:$0xff] }
 0x1e8   : > { %4134 = vmatpush.bf16.msrb.mxu2 %v9187_v11  ;;  %v2463_v19 = vadd.f32 %v12827_v39, %v2425_v44  ;;  %v3946_v38 = vld [vmem:[#allocation2 + $0x20] sm:$0xfc]  ;;  %v12832_v39 = vld [vmem:[#allocation21_spill] sm:$0xff] }
 0x1e9   : > { %v2992_v63 = vpop.f32.mrf.mxu2  ;;  %v3030_v6 = vpop.f32.mrf.mxu3  ;;  %4173 = vmatpush.bf16.msrb.mxu3 %v9194_v40  ;;  %v9225_v40 = vld [vmem:[%s12735_s29 + $0x238] sm:$0xff] }
 0x1ea   : > { %v2682_v58 = vpop.f32.mrf.mxu0  ;;  %v11422_v35 = vadd.f32 %v3030_v6, %v2992_v63 }
 0x1ec   : > { %4135 = vmatpush.bf16.msrb.mxu2 %v9186_v34 }
 0x1ed   : > { %v2720_v15 = vpop.f32.mrf.mxu1  ;;  %3257 = vmatmul.bf16.gmra.mxu0 %v12823_v26  ;;  %v3589_v26 = vor.u32 %v3587_v8, %v3582_v53  ;;  %v12831_v53 = vld [vmem:[#allocation32_spill] sm:$0xff]  ;;  %v4002_v8 = vrot.slane %v10852_v22, 1 }
 0x1ee   : > { %v2721_v29 = vadd.f32 %v2720_v15, %v2682_v58  ;;  %3726 = vmatmul.bf16.gmra.mxu2 %v3575_v51  ;;  %3764 = vmatmul.bf16.gmra.mxu3 %v3583_v37  ;;  %v2296_v51 = vadd.f32 %v10981_v13, %v10978_v52 }
 0x1f0   : > { %v2749_v23 = vadd.f32 %v2721_v29, %v12824_v62  ;;  %3295 = vmatmul.bf16.gmra.mxu1 %v12825_v24  ;;  %v3586_v29 = vor.u32 %v3584_v33, %v3574_v14  ;;  %v12828_v62 = vld [vmem:[#allocation31_spill] sm:$0xff]  ;;  %v9162_v14 = vld [vmem:[%s12735_s29 + $0x40] sm:$0xff]  ;;  %v2430_v24 = vadd.f32 %v12831_v53, %v2296_v51  ;;  %4690 = vmatpush.bf16.msra.mxu2 %v9225_v40  ;;  %v9217_v53 = vld [vmem:[%s12735_s29 + $0x1f8] sm:$0xff]  ;;  %v4004_v40 = vrot.slane %v10960_v41, 1 }
 0x1f1   : > { %v2995_v59 = vpop.f32.mrf.mxu2  ;;  %v3033_v1 = vpop.f32.mrf.mxu3  ;;  %3915 = vmatpush.bf16.msrb.mxu1 %v9162_v14  ;;  %v12835_v14 = vld [vmem:[#allocation37_spill] sm:$0xff] }
 0x1f2   : > { %v11439_v3 = vadd.f32 %v11336_v2, %v2749_v23  ;;  %v2684_v28 = vpop.f32.mrf.mxu0  ;;  %v11441_v32 = vadd.f32 %v3033_v1, %v2995_v59  ;;  %v9155_v2 = vld [vmem:[%s12735_s29 + $0x8] sm:$0xff]  ;;  %v12830_v23 = vld [vmem:[#allocation33_spill] sm:$0xff] }
 0x1f3   : > { %3876 = vmatpush.bf16.msrb.mxu0 %v9155_v2  ;;  %v9233_v2 = vld [vmem:[%s12735_s29 + $0x278] sm:$0xff] }
 0x1f4   : > { %4728 = vmatpush.bf16.msra.mxu3 %v9233_v2  ;;  %v4006_v2 = vrot.slane %v10973_v50, 1 }
 0x1f5   : > { %v2722_v10 = vpop.f32.mrf.mxu1  ;;  %4467 = vmatpush.bf16.msra.mxu1 %v9217_v53 }
 0x1f6   : > { %v2723_v12 = vadd.f32 %v2722_v10, %v2684_v28  ;;  %v11480_v28 = vld [vmem:[#allocation2 + $0xf0] sm:$0xff]  ;;  %v3947_v10 = vld [vmem:[#allocation2 + $0xe0] sm:$0xfc] }
 0x1f7   : > { %3877 = vmatpush.bf16.msrb.mxu0 %v9154_v25  ;;  %v3950_v1 = vpack.c.bf16 %v11480_v28, %v3946_v38 }
 0x1f8   : > { %v2750_v47 = vadd.f32 %v2723_v12, %v2463_v19  ;;  %v2468_v19 = vadd.f32 %v12832_v39, %v2430_v24 }
 0x1f9   : > { %v2997_v63 = vpop.f32.mrf.mxu2  ;;  %v3035_v15 = vpop.f32.mrf.mxu3  ;;  %v3998_v49 = vrot.slane %v3950_v1, 1 }
 0x1fa   : > { %v11457_v58 = vadd.f32 %v11360_v46, %v2750_v47  ;;  %v2687_v6 = vpop.f32.mrf.mxu0  ;;  %v11461_v21 = vadd.f32 %v3035_v15, %v2997_v63  ;;  %v12829_v46 = vld [vmem:[#allocation42_spill] sm:$0xff]  ;;  %v11484_v47 = vld [vmem:[#allocation2 + $0x158] sm:$0xff] }
 0x1fb   : > { %v3951_v34 = vpack.c.bf16 %v11484_v47, %v3947_v10  ;;  %v12836_v10 = vld [vmem:[#allocation28_spill] sm:$0xff] }
 0x1fd   : > { %v2725_v60 = vpop.f32.mrf.mxu1  ;;  %3262 = vmatmul.bf16.gmra.mxu0 %v12828_v62  ;;  %v4001_v33 = vrot.slane %v3951_v34, 1  ;;  %v12833_v62 = vld [vmem:[#allocation36_spill] sm:$0xff] }
 0x1fe   : > { %v2726_v37 = vadd.f32 %v2725_v60, %v2687_v6  ;;  %3731 = vmatmul.bf16.gmra.mxu2 %v3586_v29  ;;  %3769 = vmatmul.bf16.gmra.mxu3 %v3589_v26  ;;  %v3999_v6 = vrot.slane %v10850_v4, 1  ;;  %v9216_v34 = vld [vmem:[%s12735_s29 + $0x1f0] sm:$0xff] }
 0x1ff   : > { %4468 = vmatpush.bf16.msra.mxu1 %v9216_v34 }
 0x200   : > { %v2751_v9 = vadd.f32 %v2726_v37, %v12829_v46  ;;  %3300 = vmatmul.bf16.gmra.mxu1 %v12830_v23  ;;  %v4000_v46 = vsel %vm2542_vm2, %v3998_v49, %v3999_v6  ;;  %v12834_v23 = vld [vmem:[#allocation44_spill] sm:$0xff] }
 0x201   : > { %v3000_v52 = vpop.f32.mrf.mxu2  ;;  %v3038_v31 = vpop.f32.mrf.mxu3 }
 0x202   : > { %v11476_v13 = vadd.f32 %v11386_v54, %v2751_v9  ;;  %v2689_v11 = vpop.f32.mrf.mxu0  ;;  %v11478_v59 = vadd.f32 %v3038_v31, %v3000_v52  ;;  %v4003_v9 = vsel %vm2542_vm2, %v4001_v33, %v4002_v8 }
 0x205   : > { %v2727_v44 = vpop.f32.mrf.mxu1 }
 0x206   : > { %v2728_v12 = vadd.f32 %v2727_v44, %v2689_v11 }
 0x208   : > { %v2752_v54 = vadd.f32 %v2728_v12, %v2468_v19  ;;  %v9224_v19 = vld [vmem:[%s12735_s29 + $0x230] sm:$0xff] }
 0x209   : > { %v3002_v63 = vpop.f32.mrf.mxu2  ;;  %v3040_v29 = vpop.f32.mrf.mxu3  ;;  %v9232_v12 = vld [vmem:[%s12735_s29 + $0x270] sm:$0xff]  ;;  %4691 = vmatpush.bf16.msra.mxu2 %v9224_v19 }
 0x20a   : > { %v11496_v15 = vadd.f32 %v11422_v35, %v2752_v54  ;;  %v2692_v60 = vpop.f32.mrf.mxu0  ;;  %v11498_v51 = vadd.f32 %v3040_v29, %v3002_v63  ;;  %v9209_v35 = vld [vmem:[%s12735_s29 + $0x1b8] sm:$0xff]  ;;  %4729 = vmatpush.bf16.msra.mxu3 %v9232_v12  ;;  %v3390_v12 = vld [vmem:[#allocation2 + $0x20] sm:$0xff] }
 0x20b   : > { %4429 = vmatpush.bf16.msra.mxu0 %v9209_v35 }
 0x20d   : > { %v2730_v26 = vpop.f32.mrf.mxu1  ;;  %3267 = vmatmul.bf16.gmra.mxu0 %v12833_v62  ;;  %v4005_v62 = vsel %vm2542_vm2, %v3999_v6, %v4004_v40 }
 0x20e   : > { %v2731_v37 = vadd.f32 %v2730_v26, %v2692_v60  ;;  %4136 = vmatmul.bf16.vlgmr.msrb.gmra.mxu2 %v4000_v46  ;;  %4174 = vmatmul.bf16.vlgmr.msrb.gmra.mxu3 %v4003_v9  ;;  %v4007_v46 = vsel %vm2542_vm2, %v4002_v8, %v4006_v2 }
 0x210   : > { %v2753_v25 = vadd.f32 %v2731_v37, %v12834_v23  ;;  %3305 = vmatmul.bf16.gmra.mxu1 %v12835_v14  ;;  %v12837_v37 = vld [vmem:[#allocation34_spill] sm:$0xff]  ;;  %v12838_v23 = vld [vmem:[#allocation35_spill] sm:$0xff] }
 0x211   : > { %v3005_v24 = vpop.f32.mrf.mxu2  ;;  %v3043_v31 = vpop.f32.mrf.mxu3 }
 0x212   : > { %v11512_v52 = vadd.f32 %v11441_v32, %v2753_v25  ;;  %v2694_v11 = vpop.f32.mrf.mxu0  ;;  %v11514_v44 = vadd.f32 %v3043_v31, %v3005_v24  ;;  %v9208_v32 = vld [vmem:[%s12735_s29 + $0x1b0] sm:$0xff]  ;;  %v9231_v25 = vld [vmem:[%s12735_s29 + $0x268] sm:$0xff] }
 0x213   : > { %4430 = vmatpush.bf16.msra.mxu0 %v9208_v32  ;;  %4730 = vmatpush.bf16.msra.mxu3 %v9231_v25  ;;  %v9207_v24 = vld [vmem:[%s12735_s29 + $0x1a8] sm:$0xff]  ;;  %v3412_v32 = vpack.c.bf16 %v11480_v28, %v3390_v12 }
 0x214   : > { %v3948_v12 = vld [vmem:[#allocation2 + $0xa8] sm:$0x3] }
 0x215   : > { %v2732_v38 = vpop.f32.mrf.mxu1 }
 0x216   : > { %v2733_v1 = vadd.f32 %v2732_v38, %v2694_v11  ;;  %v9215_v11 = vld [vmem:[%s12735_s29 + $0x1e8] sm:$0xff] }
 0x217   : > { %4431 = vmatpush.bf16.msra.mxu0 %v9207_v24  ;;  %4469 = vmatpush.bf16.msra.mxu1 %v9215_v11 }
 0x218   : > { %v2754_v39 = vadd.f32 %v2733_v1, %v12836_v10  ;;  %v4010_v10 = vrot.slane %v11072_v17, 1 }
 0x219   : > { %v3007_v54 = vpop.f32.mrf.mxu2  ;;  %v3045_v33 = vpop.f32.mrf.mxu3 }
 0x21a   : > { %v11532_v49 = vadd.f32 %v11461_v21, %v2754_v39  ;;  %v2697_v63 = vpop.f32.mrf.mxu0  ;;  %v3046_v29 = vadd.f32 %v3045_v33, %v3007_v54  ;;  %v9223_v21 = vld [vmem:[%s12735_s29 + $0x228] sm:$0xff] }
 0x21b   : > { %4692 = vmatpush.bf16.msra.mxu2 %v9223_v21 }
 0x21d   : > { %v2735_v60 = vpop.f32.mrf.mxu1  ;;  %3272 = vmatmul.bf16.gmra.mxu0 %v12837_v37 }
 0x21e   : > { %v2736_v26 = vadd.f32 %v2735_v60, %v2697_v63  ;;  %4141 = vmatmul.bf16.gmra.mxu2 %v4005_v62  ;;  %4179 = vmatmul.bf16.gmra.mxu3 %v4007_v46  ;;  %v3391_v63 = vld [vmem:[#allocation2 + $0xe0] sm:$0xff] }
 0x21f   : > { %v3413_v60 = vpack.c.bf16 %v11484_v47, %v3391_v63 }
 0x220   : > { %v2755_v9 = vadd.f32 %v2736_v26, %v11167_v20  ;;  %3310 = vmatmul.bf16.gmra.mxu1 %v12838_v23  ;;  %v4011_v26 = vsel %vm2542_vm2, %v4006_v2, %v4010_v10  ;;  %v4012_v2 = vrot.slane %v11184_v30, 1 }
 0x221   : > { %v3010_v14 = vpop.f32.mrf.mxu2  ;;  %v3048_v35 = vpop.f32.mrf.mxu3 }
 0x222   : > { %v11546_v6 = vadd.f32 %v11478_v59, %v2755_v9  ;;  %v2699_v8 = vpop.f32.mrf.mxu0  ;;  %v3049_v20 = vadd.f32 %v3048_v35, %v3010_v14  ;;  %v4008_v59 = vrot.slane %v11070_v0, 1 }
 0x225   : > { %v2737_v53 = vpop.f32.mrf.mxu1 }
 0x226   : > { %v2738_v31 = vadd.f32 %v2737_v53, %v2699_v8  ;;  %v4014_v8 = vrot.slane %v11186_v57, 1 }
 0x228   : > { %v2756_v38 = vadd.f32 %v2738_v31, %v11188_v45  ;;  %v4009_v45 = vsel %vm2542_vm2, %v4004_v40, %v4008_v59  ;;  %v4013_v31 = vsel %vm2542_vm2, %v4008_v59, %v4012_v2  ;;  %v9222_v59 = vld [vmem:[%s12735_s29 + $0x220] sm:$0xff] }
 0x229   : > { %v3012_v1 = vpop.f32.mrf.mxu2  ;;  %v3050_v34 = vpop.f32.mrf.mxu3  ;;  %4693 = vmatpush.bf16.msra.mxu2 %v9222_v59  ;;  %v9213_v59 = vld [vmem:[%s12735_s29 + $0x1d8] sm:$0xff] }
 0x22a   : > { %v11558_v39 = vadd.f32 %v11498_v51, %v2756_v38  ;;  %v2702_v19 = vpop.f32.mrf.mxu0  ;;  %v4015_v38 = vsel %vm2542_vm2, %v4010_v10, %v4014_v8  ;;  %v3952_v10 = vpack.c.bf16 %v3948_v12, %v11306_v48 }
 0x22d   : > { %v2740_v54 = vpop.f32.mrf.mxu1  ;;  %3878 = vmatmul.bf16.vlgmr.msrb.gmra.mxu0 %v3412_v32  ;;  %v3949_v32 = vld [vmem:[#allocation2 + $0x30] sm:$0x3] }
 0x22e   : > { %v2741_v33 = vadd.f32 %v2740_v54, %v2702_v19  ;;  %4146 = vmatmul.bf16.gmra.mxu2 %v4009_v45  ;;  %4184 = vmatmul.bf16.gmra.mxu3 %v4011_v26  ;;  %v4016_v26 = vrot.slane %v3952_v10, 1  ;;  %v9220_v10 = vld [vmem:[%s12735_s29 + $0x210] sm:$0xff] }
 0x230   : > { %v2757_v51 = vadd.f32 %v2741_v33, %v11334_v61  ;;  %3916 = vmatmul.bf16.vlgmr.msrb.gmra.mxu1 %v3413_v60  ;;  %v3953_v33 = vpack.c.bf16 %v3949_v32, %v11308_v36  ;;  %v9214_v60 = vld [vmem:[%s12735_s29 + $0x1e0] sm:$0xff] }
 0x231   : > { %v3707_v37 = vpop.f32.mrf.mxu2  ;;  %v3745_v9 = vpop.f32.mrf.mxu3  ;;  %4470 = vmatpush.bf16.msra.mxu1 %v9214_v60 }
 0x232   : > { %v11566_v62 = vadd.f32 %v11514_v44, %v2757_v51  ;;  %v2704_v46 = vpop.f32.mrf.mxu0  ;;  %v11568_v21 = vadd.f32 %v3745_v9, %v3707_v37  ;;  %v4018_v51 = vrot.slane %v3953_v33, 1  ;;  %v9228_v33 = vld [vmem:[%s12735_s29 + $0x250] sm:$0xff] }
 0x235   : > { %v2742_v23 = vpop.f32.mrf.mxu1  ;;  %4471 = vmatpush.bf16.msra.mxu1 %v9213_v59 }
 0x236   : > { %v2743_v25 = vadd.f32 %v2742_v23, %v2704_v46 }
 0x238   : > { %v2758_v14 = vadd.f32 %v2743_v25, %v11354_v27 }
 0x239   : > { %v3709_v40 = vpop.f32.mrf.mxu2  ;;  %v3747_v53 = vpop.f32.mrf.mxu3 }
 0x23a   : > { %v11573_v35 = vadd.f32 %v3046_v29, %v2758_v14  ;;  %v2707_v61 = vpop.f32.mrf.mxu0  ;;  %v11575_v44 = vadd.f32 %v3747_v53, %v3709_v40  ;;  %v11605_v14 = vld [vmem:[%s12839_s4] ss:$0 sm:$0xff]  ;;  %v4017_v40 = vsel %vm2542_vm2, %v4012_v2, %v4016_v26  ;;  %v9221_v53 = vld [vmem:[%s12735_s29 + $0x218] sm:$0xff] }
 0x23b   : > { %4694 = vmatpush.bf16.msra.mxu2 %v9221_v53 }
 0x23d   : > { %v2745_v24 = vpop.f32.mrf.mxu1  ;;  %3883 = vmatmul.bf16.gmra.mxu0 %v10850_v4 }
 0x23e   : > { %v2746_v11 = vadd.f32 %v2745_v24, %v2707_v61  ;;  %4151 = vmatmul.bf16.gmra.mxu2 %v4013_v31  ;;  %4189 = vmatmul.bf16.gmra.mxu3 %v4015_v38  ;;  %v4019_v61 = vsel %vm2542_vm2, %v4014_v8, %v4018_v51  ;;  %v9229_v24 = vld [vmem:[%s12735_s29 + $0x258] sm:$0xff]  ;;  %v11622_v8 = vld [vmem:[%s12840_s5] ss:$0 sm:$0xff] }
 0x23f   : > { %4695 = vmatpush.bf16.msra.mxu2 %v9220_v10 }
 0x240   : > { %v2759_v27 = vadd.f32 %v2746_v11, %v11383_v7  ;;  %3921 = vmatmul.bf16.gmra.mxu1 %v10852_v22  ;;  %v9230_v7 = vld [vmem:[%s12735_s29 + $0x260] sm:$0xff] }
 0x241   : > { %v3712_v29 = vpop.f32.mrf.mxu2  ;;  %v3750_v34 = vpop.f32.mrf.mxu3  ;;  %4731 = vmatpush.bf16.msra.mxu3 %v9230_v7 }
 0x242   : > { %v11582_v1 = vadd.f32 %v3049_v20, %v2759_v27  ;;  %v2709_v19 = vpop.f32.mrf.mxu0  ;;  %v11584_v63 = vadd.f32 %v3750_v34, %v3712_v29  ;;  %v9206_v20 = vld [vmem:[%s12735_s29 + $0x1a0] sm:$0xff] }
 0x243   : > { %4432 = vmatpush.bf16.msra.mxu0 %v9206_v20  ;;  %v11627_v29 = vld [vmem:[%s12675_s6] ss:$0 sm:$0xff] }
 0x245   : > { %v2747_v54 = vpop.f32.mrf.mxu1  ;;  %4732 = vmatpush.bf16.msra.mxu3 %v9229_v24  ;;  %v9227_v24 = vld [vmem:[%s12735_s29 + $0x248] sm:$0xff] }
 0x246   : > { %v9205_v54 = vld [vmem:[%s12735_s29 + $0x198] sm:$0xff] }
 0x247   : > { %4433 = vmatpush.bf16.msra.mxu0 %v9205_v54  ;;  %v9226_v54 = vld [vmem:[%s12735_s29 + $0x240] sm:$0xff] }
 0x249   : > { %v3714_v45 = vpop.f32.mrf.mxu2  ;;  %v3752_v46 = vpop.f32.mrf.mxu3  ;;  %4733 = vmatpush.bf16.msra.mxu3 %v9228_v33 }
 0x24a   : > { %v3248_v37 = vpop.f32.mrf.mxu0  ;;  %v11600_v23 = vadd.f32 %v3752_v46, %v3714_v45 }
 0x24d   : > { %v3286_v9 = vpop.f32.mrf.mxu1  ;;  %3888 = vmatmul.bf16.gmra.mxu0 %v10960_v41  ;;  %4734 = vmatpush.bf16.msra.mxu3 %v9227_v24 }
 0x24e   : > { %v3287_v25 = vadd.f32 %v3286_v9, %v3248_v37  ;;  %4156 = vmatmul.bf16.gmra.mxu2 %v4017_v40  ;;  %4194 = vmatmul.bf16.gmra.mxu3 %v4019_v61  ;;  %v9219_v40 = vld [vmem:[%s12735_s29 + $0x208] sm:$0xff] }
 0x24f   : > { %4696 = vmatpush.bf16.msra.mxu2 %v9219_v40 }
 0x250   : > { %v3315_v11 = vadd.f32 %v3287_v25, %v11439_v3  ;;  %3926 = vmatmul.bf16.gmra.mxu1 %v10973_v50 }
 0x251   : > { %v3717_v31 = vpop.f32.mrf.mxu2  ;;  %v3755_v3 = vpop.f32.mrf.mxu3  ;;  %4735 = vmatpush.bf16.msra.mxu3 %v9226_v54 }
 0x252   : > { %v3329_v2 = vadd.f32 %v11605_v14, %v3315_v11  ;;  %v3250_v38 = vpop.f32.mrf.mxu0  ;;  %v11629_v12 = vadd.f32 %v3755_v3, %v3717_v31 }
 0x254   : > { %v3340_v27 = vmax.f32 %v3329_v2, 0.0 }
 0x255   : > { %v3288_v19 = vpop.f32.mrf.mxu1 }
 0x256   : > { %v3354_v32 = vmul.f32 %v11622_v8, %v3340_v27  ;;  %v3289_v34 = vadd.f32 %v3288_v19, %v3250_v38  ;;  %v9204_v38 = vld [vmem:[%s12735_s29 + $0x190] sm:$0xff] }
 0x257   : > { %v9212_v27 = vld [vmem:[%s12735_s29 + $0x1d0] sm:$0xff]  ;;  %4434 = vmatpush.bf16.msra.mxu0 %v9204_v38 }
 0x258   : > { %v3368_v7 = vadd.f32 %v11627_v29, %v3354_v32  ;;  %v3316_v20 = vadd.f32 %v3289_v34, %v11457_v58  ;;  %v9218_v34 = vld [vmem:[%s12735_s29 + $0x200] sm:$0xff]  ;;  %4472 = vmatpush.bf16.msra.mxu1 %v9212_v27  ;;  %v4561_v27 = vrot.slane %v10850_v4, 2 }
 0x259   : > { %v3719_v37 = vpop.f32.mrf.mxu2  ;;  %v3757_v58 = vpop.f32.mrf.mxu3  ;;  %4697 = vmatpush.bf16.msra.mxu2 %v9218_v34 }
 0x25a   : > { %v4833_v60 = vrot.slane %v3368_v7, 4  ;;  %v3330_v45 = vadd.f32 %v11605_v14, %v3316_v20  ;;  %v3253_v46 = vpop.f32.mrf.mxu0  ;;  %v11650_v53 = vadd.f32 %v3757_v58, %v3719_v37 }
 0x25c   : > { %v4834_v9 = vmax.f32 %v3368_v7, %v4833_v60  ;;  %v3341_v25 = vmax.f32 %v3330_v45, 0.0  ;;  %v4516_v45 = vld [vmem:[#allocation2 + $0x20] sm:$0xf0] }
 0x25d   : > { %v3291_v61 = vpop.f32.mrf.mxu1  ;;  %3893 = vmatmul.bf16.gmra.mxu0 %v11070_v0 }
 0x25e   : > { %v4835_v11 = vrot.slane %v4834_v9, 2  ;;  %v3355_v2 = vmul.f32 %v11622_v8, %v3341_v25  ;;  %v3292_v31 = vadd.f32 %v3291_v61, %v3253_v46  ;;  %4161 = vmatmul.bf16.gmra.mxu2 %v4016_v26  ;;  %4199 = vmatmul.bf16.gmra.mxu3 %v4018_v51  ;;  %v4517_v25 = vld [vmem:[#allocation2 + $0xe0] sm:$0xf0] }
 0x25f   : > { %v4521_v24 = vpack.c.bf16 %v11484_v47, %v4517_v25 }
 0x260   : > { %v4836_v3 = vmax.f32 %v4834_v9, %v4835_v11  ;;  %v3369_v19 = vadd.f32 %v11627_v29, %v3355_v2  ;;  %v3317_v32 = vadd.f32 %v3292_v31, %v11476_v13  ;;  %3931 = vmatmul.bf16.gmra.mxu1 %v11072_v17  ;;  %v4520_v9 = vpack.c.bf16 %v11480_v28, %v4516_v45  ;;  %v9203_v45 = vld [vmem:[%s12735_s29 + $0x188] sm:$0xff] }
 0x261   : > { %v3722_v7 = vpop.f32.mrf.mxu2  ;;  %v3760_v60 = vpop.f32.mrf.mxu3  ;;  %v4563_v54 = vrot.slane %v4521_v24, 2  ;;  %4435 = vmatpush.bf16.msra.mxu0 %v9203_v45 }
 0x262   : > { %v4837_v26 = vrot.slane %v4836_v3, 1  ;;  %v4841_v51 = vrot.slane %v3369_v19, 4  ;;  %v3331_v59 = vadd.f32 %v11605_v14, %v3317_v32  ;;  %v3255_v13 = vpop.f32.mrf.mxu0  ;;  %v11673_v46 = vadd.f32 %v3760_v60, %v3722_v7 }
 0x263   : > { %v4560_v38 = vrot.slane %v4520_v9, 2 }
 0x264   : > { %v4838_v20 = vmax.f32 %v4836_v3, %v4837_v26  ;;  %v4842_v10 = vmax.f32 %v3369_v19, %v4841_v51  ;;  %v3342_v33 = vmax.f32 %v3331_v59, 0.0  ;;  %v4564_v3 = vrot.slane %v10852_v22, 2 }
 0x265   : > { %v3293_v37 = vpop.f32.mrf.mxu1 }
 0x266   : > { %4839 = vst [vmem:[#allocation4] sm:$0x1] %v4838_v20  ;;  %v4843_v58 = vrot.slane %v4842_v10, 2  ;;  %v3356_v40 = vmul.f32 %v11622_v8, %v3342_v33  ;;  %v3294_v61 = vadd.f32 %v3293_v37, %v3255_v13  ;;  %v9211_v37 = vld [vmem:[%s12735_s29 + $0x1c8] sm:$0xff]  ;;  %v4565_v9 = vsel %vm3108_vm3, %v4563_v54, %v4564_v3 }
 0x267   : > { %4473 = vmatpush.bf16.msra.mxu1 %v9211_v37 }
 0x268   : > { %v4844_v11 = vmax.f32 %v4842_v10, %v4843_v58  ;;  %v3370_v2 = vadd.f32 %v11627_v29, %v3356_v40  ;;  %v3318_v31 = vadd.f32 %v3294_v61, %v11496_v15  ;;  %v4562_v15 = vsel %vm3108_vm3, %v4560_v38, %v4561_v27 }
 0x269   : > { %v3724_v34 = vpop.f32.mrf.mxu2  ;;  %v3762_v7 = vpop.f32.mrf.mxu3 }
 0x26a   : > { %v4845_v19 = vrot.slane %v4844_v11, 1  ;;  %v4849_v28 = vrot.slane %v3370_v2, 4  ;;  %v3332_v32 = vadd.f32 %v11605_v14, %v3318_v31  ;;  %v3258_v26 = vpop.f32.mrf.mxu0  ;;  %v11683_v20 = vadd.f32 %v3762_v7, %v3724_v34 }
 0x26c   : > { %v4846_v51 = vmax.f32 %v4844_v11, %v4845_v19  ;;  %v4850_v59 = vmax.f32 %v3370_v2, %v4849_v28  ;;  %v3343_v47 = vmax.f32 %v3332_v32, 0.0 }
 0x26d   : > { %v3296_v13 = vpop.f32.mrf.mxu1  ;;  %3898 = vmatmul.bf16.gmra.mxu0 %v11184_v30 }
 0x26e   : > { %4847 = vst [vmem:[#allocation4 + $0x1] sm:$0x1] %v4846_v51  ;;  %v4851_v10 = vrot.slane %v4850_v59, 2  ;;  %v3357_v33 = vmul.f32 %v11622_v8, %v3343_v47  ;;  %v3297_v60 = vadd.f32 %v3296_v13, %v3258_v26  ;;  %4698 = vmatmul.bf16.vlgmr.msra.gmra.mxu2 %v4562_v15  ;;  %4736 = vmatmul.bf16.vlgmr.msra.gmra.mxu3 %v4565_v9  ;;  %v9210_v47 = vld [vmem:[%s12735_s29 + $0x1c0] sm:$0xff] }
 0x26f   : > { %4474 = vmatpush.bf16.msra.mxu1 %v9210_v47 }
 0x270   : > { %v4852_v25 = vmax.f32 %v4850_v59, %v4851_v10  ;;  %v3371_v58 = vadd.f32 %v11627_v29, %v3357_v33  ;;  %v3319_v40 = vadd.f32 %v3297_v60, %v11512_v52  ;;  %3936 = vmatmul.bf16.gmra.mxu1 %v11186_v57  ;;  %v9202_v59 = vld [vmem:[%s12735_s29 + $0x180] sm:$0xff]  ;;  %v4566_v10 = vrot.slane %v10960_v41, 2 }
 0x271   : > { %v3727_v2 = vpop.f32.mrf.mxu2  ;;  %v3765_v32 = vpop.f32.mrf.mxu3  ;;  %4436 = vmatpush.bf16.msra.mxu0 %v9202_v59  ;;  %v4568_v33 = vrot.slane %v10973_v50, 2 }
 0x272   : > { %v4853_v61 = vrot.slane %v4852_v25, 1  ;;  %v4857_v24 = vrot.slane %v3371_v58, 4  ;;  %v3333_v11 = vadd.f32 %v11605_v14, %v3319_v40  ;;  %v3260_v31 = vpop.f32.mrf.mxu0  ;;  %v11703_v54 = vadd.f32 %v3765_v32, %v3727_v2 }
 0x273   : > { %v4567_v41 = vsel %vm3108_vm3, %v4561_v27, %v4566_v10 }
 0x274   : > { %v4854_v38 = vmax.f32 %v4852_v25, %v4853_v61  ;;  %v4858_v19 = vmax.f32 %v3371_v58, %v4857_v24  ;;  %v3344_v28 = vmax.f32 %v3333_v11, 0.0  ;;  %v3422_v24 = vpack.c.bf16 %v11306_v48, %v11306_v48 }
 0x275   : > { %v3298_v34 = vpop.f32.mrf.mxu1  ;;  %v3423_v48 = vpack.c.bf16 %v11308_v36, %v11308_v36 }
 0x276   : > { %4855 = vst [vmem:[#allocation4 + $0x2] sm:$0x1] %v4854_v38  ;;  %v4859_v26 = vrot.slane %v4858_v19, 2  ;;  %v3358_v52 = vmul.f32 %v11622_v8, %v3344_v28  ;;  %v3299_v51 = vadd.f32 %v3298_v34, %v3260_v31  ;;  %v4569_v31 = vsel %vm3108_vm3, %v4564_v3, %v4568_v33 }
 0x278   : > { %v4860_v7 = vmax.f32 %v4858_v19, %v4859_v26  ;;  %v3372_v13 = vadd.f32 %v11627_v29, %v3358_v52  ;;  %v3320_v15 = vadd.f32 %v3299_v51, %v11532_v49 }
 0x279   : > { %v3729_v9 = vpop.f32.mrf.mxu2  ;;  %v3767_v11 = vpop.f32.mrf.mxu3 }
 0x27a   : > { %v4861_v60 = vrot.slane %v4860_v7, 1  ;;  %v4865_v45 = vrot.slane %v3372_v13, 4  ;;  %v3334_v37 = vadd.f32 %v11605_v14, %v3320_v15  ;;  %v3263_v25 = vpop.f32.mrf.mxu0  ;;  %v11719_v2 = vadd.f32 %v3767_v11, %v3729_v9 }
 0x27b   : > { %v4572_v11 = vrot.slane %v11072_v17, 2 }
 0x27c   : > { %v4862_v58 = vmax.f32 %v4860_v7, %v4861_v60  ;;  %v4866_v40 = vmax.f32 %v3372_v13, %v4865_v45  ;;  %v3345_v61 = vmax.f32 %v3334_v37, 0.0 }
 0x27d   : > { %v3301_v49 = vpop.f32.mrf.mxu1  ;;  %3903 = vmatmul.bf16.gmra.mxu0 %v3422_v24 }
 0x27e   : > { %4863 = vst [vmem:[#allocation4 + $0x3] sm:$0x1] %v4862_v58  ;;  %v4867_v38 = vrot.slane %v4866_v40, 2  ;;  %v3359_v19 = vmul.f32 %v11622_v8, %v3345_v61  ;;  %v3302_v28 = vadd.f32 %v3301_v49, %v3263_v25  ;;  %4703 = vmatmul.bf16.gmra.mxu2 %v4567_v41  ;;  %4741 = vmatmul.bf16.gmra.mxu3 %v4569_v31  ;;  %v4570_v25 = vrot.slane %v11070_v0, 2 }
 0x280   : > { %v4868_v4 = vmax.f32 %v4866_v40, %v4867_v38  ;;  %v3373_v27 = vadd.f32 %v11627_v29, %v3359_v19  ;;  %v3321_v32 = vadd.f32 %v3302_v28, %v11546_v6  ;;  %3941 = vmatmul.bf16.gmra.mxu1 %v3423_v48  ;;  %v4571_v48 = vsel %vm3108_vm3, %v4566_v10, %v4570_v25 }
 0x281   : > { %v3732_v26 = vpop.f32.mrf.mxu2  ;;  %v3770_v7 = vpop.f32.mrf.mxu3 }
 0x282   : > { %v4869_v22 = vrot.slane %v4868_v4, 1  ;;  %v4873_v34 = vrot.slane %v3373_v27, 4  ;;  %v3335_v3 = vadd.f32 %v11605_v14, %v3321_v32  ;;  %v3265_v52 = vpop.f32.mrf.mxu0  ;;  %v11735_v36 = vadd.f32 %v3770_v7, %v3732_v26 }
 0x283   : > { %v4573_v32 = vsel %vm3108_vm3, %v4568_v33, %v4572_v11 }
 0x284   : > { %v4870_v51 = vmax.f32 %v4868_v4, %v4869_v22  ;;  %v4874_v59 = vmax.f32 %v3373_v27, %v4873_v34  ;;  %v3346_v47 = vmax.f32 %v3335_v3, 0.0  ;;  %v12841_v27 = vld [vmem:[#allocation43_spill] sm:$0xff]  ;;  %v12842_v3 = vld [vmem:[#allocation30_spill] sm:$0xff] }
 0x285   : > { %v3303_v13 = vpop.f32.mrf.mxu1 }
 0x286   : > { %4871 = vst [vmem:[#allocation4 + $0x4] sm:$0x1] %v4870_v51  ;;  %v4875_v15 = vrot.slane %v4874_v59, 2  ;;  %v3360_v60 = vmul.f32 %v11622_v8, %v3346_v47  ;;  %v3304_v45 = vadd.f32 %v3303_v13, %v3265_v52 }
 0x288   : > { %v4876_v6 = vmax.f32 %v4874_v59, %v4875_v15  ;;  %v3374_v37 = vadd.f32 %v11627_v29, %v3360_v60  ;;  %v3322_v9 = vadd.f32 %v3304_v45, %v11558_v39 }
 0x289   : > { %v3734_v24 = vpop.f32.mrf.mxu2  ;;  %v3772_v19 = vpop.f32.mrf.mxu3 }
 0x28a   : > { %v4877_v58 = vrot.slane %v4876_v6, 1  ;;  %v4881_v40 = vrot.slane %v3374_v37, 4  ;;  %v3336_v61 = vadd.f32 %v11605_v14, %v3322_v9  ;;  %v3268_v49 = vpop.f32.mrf.mxu0 }
 0x28c   : > { %v4878_v41 = vmax.f32 %v4876_v6, %v4877_v58  ;;  %v4882_v31 = vmax.f32 %v3374_v37, %v4881_v40  ;;  %v3347_v38 = vmax.f32 %v3336_v61, 0.0  ;;  %v4574_v58 = vrot.slane %v11184_v30, 2 }
 0x28d   : > { %v3306_v28 = vpop.f32.mrf.mxu1  ;;  %4437 = vmatmul.bf16.vlgmr.msra.gmra.mxu0 %v12841_v27 }
 0x28e   : > { %4879 = vst [vmem:[#allocation4 + $0x5] sm:$0x1] %v4878_v41  ;;  %v4883_v4 = vrot.slane %v4882_v31, 2  ;;  %v3361_v39 = vmul.f32 %v11622_v8, %v3347_v38  ;;  %v3307_v0 = vadd.f32 %v3306_v28, %v3268_v49  ;;  %4708 = vmatmul.bf16.gmra.mxu2 %v4571_v48  ;;  %4746 = vmatmul.bf16.gmra.mxu3 %v4573_v32  ;;  %v4576_v41 = vrot.slane %v11186_v57, 2  ;;  %v12843_v32 = vld [vmem:[#allocation24_spill] sm:$0xff] }
 0x290   : > { %v4884_v17 = vmax.f32 %v4882_v31, %v4883_v4  ;;  %v3375_v22 = vadd.f32 %v11627_v29, %v3361_v39  ;;  %v3323_v34 = vadd.f32 %v3307_v0, %v11566_v62  ;;  %4475 = vmatmul.bf16.vlgmr.msra.gmra.mxu1 %v12842_v3  ;;  %v4577_v57 = vsel %vm3108_vm3, %v4572_v11, %v4576_v41  ;;  %v12844_v3 = vld [vmem:[#allocation25_spill] sm:$0xff] }
 0x291   : > { %v4137_v51 = vpop.f32.mrf.mxu2  ;;  %v4175_v13 = vpop.f32.mrf.mxu3 }
 0x292   : > { %v4885_v10 = vrot.slane %v4884_v17, 1  ;;  %v4889_v26 = vrot.slane %v3375_v22, 4  ;;  %v3337_v52 = vadd.f32 %v11605_v14, %v3323_v34  ;;  %v3270_v59 = vpop.f32.mrf.mxu0  ;;  %v11753_v15 = vadd.f32 %v4175_v13, %v4137_v51 }
 0x294   : > { %v4886_v47 = vmax.f32 %v4884_v17, %v4885_v10  ;;  %v4890_v7 = vmax.f32 %v3375_v22, %v4889_v26  ;;  %v3348_v50 = vmax.f32 %v3337_v52, 0.0 }
 0x295   : > { %v3308_v33 = vpop.f32.mrf.mxu1 }
 0x296   : > { %4887 = vst [vmem:[#allocation4 + $0x6] sm:$0x1] %v4886_v47  ;;  %v4891_v60 = vrot.slane %v4890_v7, 2  ;;  %v3362_v45 = vmul.f32 %v11622_v8, %v3348_v50  ;;  %v3309_v62 = vadd.f32 %v3308_v33, %v3270_v59  ;;  %v4518_v59 = vld [vmem:[#allocation2 + $0xa8] sm:$0xf] }
 0x297   : > { %v4519_v47 = vld [vmem:[#allocation2 + $0x30] sm:$0xf] }
 0x298   : > { %v4892_v6 = vmax.f32 %v4890_v7, %v4891_v60  ;;  %v3376_v37 = vadd.f32 %v11627_v29, %v3362_v45  ;;  %v3324_v9 = vadd.f32 %v3309_v62, %v11573_v35  ;;  %v4575_v35 = vsel %vm3108_vm3, %v4570_v25, %v4574_v58  ;;  %v9503_v62 = vld [vmem:[#allocation2 + $0x18] sm:$0xff] }
 0x299   : > { %v11760_v49 = vpop.f32.mrf.mxu2  ;;  %v11763_v48 = vpop.f32.mrf.mxu3 }
 0x29a   : > { %v4893_v40 = vrot.slane %v4892_v6, 1  ;;  %v4897_v61 = vrot.slane %v3376_v37, 4  ;;  %v3338_v24 = vadd.f32 %v11605_v14, %v3324_v9  ;;  %v3273_v31 = vpop.f32.mrf.mxu0 }
 0x29c   : > { %v4894_v38 = vmax.f32 %v4892_v6, %v4893_v40  ;;  %v4898_v19 = vmax.f32 %v3376_v37, %v4897_v61  ;;  %v3349_v28 = vmax.f32 %v3338_v24, 0.0  ;;  %v4522_v6 = vpack.c.bf16 %v4518_v59, %v9503_v62  ;;  %v9504_v37 = vld [vmem:[#allocation2 + $0x150] sm:$0xff] }
 0x29d   : > { %v3311_v4 = vpop.f32.mrf.mxu1  ;;  %4442 = vmatmul.bf16.gmra.mxu0 %v12843_v32  ;;  %v4523_v9 = vpack.c.bf16 %v4519_v47, %v9504_v37 }
 0x29e   : > { %4895 = vst [vmem:[#allocation4 + $0x7] sm:$0x1] %v4894_v38  ;;  %v4899_v39 = vrot.slane %v4898_v19, 2  ;;  %v3363_v0 = vmul.f32 %v11622_v8, %v3349_v28  ;;  %v3312_v27 = vadd.f32 %v3311_v4, %v3273_v31  ;;  %4713 = vmatmul.bf16.gmra.mxu2 %v4575_v35  ;;  %4751 = vmatmul.bf16.gmra.mxu3 %v4577_v57 }
 0x29f   : > { %v4580_v28 = vrot.slane %v4523_v9, 2 }
 0x2a0   : > { %v4900_v17 = vmax.f32 %v4898_v19, %v4899_v39  ;;  %v3377_v22 = vadd.f32 %v11627_v29, %v3363_v0  ;;  %v3325_v34 = vadd.f32 %v3312_v27, %v11582_v1  ;;  %4480 = vmatmul.bf16.gmra.mxu1 %v12844_v3  ;;  %v4578_v19 = vrot.slane %v4522_v6, 2 }
 0x2a1   : > { %v4142_v52 = vpop.f32.mrf.mxu2  ;;  %v4180_v13 = vpop.f32.mrf.mxu3  ;;  %v4581_v3 = vsel %vm3108_vm3, %v4576_v41, %v4580_v28 }
 0x2a2   : > { %v4901_v10 = vrot.slane %v4900_v17, 1  ;;  %v4905_v25 = vrot.slane %v3377_v22, 4  ;;  %v3339_v26 = vadd.f32 %v11605_v14, %v3325_v34  ;;  %v3275_v51 = vpop.f32.mrf.mxu0  ;;  %v4181_v60 = vadd.f32 %v4180_v13, %v4142_v52 }
 0x2a3   : > { %v4579_v34 = vsel %vm3108_vm3, %v4574_v58, %v4578_v19 }
 0x2a4   : > { %v4902_v7 = vmax.f32 %v4900_v17, %v4901_v10  ;;  %v4906_v50 = vmax.f32 %v3377_v22, %v4905_v25  ;;  %v3350_v11 = vmax.f32 %v3339_v26, 0.0  ;;  %v12845_v22 = vld [vmem:[#allocation29_spill] sm:$0xff] }
 0x2a5   : > { %v3313_v33 = vpop.f32.mrf.mxu1 }
 0x2a6   : > { %4903 = vst [vmem:[#allocation4 + $0x8] sm:$0x1] %v4902_v7  ;;  %v4907_v45 = vrot.slane %v4906_v50, 2  ;;  %v3364_v1 = vmul.f32 %v11622_v8, %v3350_v11 }
 0x2a8   : > { %v4908_v40 = vmax.f32 %v4906_v50, %v4907_v45  ;;  %v3378_v61 = vadd.f32 %v11627_v29, %v3364_v1 }
 0x2a9   : > { %v11777_v38 = vpop.f32.mrf.mxu2  ;;  %v11780_v27 = vpop.f32.mrf.mxu3 }
 0x2aa   : > { %v4909_v24 = vrot.slane %v4908_v40, 1  ;;  %v4913_v31 = vrot.slane %v3378_v61, 4  ;;  %v3879_v4 = vpop.f32.mrf.mxu0 }
 0x2ab   : > { %v3880_v0 = vadd.f32 %v3879_v4, %v11568_v21 }
 0x2ac   : > { %v4910_v35 = vmax.f32 %v4908_v40, %v4909_v24  ;;  %v4914_v39 = vmax.f32 %v3378_v61, %v4913_v31 }
 0x2ad   : > { %v3917_v32 = vpop.f32.mrf.mxu1  ;;  %4447 = vmatmul.bf16.gmra.mxu0 %v12845_v22 }
 0x2ae   : > { %4911 = vst [vmem:[#allocation4 + $0x9] sm:$0x1] %v4910_v35  ;;  %v4915_v57 = vrot.slane %v4914_v39, 2  ;;  %v3918_v17 = vadd.f32 %v3917_v32, %v3880_v0  ;;  %4718 = vmatmul.bf16.gmra.mxu2 %v4579_v34  ;;  %4756 = vmatmul.bf16.gmra.mxu3 %v4581_v3  ;;  %v9240_v32 = vld [vmem:[%s12676_s7 + $0x30] sm:$0xff]  ;;  %v9265_v3 = vld [vmem:[%s12676_s7 + $0xf8] sm:$0xff] }
 0x2af   : > { %5411 = vmatpush.bf16.msrb.mxu3 %v9265_v3  ;;  %v9264_v3 = vld [vmem:[%s12676_s7 + $0xf0] sm:$0xff] }
 0x2b0   : > { %v4916_v10 = vmax.f32 %v4914_v39, %v4915_v57  ;;  %v11788_v25 = vadd.f32 %v11753_v15, %v3918_v17  ;;  %4485 = vmatmul.bf16.gmra.mxu1 %v11146_v55 }
 0x2b1   : > { %v4147_v26 = vpop.f32.mrf.mxu2  ;;  %v4185_v59 = vpop.f32.mrf.mxu3 }
 0x2b2   : > { %v4917_v21 = vrot.slane %v4916_v10, 1  ;;  %v11791_v52 = vpop.f32.mrf.mxu0  ;;  %v4186_v30 = vadd.f32 %v4185_v59, %v4147_v26 }
 0x2b3   : > { %5412 = vmatpush.bf16.msrb.mxu3 %v9264_v3 }
 0x2b4   : > { %v4918_v51 = vmax.f32 %v4916_v10, %v4917_v21  ;;  %v9249_v10 = vld [vmem:[%s12676_s7 + $0x78] sm:$0xff] }
 0x2b5   : > { %v11793_v47 = vpop.f32.mrf.mxu1  ;;  %5375 = vmatpush.bf16.msrb.mxu1 %v9249_v10  ;;  %v9248_v10 = vld [vmem:[%s12676_s7 + $0x70] sm:$0xff] }
 0x2b6   : > { %4919 = vst [vmem:[#allocation4 + $0xa] sm:$0x1] %v4918_v51 }
 0x2b9   : > { %v11795_v58 = vpop.f32.mrf.mxu2  ;;  %v11798_v50 = vpop.f32.mrf.mxu3  ;;  %5376 = vmatpush.bf16.msrb.mxu1 %v9248_v10 }
 0x2ba   : > { %v3884_v41 = vpop.f32.mrf.mxu0 }
 0x2bb   : > { %v3885_v7 = vadd.f32 %v3884_v41, %v11584_v63 }
 0x2bd   : > { %v3922_v15 = vpop.f32.mrf.mxu1  ;;  %4452 = vmatmul.bf16.gmra.mxu0 %v11261_v5 }
 0x2be   : > { %v3923_v11 = vadd.f32 %v3922_v15, %v3885_v7  ;;  %4723 = vmatmul.bf16.gmra.mxu2 %v4578_v19  ;;  %4761 = vmatmul.bf16.gmra.mxu3 %v4580_v28 }
 0x2c0   : > { %v11801_v55 = vadd.f32 %v4181_v60, %v3923_v11  ;;  %4490 = vmatmul.bf16.gmra.mxu1 %v11276_v42  ;;  %v9241_v42 = vld [vmem:[%s12676_s7 + $0x38] sm:$0xff] }
 0x2c1   : > { %v4152_v13 = vpop.f32.mrf.mxu2  ;;  %v4190_v45 = vpop.f32.mrf.mxu3  ;;  %5357 = vmatpush.bf16.msrb.mxu0 %v9241_v42 }
 0x2c2   : > { %v11804_v33 = vpop.f32.mrf.mxu0  ;;  %v4191_v62 = vadd.f32 %v4190_v45, %v4152_v13 }
 0x2c5   : > { %v11806_v1 = vpop.f32.mrf.mxu1  ;;  %5358 = vmatpush.bf16.msrb.mxu0 %v9240_v32 }
 0x2c9   : > { %v11808_v63 = vpop.f32.mrf.mxu2  ;;  %v11811_v9 = vpop.f32.mrf.mxu3 }
 0x2ca   : > { %v3889_v6 = vpop.f32.mrf.mxu0 }
 0x2cb   : > { %v3890_v37 = vadd.f32 %v3889_v6, %v11629_v12 }
 0x2cd   : > { %v3927_v5 = vpop.f32.mrf.mxu1  ;;  %4457 = vmatmul.bf16.gmra.mxu0 %v11407_v43 }
 0x2ce   : > { %v3928_v40 = vadd.f32 %v3927_v5, %v3890_v37 }
 0x2d0   : > { %v11814_v60 = vadd.f32 %v4186_v30, %v3928_v40  ;;  %4495 = vmatmul.bf16.gmra.mxu1 %v11420_v56 }
 0x2d1   : > { %v4157_v61 = vpop.f32.mrf.mxu2  ;;  %v4195_v31 = vpop.f32.mrf.mxu3 }
 0x2d2   : > { %v11820_v24 = vpop.f32.mrf.mxu0  ;;  %v4196_v19 = vadd.f32 %v4195_v31, %v4157_v61 }
 0x2d5   : > { %v11822_v12 = vpop.f32.mrf.mxu1 }
 0x2d9   : > { %v11824_v28 = vpop.f32.mrf.mxu2  ;;  %v11827_v35 = vpop.f32.mrf.mxu3 }
 0x2da   : > { %v3894_v4 = vpop.f32.mrf.mxu0 }
 0x2db   : > { %v3895_v43 = vadd.f32 %v3894_v4, %v11673_v46 }
 0x2dd   : > { %v3932_v56 = vpop.f32.mrf.mxu1  ;;  %4462 = vmatmul.bf16.gmra.mxu0 %v11399_v18  ;;  %v9257_v18 = vld [vmem:[%s12676_s7 + $0xb8] sm:$0xff] }
 0x2de   : > { %v3933_v39 = vadd.f32 %v3932_v56, %v3895_v43  ;;  %5393 = vmatpush.bf16.msrb.mxu2 %v9257_v18  ;;  %v9256_v43 = vld [vmem:[%s12676_s7 + $0xb0] sm:$0xff] }
 0x2e0   : > { %v11830_v0 = vadd.f32 %v4191_v62, %v3933_v39  ;;  %4500 = vmatmul.bf16.gmra.mxu1 %v11409_v16  ;;  %v9239_v16 = vld [vmem:[%s12676_s7 + $0x28] sm:$0xff] }
 0x2e1   : > { %v4162_v57 = vpop.f32.mrf.mxu2  ;;  %v4200_v22 = vpop.f32.mrf.mxu3  ;;  %5359 = vmatpush.bf16.msrb.mxu0 %v9239_v16  ;;  %v9238_v16 = vld [vmem:[%s12676_s7 + $0x20] sm:$0xff] }
 0x2e2   : > { %v11836_v17 = vpop.f32.mrf.mxu0  ;;  %v4201_v34 = vadd.f32 %v4200_v22, %v4162_v57  ;;  %5394 = vmatpush.bf16.msrb.mxu2 %v9256_v43  ;;  %v3882_v57 = vadd.f32 %v11791_v52, %v11575_v44  ;;  %v4178_v52 = vadd.f32 %v11763_v48, %v11760_v49  ;;  %v9237_v49 = vld [vmem:[%s12676_s7 + $0x18] sm:$0xff]  ;;  %v9263_v48 = vld [vmem:[%s12676_s7 + $0xe8] sm:$0xff] }
 0x2e3   : > { %5413 = vmatpush.bf16.msrb.mxu3 %v9263_v48 }
 0x2e5   : > { %v11838_v46 = vpop.f32.mrf.mxu1  ;;  %5360 = vmatpush.bf16.msrb.mxu0 %v9238_v16 }
 0x2e9   : > { %v4164_v21 = vpop.f32.mrf.mxu2  ;;  %v4202_v59 = vpop.f32.mrf.mxu3  ;;  %5361 = vmatpush.bf16.msrb.mxu0 %v9237_v49 }
 0x2ea   : > { %v3899_v26 = vpop.f32.mrf.mxu0  ;;  %v3920_v21 = vadd.f32 %v11793_v47, %v3882_v57  ;;  %v3887_v57 = vadd.f32 %v11804_v33, %v11600_v23 }
 0x2eb   : > { %v3900_v51 = vadd.f32 %v3899_v26, %v11703_v54 }
 0x2ed   : > { %v3937_v30 = vpop.f32.mrf.mxu1 }
 0x2ee   : > { %v3938_v41 = vadd.f32 %v3937_v30, %v3900_v51 }
 0x2f0   : > { %v11853_v7 = vadd.f32 %v4196_v19, %v3938_v41  ;;  %v4205_v41 = vadd.f32 %v4178_v52, %v3920_v21  ;;  %v3925_v52 = vadd.f32 %v11806_v1, %v3887_v57 }
 0x2f1   : > { %v4699_v15 = vpop.f32.mrf.mxu2  ;;  %v4737_v13 = vpop.f32.mrf.mxu3 }
 0x2f2   : > { %v11855_v11 = vpop.f32.mrf.mxu0 }
 0x2f5   : > { %v11857_v45 = vpop.f32.mrf.mxu1 }
 0x2f9   : > { %v4701_v62 = vpop.f32.mrf.mxu2  ;;  %v4739_v5 = vpop.f32.mrf.mxu3 }
 0x2fa   : > { %v3904_v6 = vpop.f32.mrf.mxu0 }
 0x2fb   : > { %v3905_v37 = vadd.f32 %v3904_v6, %v11735_v36  ;;  %v4740_v6 = vadd.f32 %v4739_v5, %v4701_v62 }
 0x2fd   : > { %v3942_v40 = vpop.f32.mrf.mxu1 }
 0x2fe   : > { %v3943_v42 = vadd.f32 %v3942_v40, %v3905_v37  ;;  %v9255_v40 = vld [vmem:[%s12676_s7 + $0xa8] sm:$0xff] }
 0x2ff   : > { %5395 = vmatpush.bf16.msrb.mxu2 %v9255_v40 }
 0x300   : > { %v11860_v61 = vadd.f32 %v4201_v34, %v3943_v42  ;;  %v4738_v34 = vadd.f32 %v4737_v13, %v4699_v15  ;;  %v9247_v42 = vld [vmem:[%s12676_s7 + $0x68] sm:$0xff] }
 0x301   : > { %v4704_v54 = vpop.f32.mrf.mxu2  ;;  %v4742_v4 = vpop.f32.mrf.mxu3  ;;  %5377 = vmatpush.bf16.msrb.mxu1 %v9247_v42 }
 0x302   : > { %v3906_v31 = vpop.f32.mrf.mxu0  ;;  %v4743_v3 = vadd.f32 %v4742_v4, %v4704_v54  ;;  %v4183_v54 = vadd.f32 %v11780_v27, %v11777_v38 }
 0x305   : > { %v3944_v19 = vpop.f32.mrf.mxu1 }
 0x309   : > { %v11865_v56 = vpop.f32.mrf.mxu2  ;;  %v11867_v32 = vpop.f32.mrf.mxu3 }
 0x30a   : > { %v4438_v39 = vpop.f32.mrf.mxu0  ;;  %v4745_v48 = vadd.f32 %v11867_v32, %v11865_v56 }
 0x30d   : > { %v4476_v36 = vpop.f32.mrf.mxu1 }
 0x30e   : > { %v4477_v22 = vadd.f32 %v4476_v36, %v4438_v39 }
 0x310   : > { %v4505_v18 = vadd.f32 %v4477_v22, %v11788_v25 }
 0x311   : > { %v11882_v44 = vpop.f32.mrf.mxu2  ;;  %v11887_v59 = vpop.f32.mrf.mxu3 }
 0x312   : > { %v4766_v26 = vadd.f32 %v4738_v34, %v4505_v18  ;;  %v4440_v25 = vpop.f32.mrf.mxu0 }
 0x314   : > { %v4777_v51 = vadd.f32 %v11605_v14, %v4766_v26 }
 0x315   : > { %v4478_v30 = vpop.f32.mrf.mxu1 }
 0x316   : > { %v4788_v15 = vmax.f32 %v4777_v51, 0.0  ;;  %v4479_v13 = vadd.f32 %v4478_v30, %v4440_v25  ;;  %v9254_v25 = vld [vmem:[%s12676_s7 + $0xa0] sm:$0xff] }
 0x317   : > { %5396 = vmatpush.bf16.msrb.mxu2 %v9254_v25 }
 0x318   : > { %v4799_v47 = vmul.f32 %v11622_v8, %v4788_v15  ;;  %v4506_v37 = vadd.f32 %v4479_v13, %v4205_v41 }
 0x319   : > { %v11903_v31 = vpop.f32.mrf.mxu2  ;;  %v11906_v36 = vpop.f32.mrf.mxu3 }
 0x31a   : > { %v4810_v62 = vadd.f32 %v11627_v29, %v4799_v47  ;;  %v4767_v5 = vadd.f32 %v4740_v6, %v4506_v37  ;;  %v4443_v19 = vpop.f32.mrf.mxu0  ;;  %v4207_v6 = vadd.f32 %v4183_v54, %v3925_v52 }
 0x31c   : > { %v4921_v43 = vrot.slane %v4810_v62, 4  ;;  %v4778_v39 = vadd.f32 %v11605_v14, %v4767_v5  ;;  %v9262_v5 = vld [vmem:[%s12676_s7 + $0xe0] sm:$0xff] }
 0x31d   : > { %v4481_v22 = vpop.f32.mrf.mxu1  ;;  %5414 = vmatpush.bf16.msrb.mxu3 %v9262_v5  ;;  %v4750_v5 = vadd.f32 %v11906_v36, %v11903_v31  ;;  %v11981_v31 = vld [vmem:[%s12839_s4] ss:$0 sm:$0xff]  ;;  %s9522_s4 = sshra.s32 %s7249_s24, 4  ;;  %s9523_s4 = int_to_ptr.hbm [resolvable:$true] %s9522_s4 }
 0x31e   : > { %v4922_v34 = vmax.f32 %v4810_v62, %v4921_v43  ;;  %v4789_v18 = vmax.f32 %v4778_v39, 0.0  ;;  %v4482_v16 = vadd.f32 %v4481_v22, %v4443_v19  ;;  %v9236_v62 = vld [vmem:[%s12676_s7 + $0x10] sm:$0xff]  ;;  %v9246_v19 = vld [vmem:[%s12676_s7 + $0x60] sm:$0xff]  ;;  %p9529_p0 = scmp.lt.s32.totalorder %s9523_s4, %s12688_s19 }
 0x31f   : > { %5362 = vmatpush.bf16.msrb.mxu0 %v9236_v62  ;;  %5378 = vmatpush.bf16.msrb.mxu1 %v9246_v19 }
 0x320   : > { %v4923_v10 = vrot.slane %v4922_v34, 2  ;;  %v4800_v21 = vmul.f32 %v11622_v8, %v4789_v18  ;;  %v4507_v26 = vadd.f32 %v4482_v16, %v11801_v55 }
 0x321   : > { %v11917_v33 = vpop.f32.mrf.mxu2  ;;  %v11922_v13 = vpop.f32.mrf.mxu3 }
 0x322   : > { %v4924_v51 = vmax.f32 %v4922_v34, %v4923_v10  ;;  %v4811_v30 = vadd.f32 %v11627_v29, %v4800_v21  ;;  %v4768_v23 = vadd.f32 %v4743_v3, %v4507_v26  ;;  %v4445_v4 = vpop.f32.mrf.mxu0  ;;  %v3892_v3 = vadd.f32 %v11820_v24, %v11650_v53  ;;  %v9235_v53 = vld [vmem:[%s12676_s7 + $0x8] sm:$0xff]  ;;  %v9261_v24 = vld [vmem:[%s12676_s7 + $0xd8] sm:$0xff] }
 0x323   : > { %5363 = vmatpush.bf16.msrb.mxu0 %v9235_v53  ;;  %5415 = vmatpush.bf16.msrb.mxu3 %v9261_v24  ;;  %v12010_v53 = vld [vmem:[%s12675_s6] ss:$0 sm:$0xff] }
 0x324   : > { %v4925_v41 = vrot.slane %v4924_v51, 1  ;;  %v4929_v15 = vrot.slane %v4811_v30, 4  ;;  %v4779_v55 = vadd.f32 %v11605_v14, %v4768_v23 }
 0x325   : > { %v4483_v47 = vpop.f32.mrf.mxu1 }
 0x326   : > { %v4926_v1 = vmax.f32 %v4924_v51, %v4925_v41  ;;  %v4930_v37 = vmax.f32 %v4811_v30, %v4929_v15  ;;  %v4790_v40 = vmax.f32 %v4779_v55, 0.0  ;;  %v4484_v49 = vadd.f32 %v4483_v47, %v4445_v4  ;;  %v9253_v4 = vld [vmem:[%s12676_s7 + $0x98] sm:$0xff] }
 0x327   : > { %v4748_v51 = vadd.f32 %v11887_v59, %v11882_v44  ;;  %v3930_v41 = vadd.f32 %v11822_v12, %v3892_v3  ;;  %v9245_v44 = vld [vmem:[%s12676_s7 + $0x58] sm:$0xff]  ;;  %5397 = vmatpush.bf16.msrb.mxu2 %v9253_v4  ;;  %v3897_v3 = vadd.f32 %v11836_v17, %v11683_v20  ;;  %v9234_v20 = vld [vmem:[%s12676_s7] sm:$0xff]  ;;  %v9260_v17 = vld [vmem:[%s12676_s7 + $0xd0] sm:$0xff] }
 0x328   : > { %4927 = vst [vmem:[#allocation4 + $0xb] sm:$0x1] %v4926_v1  ;;  %v4931_v42 = vrot.slane %v4930_v37, 2  ;;  %v4801_v38 = vmul.f32 %v11622_v8, %v4790_v40  ;;  %v4508_v27 = vadd.f32 %v4484_v49, %v4207_v6  ;;  %v4188_v6 = vadd.f32 %v11798_v50, %v11795_v58  ;;  %5379 = vmatpush.bf16.msrb.mxu1 %v9245_v44 }
 0x329   : > { %v11937_v32 = vpop.f32.mrf.mxu2  ;;  %v11940_v16 = vpop.f32.mrf.mxu3  ;;  %5364 = vmatpush.bf16.msrb.mxu0 %v9234_v20  ;;  %5416 = vmatpush.bf16.msrb.mxu3 %v9260_v17  ;;  %v4193_v44 = vadd.f32 %v11811_v9, %v11808_v63  ;;  %v9250_v17 = vld [vmem:[%s12676_s7 + $0x80] sm:$0xff] }
 0x32a   : > { %v4932_v43 = vmax.f32 %v4930_v37, %v4931_v42  ;;  %v4812_v39 = vadd.f32 %v11627_v29, %v4801_v38  ;;  %v4769_v56 = vadd.f32 %v4745_v48, %v4508_v27  ;;  %v4448_v57 = vpop.f32.mrf.mxu0  ;;  %v4209_v49 = vadd.f32 %v4188_v6, %v3930_v41 }
 0x32c   : > { %v4933_v22 = vrot.slane %v4932_v43, 1  ;;  %v4937_v34 = vrot.slane %v4812_v39, 4  ;;  %v4780_v18 = vadd.f32 %v11605_v14, %v4769_v56 }
 0x32d   : > { %v4486_v10 = vpop.f32.mrf.mxu1 }
 0x32e   : > { %v4934_v21 = vmax.f32 %v4932_v43, %v4933_v22  ;;  %v4938_v26 = vmax.f32 %v4812_v39, %v4937_v34  ;;  %v4791_v25 = vmax.f32 %v4780_v18, 0.0  ;;  %v4487_v52 = vadd.f32 %v4486_v10, %v4448_v57 }
 0x330   : > { %4935 = vst [vmem:[#allocation4 + $0xc] sm:$0x1] %v4934_v21  ;;  %v4939_v30 = vrot.slane %v4938_v26, 2  ;;  %v4802_v23 = vmul.f32 %v11622_v8, %v4791_v25  ;;  %v4509_v54 = vadd.f32 %v4487_v52, %v11814_v60  ;;  %v4753_v52 = vadd.f32 %v11922_v13, %v11917_v33  ;;  %v9244_v33 = vld [vmem:[%s12676_s7 + $0x50] sm:$0xff] }
 0x331   : > { %v11962_v55 = vpop.f32.mrf.mxu2  ;;  %v11967_v40 = vpop.f32.mrf.mxu3  ;;  %v3935_v13 = vadd.f32 %v11838_v46, %v3897_v3  ;;  %5380 = vmatpush.bf16.msrb.mxu1 %v9244_v33 }
 0x332   : > { %v4940_v59 = vmax.f32 %v4938_v26, %v4939_v30  ;;  %v4813_v60 = vadd.f32 %v11627_v29, %v4802_v23  ;;  %v4770_v15 = vadd.f32 %v4748_v51, %v4509_v54  ;;  %v4450_v47 = vpop.f32.mrf.mxu0  ;;  %v11993_v30 = vld [vmem:[%s12840_s5] ss:$0 sm:$0xff]  ;;  %s9524_s5 = scalar_lea.hbm %s9523_s4, 1 }
 0x333   : > { %p9525_p11 = scmp.ne.s32.totalorder %s9523_s4, %s9524_s5  ;;  %p9530_p1 = scmp.lt.s32.totalorder %s9528_s23, %s9524_s5 }
 0x334   : > { %v4941_v1 = vrot.slane %v4940_v59, 1  ;;  %v4945_v12 = vrot.slane %v4813_v60, 4  ;;  %v4781_v37 = vadd.f32 %v11605_v14, %v4770_v15  ;;  %v9252_v14 = vld [vmem:[%s12676_s7 + $0x90] sm:$0xff] }
 0x335   : > { %v4488_v48 = vpop.f32.mrf.mxu1  ;;  %5398 = vmatpush.bf16.msrb.mxu2 %v9252_v14  ;;  %p9526_p12 = pnand %p9525_p11, %p9711_p5  ;;  %p9531_p2 = por %p9530_p1, %p9529_p0 }
 0x336   : > { %v4942_v42 = vmax.f32 %v4940_v59, %v4941_v1  ;;  %v4946_v38 = vmax.f32 %v4813_v60, %v4945_v12  ;;  %v4792_v27 = vmax.f32 %v4781_v37, 0.0  ;;  %v4489_v62 = vadd.f32 %v4488_v48, %v4450_v47  ;;  %v9273_v12 = vld [vmem:[%s12676_s7 + $0x138] sm:$0xff]  ;;  %v9243_v37 = vld [vmem:[%s12676_s7 + $0x48] sm:$0xff] }
 0x337   : > { %v4211_v47 = vadd.f32 %v4193_v44, %v3935_v13  ;;  %5429 = vmatpush.bf16.msra.mxu0 %v9273_v12  ;;  %5381 = vmatpush.bf16.msrb.mxu1 %v9243_v37  ;;  %p9527_p13 = pneg %p9526_p12 }
 0x338   : > { %4943 = vst [vmem:[#allocation4 + $0xd] sm:$0x1] %v4942_v42  ;;  %v4947_v58 = vrot.slane %v4946_v38, 2  ;;  %v4803_v50 = vmul.f32 %v11622_v8, %v4792_v27  ;;  %v4510_v19 = vadd.f32 %v4489_v62, %v4209_v49  ;;  %v4755_v42 = vadd.f32 %v11940_v16, %v11937_v32  ;;  %v9242_v32 = vld [vmem:[%s12676_s7 + $0x40] sm:$0xff] }
 0x339   : > { %v11976_v57 = vpop.f32.mrf.mxu2  ;;  %v11984_v36 = vpop.f32.mrf.mxu3  ;;  %p9532_p3 = pnand %p9531_p2, %p9527_p13 }
 0x33a   : > { %v4948_v43 = vmax.f32 %v4946_v38, %v4947_v58  ;;  %v4814_v39 = vadd.f32 %v11627_v29, %v4803_v50  ;;  %v4771_v56 = vadd.f32 %v4750_v5, %v4510_v19  ;;  %v4453_v22 = vpop.f32.mrf.mxu0  ;;  %v9251_v5 = vld [vmem:[%s12676_s7 + $0x88] sm:$0xff]  ;;  %v9272_v50 = vld [vmem:[%s12676_s7 + $0x130] sm:$0xff]  ;;  %v4760_v37 = vadd.f32 %v11984_v36, %v11976_v57 }
 0x33b   : > { %v9259_v58 = vld [vmem:[%s12676_s7 + $0xc8] sm:$0xff]  ;;  %5399 = vmatpush.bf16.msrb.mxu2 %v9251_v5  ;;  %5430 = vmatpush.bf16.msra.mxu0 %v9272_v50 }
 0x33c   : > { %v4949_v34 = vrot.slane %v4948_v43, 1  ;;  %v4953_v18 = vrot.slane %v4814_v39, 4  ;;  %v4782_v8 = vadd.f32 %v11981_v31, %v4771_v56  ;;  %5417 = vmatpush.bf16.msrb.mxu3 %v9259_v58  ;;  %5382 = vmatpush.bf16.msrb.mxu1 %v9242_v32  ;;  %v9267_v5 = vld [vmem:[%s12676_s7 + $0x108] sm:$0xff] }
 0x33d   : > { %v4491_v29 = vpop.f32.mrf.mxu1 }
 0x33e   : > { %v4950_v10 = vmax.f32 %v4948_v43, %v4949_v34  ;;  %v4954_v21 = vmax.f32 %v4814_v39, %v4953_v18  ;;  %v4793_v26 = vmax.f32 %v4782_v8, 0.0  ;;  %v4492_v25 = vadd.f32 %v4491_v29, %v4453_v22  ;;  %v9271_v29 = vld [vmem:[%s12676_s7 + $0x128] sm:$0xff] }
 0x33f   : > { %v3902_v8 = vadd.f32 %v11855_v11, %v11719_v2  ;;  %5431 = vmatpush.bf16.msra.mxu0 %v9271_v29  ;;  %5400 = vmatpush.bf16.msrb.mxu2 %v9250_v17 }
 0x340   : > { %4951 = vst [vmem:[#allocation4 + $0xe] sm:$0x1] %v4950_v10  ;;  %v4955_v51 = vrot.slane %v4954_v21, 2  ;;  %v4804_v23 = vmul.f32 %v11993_v30, %v4793_v26  ;;  %v4511_v54 = vadd.f32 %v4492_v25, %v11830_v0 }
 0x341   : > { %v12013_v41 = vpop.f32.mrf.mxu2  ;;  %v12018_v6 = vpop.f32.mrf.mxu3  ;;  %v3940_v33 = vadd.f32 %v11857_v45, %v3902_v8 }
 0x342   : > { %v4956_v4 = vmax.f32 %v4954_v21, %v4955_v51  ;;  %v4815_v0 = vadd.f32 %v12010_v53, %v4804_v23  ;;  %v4772_v24 = vadd.f32 %v4753_v52, %v4511_v54  ;;  %v4455_v59 = vpop.f32.mrf.mxu0  ;;  %v4758_v52 = vadd.f32 %v11967_v40, %v11962_v55  ;;  %v5008_v51 = vld [vmem:[#allocation4] sm:$0xff]  ;;  %v9270_v55 = vld [vmem:[%s12676_s7 + $0x120] sm:$0xff] }
 0x343   : > { %5432 = vmatpush.bf16.msra.mxu0 %v9270_v55 }
 0x344   : > { %v4957_v60 = vrot.slane %v4956_v4, 1  ;;  %v4961_v46 = vrot.slane %v4815_v0, 4  ;;  %v4783_v15 = vadd.f32 %v11981_v31, %v4772_v24 }
 0x345   : > { %v4493_v1 = vpop.f32.mrf.mxu1 }
 0x346   : > { %v4958_v49 = vmax.f32 %v4956_v4, %v4957_v60  ;;  %v4962_v63 = vmax.f32 %v4815_v0, %v4961_v46  ;;  %v4794_v9 = vmax.f32 %v4783_v15, 0.0  ;;  %v4494_v48 = vadd.f32 %v4493_v1, %v4455_v59  ;;  %v9269_v46 = vld [vmem:[%s12676_s7 + $0x118] sm:$0xff] }
 0x347   : > { %5433 = vmatpush.bf16.msra.mxu0 %v9269_v46  ;;  %v5020_v46 = vld [vmem:[#allocation4 + $0x4] sm:$0xff] }
 0x348   : > { %4959 = vst [vmem:[#allocation4 + $0xf] sm:$0x1] %v4958_v49  ;;  %v4963_v38 = vrot.slane %v4962_v63, 2  ;;  %v4805_v27 = vmul.f32 %v11993_v30, %v4794_v9  ;;  %v4512_v62 = vadd.f32 %v4494_v48, %v4211_v47 }
 0x349   : > { %v4726_v43 = vpop.f32.mrf.mxu2  ;;  %v4764_v18 = vpop.f32.mrf.mxu3 }
 0x34a   : > { %v4964_v16 = vmax.f32 %v4962_v63, %v4963_v38  ;;  %v4816_v19 = vadd.f32 %v12010_v53, %v4805_v27  ;;  %v4773_v14 = vadd.f32 %v4755_v42, %v4512_v62  ;;  %v4458_v39 = vpop.f32.mrf.mxu0  ;;  %v9258_v42 = vld [vmem:[%s12676_s7 + $0xc0] sm:$0xff]  ;;  %v9268_v38 = vld [vmem:[%s12676_s7 + $0x110] sm:$0xff] }
 0x34b   : > { %5418 = vmatpush.bf16.msrb.mxu3 %v9258_v42  ;;  %5434 = vmatpush.bf16.msra.mxu0 %v9268_v38  ;;  %v9266_v18 = vld [vmem:[%s12676_s7 + $0x100] sm:$0xff]  ;;  %v9279_v42 = vld [vmem:[%s12678_s9 + $0x28] sm:$0xff] }
 0x34c   : > { %v4965_v56 = vrot.slane %v4964_v16, 1  ;;  %v4969_v22 = vrot.slane %v4816_v19, 4  ;;  %v4784_v34 = vadd.f32 %v11981_v31, %v4773_v14  ;;  %v9278_v38 = vld [vmem:[%s12678_s9 + $0x20] sm:$0xff] }
 0x34d   : > { %v4496_v3 = vpop.f32.mrf.mxu1 }
 0x34e   : > { %v4966_v10 = vmax.f32 %v4964_v16, %v4965_v56  ;;  %v4970_v21 = vmax.f32 %v4816_v19, %v4969_v22  ;;  %v4795_v26 = vmax.f32 %v4784_v34, 0.0  ;;  %v4497_v25 = vadd.f32 %v4496_v3, %v4458_v39 }
 0x34f   : > { %v5009_v23 = vld [vmem:[#allocation4 + $0x8] sm:$0xff]  ;;  %v4763_v56 = vadd.f32 %v12018_v6, %v12013_v41  ;;  %5435 = vmatpush.bf16.msra.mxu0 %v9267_v5  ;;  %v9296_v5 = vld [vmem:[%s12678_s9 + $0xb0] sm:$0xff] }
 0x350   : > { %4967 = vst [vmem:[#allocation4 + $0x10] sm:$0x1] %v4966_v10  ;;  %v4971_v54 = vrot.slane %v4970_v21, 2  ;;  %v4806_v20 = vmul.f32 %v11993_v30, %v4795_v26  ;;  %v4513_v2 = vadd.f32 %v4497_v25, %v11853_v7  ;;  %v5023_v11 = vpack.c.bf16 %v5009_v23, %v5008_v51 }
 0x351   : > { %v4198_v7 = vadd.f32 %v11827_v35, %v11824_v28  ;;  %v5011_v28 = vld [vmem:[#allocation4 + $0x1] sm:$0xff] }
 0x352   : > { %v4972_v40 = vmax.f32 %v4970_v21, %v4971_v54  ;;  %v4817_v13 = vadd.f32 %v12010_v53, %v4806_v20  ;;  %v4774_v4 = vadd.f32 %v4758_v52, %v4513_v2  ;;  %5365 = vmatmul.bf16.vlgmr.msrb.gmra.mxu0 %v5023_v11  ;;  %v4460_v0 = vpop.f32.mrf.mxu0  ;;  %v5014_v21 = vld [vmem:[#allocation4 + $0x2] sm:$0xff] }
 0x353   : > { %v4213_v45 = vadd.f32 %v4198_v7, %v3940_v33  ;;  %5436 = vmatpush.bf16.msra.mxu0 %v9266_v18  ;;  %v5017_v33 = vld [vmem:[#allocation4 + $0x3] sm:$0xff]  ;;  %v9274_v18 = vld [vmem:[%s12678_s9] sm:$0xff] }
 0x354   : > { %v4973_v24 = vrot.slane %v4972_v40, 1  ;;  %v4977_v44 = vrot.slane %v4817_v13, 4  ;;  %v4785_v59 = vadd.f32 %v11981_v31, %v4774_v4 }
 0x355   : > { %v4498_v60 = vpop.f32.mrf.mxu1 }
 0x356   : > { %v4974_v15 = vmax.f32 %v4972_v40, %v4973_v24  ;;  %v4978_v47 = vmax.f32 %v4817_v13, %v4977_v44  ;;  %v4796_v1 = vmax.f32 %v4785_v59, 0.0  ;;  %v4499_v12 = vadd.f32 %v4498_v60, %v4460_v0 }
 0x357   : > { %v5012_v35 = vld [vmem:[#allocation4 + $0x9] sm:$0xff] }
 0x358   : > { %4975 = vst [vmem:[#allocation4 + $0x11] sm:$0x1] %v4974_v15  ;;  %v4979_v49 = vrot.slane %v4978_v47, 2  ;;  %v4807_v63 = vmul.f32 %v11993_v30, %v4796_v1  ;;  %v4514_v9 = vadd.f32 %v4499_v12, %v4213_v45  ;;  %v5024_v48 = vpack.c.bf16 %v5012_v35, %v5011_v28 }
 0x35a   : > { %v4980_v27 = vmax.f32 %v4978_v47, %v4979_v49  ;;  %v4818_v57 = vadd.f32 %v12010_v53, %v4807_v63  ;;  %v4775_v36 = vadd.f32 %v4760_v37, %v4514_v9  ;;  %5383 = vmatmul.bf16.vlgmr.msrb.gmra.mxu1 %v5024_v48  ;;  %v4463_v62 = vpop.f32.mrf.mxu0  ;;  %v9281_v9 = vld [vmem:[%s12678_s9 + $0x38] sm:$0xff]  ;;  %v9280_v48 = vld [vmem:[%s12678_s9 + $0x30] sm:$0xff] }
 0x35b   : > { %5792 = vmatpush.bf16.msra.mxu1 %v9281_v9  ;;  %v9321_v9 = vld [vmem:[%s12680_s11 + $0x38] sm:$0xff] }
 0x35c   : > { %v4981_v58 = vrot.slane %v4980_v27, 1  ;;  %v4985_v50 = vrot.slane %v4818_v57, 4  ;;  %v4786_v32 = vadd.f32 %v11981_v31, %v4775_v36  ;;  %v9277_v36 = vld [vmem:[%s12678_s9 + $0x18] sm:$0xff] }
 0x35d   : > { %v4501_v16 = vpop.f32.mrf.mxu1 }
 0x35e   : > { %v4982_v19 = vmax.f32 %v4980_v27, %v4981_v58  ;;  %v4986_v14 = vmax.f32 %v4818_v57, %v4985_v50  ;;  %v4797_v43 = vmax.f32 %v4786_v32, 0.0  ;;  %v4502_v39 = vadd.f32 %v4501_v16, %v4463_v62  ;;  %v9289_v27 = vld [vmem:[%s12678_s9 + $0x78] sm:$0xff]  ;;  %v9288_v62 = vld [vmem:[%s12678_s9 + $0x70] sm:$0xff]  ;;  %v9287_v32 = vld [vmem:[%s12678_s9 + $0x68] sm:$0xff] }
 0x35f   : > { %v5010_v22 = vld [vmem:[#allocation4 + $0x10] sm:$0x3]  ;;  %5793 = vmatpush.bf16.msra.mxu1 %v9280_v48  ;;  %v9297_v57 = vld [vmem:[%s12678_s9 + $0xb8] sm:$0xff]  ;;  %5806 = vmatpush.bf16.msra.mxu2 %v9289_v27  ;;  %v9276_v50 = vld [vmem:[%s12678_s9 + $0x10] sm:$0xff] }
 0x360   : > { %v5015_v34 = vld [vmem:[#allocation4 + $0xa] sm:$0xff]  ;;  %4983 = vst [vmem:[#allocation4 + $0x12] sm:$0x1] %v4982_v19  ;;  %v4987_v8 = vrot.slane %v4986_v14, 2  ;;  %v4808_v3 = vmul.f32 %v11993_v30, %v4797_v43  ;;  %v4515_v29 = vadd.f32 %v4502_v39, %v11860_v61  ;;  %v5028_v10 = vpack.c.bf16 %v5010_v22, %v5010_v22  ;;  %5820 = vmatpush.bf16.msra.mxu3 %v9297_v57  ;;  %v9295_v16 = vld [vmem:[%s12678_s9 + $0xa8] sm:$0xff]  ;;  %v9320_v57 = vld [vmem:[%s12680_s11 + $0x30] sm:$0xff] }
 0x361   : > { %v5025_v26 = vpack.c.bf16 %v5015_v34, %v5014_v21  ;;  %v9305_v19 = vld [vmem:[%s12678_s9 + $0xf8] sm:$0xff]  ;;  %v9286_v43 = vld [vmem:[%s12678_s9 + $0x60] sm:$0xff]  ;;  %v9304_v34 = vld [vmem:[%s12678_s9 + $0xf0] sm:$0xff] }
 0x362   : > { %v4988_v25 = vmax.f32 %v4986_v14, %v4987_v8  ;;  %v4819_v52 = vadd.f32 %v12010_v53, %v4808_v3  ;;  %v4776_v41 = vadd.f32 %v4763_v56, %v4515_v29  ;;  %5370 = vmatmul.bf16.gmra.mxu0 %v5028_v10  ;;  %v4465_v6 = vpop.f32.mrf.mxu0  ;;  %v9275_v14 = vld [vmem:[%s12678_s9 + $0x8] sm:$0xff]  ;;  %v9294_v39 = vld [vmem:[%s12678_s9 + $0xa0] sm:$0xff]  ;;  %v9285_v8 = vld [vmem:[%s12678_s9 + $0x58] sm:$0xff] }
 0x363   : > { %5401 = vmatmul.bf16.vlgmr.msrb.gmra.mxu2 %v5025_v26  ;;  %5794 = vmatpush.bf16.msra.mxu1 %v9279_v42  ;;  %v9293_v3 = vld [vmem:[%s12678_s9 + $0x98] sm:$0xff]  ;;  %v9303_v29 = vld [vmem:[%s12678_s9 + $0xe8] sm:$0xff]  ;;  %v9284_v21 = vld [vmem:[%s12678_s9 + $0x50] sm:$0xff] }
 0x364   : > { %v4989_v51 = vrot.slane %v4988_v25, 1  ;;  %v4993_v23 = vrot.slane %v4819_v52, 4  ;;  %v4787_v54 = vadd.f32 %v11981_v31, %v4776_v41  ;;  %5807 = vmatpush.bf16.msra.mxu2 %v9288_v62  ;;  %5821 = vmatpush.bf16.msra.mxu3 %v9296_v5  ;;  %v9313_v10 = vld [vmem:[%s12678_s9 + $0x138] sm:$0xff]  ;;  %v9292_v26 = vld [vmem:[%s12678_s9 + $0x90] sm:$0xff]  ;;  %v9302_v41 = vld [vmem:[%s12678_s9 + $0xe0] sm:$0xff] }
 0x365   : > { %v4503_v20 = vpop.f32.mrf.mxu1  ;;  %5834 = vmatpush.bf16.msrb.mxu0 %v9305_v19  ;;  %v9312_v6 = vld [vmem:[%s12678_s9 + $0x130] sm:$0xff]  ;;  %v9306_v42 = vld [vmem:[%s12678_s9 + $0x100] sm:$0xff] }
 0x366   : > { %v4990_v2 = vmax.f32 %v4988_v25, %v4989_v51  ;;  %v4994_v11 = vmax.f32 %v4819_v52, %v4993_v23  ;;  %v4798_v17 = vmax.f32 %v4787_v54, 0.0  ;;  %v9497_v51 = vld [vmem:[%s12677_s8] ss:$0 sm:$0xff]  ;;  %v9283_v23 = vld [vmem:[%s12678_s9 + $0x48] sm:$0xff]  ;;  %v9301_v20 = vld [vmem:[%s12678_s9 + $0xd8] sm:$0xff] }
 0x367   : > { %v5013_v61 = vld [vmem:[#allocation4 + $0x11] sm:$0x3]  ;;  %5795 = vmatpush.bf16.msra.mxu1 %v9278_v38  ;;  %v9291_v54 = vld [vmem:[%s12678_s9 + $0x88] sm:$0xff] }
 0x368   : > { %v5018_v55 = vld [vmem:[#allocation4 + $0xb] sm:$0xff]  ;;  %4991 = vst [vmem:[#allocation4 + $0x13] sm:$0x1] %v4990_v2  ;;  %v4995_v40 = vrot.slane %v4994_v11, 2  ;;  %v4809_v13 = vmul.f32 %v11993_v30, %v4798_v17  ;;  %v5029_v4 = vpack.c.bf16 %v5013_v61, %v5013_v61  ;;  %5808 = vmatpush.bf16.msra.mxu2 %v9287_v32  ;;  %5822 = vmatpush.bf16.msra.mxu3 %v9295_v16  ;;  %v9311_v2 = vld [vmem:[%s12678_s9 + $0x128] sm:$0xff] }
 0x369   : > { %v5026_v7 = vpack.c.bf16 %v5018_v55, %v5017_v33  ;;  %5835 = vmatpush.bf16.msrb.mxu0 %v9304_v34  ;;  %v9282_v17 = vld [vmem:[%s12678_s9 + $0x40] sm:$0xff] }
 0x36a   : > { %v4996_v0 = vmax.f32 %v4994_v11, %v4995_v40  ;;  %v4820_v24 = vadd.f32 %v12010_v53, %v4809_v13  ;;  %5388 = vmatmul.bf16.gmra.mxu1 %v5029_v4  ;;  %v9290_v61 = vld [vmem:[%s12678_s9 + $0x80] sm:$0xff]  ;;  %v9300_v40 = vld [vmem:[%s12678_s9 + $0xd0] sm:$0xff] }
 0x36b   : > { %5419 = vmatmul.bf16.vlgmr.msrb.gmra.mxu3 %v5026_v7  ;;  %5796 = vmatpush.bf16.msra.mxu1 %v9277_v36  ;;  %v9310_v13 = vld [vmem:[%s12678_s9 + $0x120] sm:$0xff] }
 0x36c   : > { %v4997_v44 = vrot.slane %v4996_v0, 1  ;;  %v5001_v31 = vrot.slane %v4820_v24, 4  ;;  %5809 = vmatpush.bf16.msra.mxu2 %v9286_v43  ;;  %5823 = vmatpush.bf16.msra.mxu3 %v9294_v39 }
 0x36d   : > { %5836 = vmatpush.bf16.msrb.mxu0 %v9303_v29 }
 0x36e   : > { %v4998_v59 = vmax.f32 %v4996_v0, %v4997_v44  ;;  %v5002_v45 = vmax.f32 %v4820_v24, %v5001_v31  ;;  %v9299_v0 = vld [vmem:[%s12678_s9 + $0xc8] sm:$0xff]  ;;  %v9309_v24 = vld [vmem:[%s12678_s9 + $0x118] sm:$0xff] }
 0x36f   : > { %v5016_v60 = vld [vmem:[#allocation4 + $0x12] sm:$0x3]  ;;  %5797 = vmatpush.bf16.msra.mxu1 %v9276_v50 }
 0x370   : > { %v5021_v15 = vld [vmem:[#allocation4 + $0xc] sm:$0xff]  ;;  %4999 = vst [vmem:[#allocation4 + $0x14] sm:$0x1] %v4998_v59  ;;  %v5003_v47 = vrot.slane %v5002_v45, 2  ;;  %v5030_v1 = vpack.c.bf16 %v5016_v60, %v5016_v60  ;;  %5810 = vmatpush.bf16.msra.mxu2 %v9285_v8  ;;  %5824 = vmatpush.bf16.msra.mxu3 %v9293_v3 }
 0x371   : > { %v5027_v12 = vpack.c.bf16 %v5021_v15, %v5020_v46  ;;  %5837 = vmatpush.bf16.msrb.mxu0 %v9302_v41  ;;  %v9298_v15 = vld [vmem:[%s12678_s9 + $0xc0] sm:$0xff] }
 0x372   : > { %v5004_v37 = vmax.f32 %v5002_v45, %v5003_v47  ;;  %v9308_v47 = vld [vmem:[%s12678_s9 + $0x110] sm:$0xff] }
 0x373   : > { %5437 = vmatmul.bf16.vlgmr.msra.gmra.mxu0 %v5027_v12  ;;  %5406 = vmatmul.bf16.gmra.mxu2 %v5030_v1 }
 0x374   : > { %v5005_v30 = vrot.slane %v5004_v37, 1  ;;  %5798 = vmatpush.bf16.msra.mxu1 %v9275_v14  ;;  %5811 = vmatpush.bf16.msra.mxu2 %v9284_v21 }
 0x375   : > { %5825 = vmatpush.bf16.msra.mxu3 %v9292_v26  ;;  %5838 = vmatpush.bf16.msrb.mxu0 %v9301_v20  ;;  %v9337_v20 = vld [vmem:[%s12680_s11 + $0xb8] sm:$0xff] }
 0x376   : > { %v5006_v28 = vmax.f32 %v5004_v37, %v5005_v30 }
 0x377   : > { %v5019_v35 = vld [vmem:[#allocation4 + $0x13] sm:$0x3] }
 0x378   : > { %5007 = vst [vmem:[#allocation4 + $0x15] sm:$0x1] %v5006_v28  ;;  %v5031_v53 = vpack.c.bf16 %v5019_v35, %v5019_v35  ;;  %5799 = vmatpush.bf16.msra.mxu1 %v9274_v18  ;;  %5812 = vmatpush.bf16.msra.mxu2 %v9283_v23  ;;  %v9307_v28 = vld [vmem:[%s12678_s9 + $0x108] sm:$0xff]  ;;  %v9318_v23 = vld [vmem:[%s12680_s11 + $0x20] sm:$0xff] }
 0x379   : > { %5826 = vmatpush.bf16.msra.mxu3 %v9291_v54  ;;  %5839 = vmatpush.bf16.msrb.mxu0 %v9300_v40  ;;  %v9329_v54 = vld [vmem:[%s12680_s11 + $0x78] sm:$0xff]  ;;  %v9327_v40 = vld [vmem:[%s12680_s11 + $0x68] sm:$0xff] }
 0x37b   : > { %5424 = vmatmul.bf16.gmra.mxu3 %v5031_v53 }
 0x37c   : > { %5848 = vmatpush.bf16.msrb.mxu1 %v9313_v10  ;;  %5813 = vmatpush.bf16.msra.mxu2 %v9282_v17  ;;  %v9328_v17 = vld [vmem:[%s12680_s11 + $0x70] sm:$0xff] }
 0x37d   : > { %5827 = vmatpush.bf16.msra.mxu3 %v9290_v61  ;;  %5840 = vmatpush.bf16.msrb.mxu0 %v9299_v0  ;;  %v9336_v61 = vld [vmem:[%s12680_s11 + $0xb0] sm:$0xff]  ;;  %v9326_v0 = vld [vmem:[%s12680_s11 + $0x60] sm:$0xff] }
 0x37f   : > { %v5022_v49 = vld [vmem:[#allocation4 + $0x14] sm:$0x3] }
 0x380   : > { %v5032_v63 = vpack.c.bf16 %v5022_v49, %v5022_v49  ;;  %5849 = vmatpush.bf16.msrb.mxu1 %v9312_v6  ;;  %6205 = vmatpush.bf16.msrb.mxu2 %v9321_v9 }
 0x381   : > { %5841 = vmatpush.bf16.msrb.mxu0 %v9298_v15  ;;  %6219 = vmatpush.bf16.msrb.mxu3 %v9329_v54  ;;  %v9324_v15 = vld [vmem:[%s12680_s11 + $0x50] sm:$0xff] }
 0x383   : > { %5442 = vmatmul.bf16.gmra.mxu0 %v5032_v63 }
 0x384   : > { %5850 = vmatpush.bf16.msrb.mxu1 %v9311_v2  ;;  %6206 = vmatpush.bf16.msrb.mxu2 %v9320_v57  ;;  %v9345_v2 = vld [vmem:[%s12680_s11 + $0xf8] sm:$0xff] }
 0x385   : > { %6233 = vmatpush.bf16.msra.mxu0 %v9337_v20  ;;  %6220 = vmatpush.bf16.msrb.mxu3 %v9328_v17 }
 0x388   : > { %5851 = vmatpush.bf16.msrb.mxu1 %v9310_v13  ;;  %v9335_v13 = vld [vmem:[%s12680_s11 + $0xa8] sm:$0xff] }
 0x389   : > { %6234 = vmatpush.bf16.msra.mxu0 %v9336_v61  ;;  %6221 = vmatpush.bf16.msrb.mxu3 %v9327_v40 }
 0x38c   : > { %5852 = vmatpush.bf16.msrb.mxu1 %v9309_v24  ;;  %v9334_v24 = vld [vmem:[%s12680_s11 + $0xa0] sm:$0xff] }
 0x38d   : > { %6235 = vmatpush.bf16.msra.mxu0 %v9335_v13  ;;  %6222 = vmatpush.bf16.msrb.mxu3 %v9326_v0  ;;  %v9358_v0 = vld [vmem:[%s12682_s13 + $0x20] sm:$0xff] }
 0x390   : > { %5853 = vmatpush.bf16.msrb.mxu1 %v9308_v47  ;;  %v9332_v47 = vld [vmem:[%s12680_s11 + $0x90] sm:$0xff] }
 0x391   : > { %6236 = vmatpush.bf16.msra.mxu0 %v9334_v24  ;;  %v9369_v24 = vld [vmem:[%s12682_s13 + $0x78] sm:$0xff] }
 0x394   : > { %5854 = vmatpush.bf16.msrb.mxu1 %v9307_v28  ;;  %v9323_v28 = vld [vmem:[%s12680_s11 + $0x48] sm:$0xff] }
 0x398   : > { %5855 = vmatpush.bf16.msrb.mxu1 %v9306_v42  ;;  %v9322_v42 = vld [vmem:[%s12680_s11 + $0x40] sm:$0xff] }
 0x3cf   : > { %v5366_v58 = vpop.f32.mrf.mxu0 }
 0x3d0   : > { %v5367_v4 = vadd.f32 %v9497_v51, %v5366_v58 }
 0x3d7   : > { %v5368_v56 = vpop.f32.mrf.mxu0  ;;  %v5384_v22 = vpop.f32.mrf.mxu1 }
 0x3d8   : > { %v5385_v7 = vadd.f32 %v5384_v22, %v5367_v4  ;;  %v5369_v1 = vadd.f32 %v9497_v51, %v5368_v56  ;;  %v9343_v4 = vld [vmem:[%s12680_s11 + $0xe8] sm:$0xff] }
 0x3df   : > { %v5371_v25 = vpop.f32.mrf.mxu0  ;;  %v5386_v52 = vpop.f32.mrf.mxu1 }
 0x3e0   : > { %v5387_v37 = vadd.f32 %v5386_v52, %v5369_v1  ;;  %v5372_v38 = vadd.f32 %v9497_v51, %v5371_v25  ;;  %v9319_v51 = vld [vmem:[%s12680_s11 + $0x28] sm:$0xff] }
 0x3e1   : > { %6207 = vmatpush.bf16.msrb.mxu2 %v9319_v51 }
 0x3e5   : > { %6208 = vmatpush.bf16.msrb.mxu2 %v9318_v23 }
 0x3e6   : > { %v5402_v11 = vpop.f32.mrf.mxu2 }
 0x3e7   : > { %v5373_v33 = vpop.f32.mrf.mxu0  ;;  %v5389_v55 = vpop.f32.mrf.mxu1  ;;  %v5403_v44 = vadd.f32 %v5402_v11, %v5385_v7  ;;  %v9317_v11 = vld [vmem:[%s12680_s11 + $0x18] sm:$0xff]  ;;  %v9315_v7 = vld [vmem:[%s12680_s11 + $0x8] sm:$0xff] }
 0x3e8   : > { %v5390_v36 = vadd.f32 %v5389_v55, %v5372_v38  ;;  %v9344_v33 = vld [vmem:[%s12680_s11 + $0xf0] sm:$0xff]  ;;  %v9330_v38 = vld [vmem:[%s12680_s11 + $0x80] sm:$0xff] }
 0x3e9   : > { %6209 = vmatpush.bf16.msrb.mxu2 %v9317_v11  ;;  %v9316_v55 = vld [vmem:[%s12680_s11 + $0x10] sm:$0xff] }
 0x3ed   : > { %6210 = vmatpush.bf16.msrb.mxu2 %v9316_v55 }
 0x3ee   : > { %v5420_v31 = vpop.f32.mrf.mxu3  ;;  %v5404_v59 = vpop.f32.mrf.mxu2 }
 0x3ef   : > { %v5421_v45 = vadd.f32 %v5420_v31, %v5403_v44  ;;  %v5391_v60 = vpop.f32.mrf.mxu1  ;;  %v5405_v35 = vadd.f32 %v5404_v59, %v5387_v37  ;;  %v9342_v44 = vld [vmem:[%s12680_s11 + $0xe0] sm:$0xff]  ;;  %v9325_v59 = vld [vmem:[%s12680_s11 + $0x58] sm:$0xff]  ;;  %v9352_v37 = vld [vmem:[%s12680_s11 + $0x130] sm:$0xff] }
 0x3f0   : > { %v5438_v46 = vpop.f32.mrf.mxu0  ;;  %v9314_v31 = vld [vmem:[%s12680_s11] sm:$0xff]  ;;  %v9341_v60 = vld [vmem:[%s12680_s11 + $0xd8] sm:$0xff]  ;;  %6223 = vmatpush.bf16.msrb.mxu3 %v9325_v59  ;;  %v9368_v59 = vld [vmem:[%s12682_s13 + $0x70] sm:$0xff] }
 0x3f1   : > { %v5439_v12 = vadd.f32 %v5438_v46, %v5421_v45  ;;  %6211 = vmatpush.bf16.msrb.mxu2 %v9315_v7  ;;  %v9333_v45 = vld [vmem:[%s12680_s11 + $0x98] sm:$0xff]  ;;  %v9359_v7 = vld [vmem:[%s12682_s13 + $0x28] sm:$0xff] }
 0x3f2   : > { %v9353_v46 = vld [vmem:[%s12680_s11 + $0x138] sm:$0xff]  ;;  %6237 = vmatpush.bf16.msra.mxu0 %v9333_v45  ;;  %v9376_v45 = vld [vmem:[%s12682_s13 + $0xb0] sm:$0xff] }
 0x3f3   : > { %v5447_v30 = vmax.f32 %v5439_v12, 0.0  ;;  %v9340_v12 = vld [vmem:[%s12680_s11 + $0xd0] sm:$0xff] }
 0x3f4   : > { %6224 = vmatpush.bf16.msrb.mxu3 %v9324_v15  ;;  %v9375_v15 = vld [vmem:[%s12682_s13 + $0xa8] sm:$0xff] }
 0x3f5   : > { %5450 = vst [vmem:[#allocation5] sm:$0xff] %v5447_v30  ;;  %6212 = vmatpush.bf16.msrb.mxu2 %v9314_v31  ;;  %v9357_v31 = vld [vmem:[%s12682_s13 + $0x18] sm:$0xff] }
 0x3f6   : > { %v5422_v53 = vpop.f32.mrf.mxu3  ;;  %v5407_v49 = vpop.f32.mrf.mxu2  ;;  %6238 = vmatpush.bf16.msra.mxu0 %v9332_v47  ;;  %v9385_v47 = vld [vmem:[%s12682_s13 + $0xf8] sm:$0xff] }
 0x3f7   : > { %v5423_v63 = vadd.f32 %v5422_v53, %v5405_v35  ;;  %v5408_v5 = vadd.f32 %v5407_v49, %v5390_v36  ;;  %v9331_v35 = vld [vmem:[%s12680_s11 + $0x88] sm:$0xff]  ;;  %v9338_v36 = vld [vmem:[%s12680_s11 + $0xc0] sm:$0xff] }
 0x3f8   : > { %v5440_v48 = vpop.f32.mrf.mxu0  ;;  %v9339_v53 = vld [vmem:[%s12680_s11 + $0xc8] sm:$0xff]  ;;  %6225 = vmatpush.bf16.msrb.mxu3 %v9323_v28  ;;  %v9354_v28 = vld [vmem:[%s12682_s13] sm:$0xff] }
 0x3f9   : > { %v5441_v27 = vadd.f32 %v5440_v48, %v5423_v63  ;;  %v9351_v49 = vld [vmem:[%s12680_s11 + $0x128] sm:$0xff] }
 0x3fa   : > { %6239 = vmatpush.bf16.msra.mxu0 %v9331_v35  ;;  %v9365_v35 = vld [vmem:[%s12682_s13 + $0x58] sm:$0xff] }
 0x3fb   : > { %v5448_v62 = vmax.f32 %v5441_v27, 0.0 }
 0x3fc   : > { %6226 = vmatpush.bf16.msrb.mxu3 %v9322_v42  ;;  %v9382_v42 = vld [vmem:[%s12682_s13 + $0xe0] sm:$0xff] }
 0x3fd   : > { %5451 = vst [vmem:[#allocation5 + $0x8] sm:$0xff] %v5448_v62  ;;  %v9350_v62 = vld [vmem:[%s12680_s11 + $0x120] sm:$0xff] }
 0x3fe   : > { %v5425_v58 = vpop.f32.mrf.mxu3  ;;  %v5409_v50 = vpop.f32.mrf.mxu2  ;;  %6240 = vmatpush.bf16.msra.mxu0 %v9330_v38  ;;  %v9392_v38 = vld [vmem:[%s12682_s13 + $0x130] sm:$0xff] }
 0x3ff   : > { %v5426_v32 = vadd.f32 %v5425_v58, %v5408_v5  ;;  %v9349_v50 = vld [vmem:[%s12680_s11 + $0x118] sm:$0xff] }
 0x400   : > { %v5443_v16 = vpop.f32.mrf.mxu0 }
 0x401   : > { %v5444_v19 = vadd.f32 %v5443_v16, %v5426_v32 }
 0x403   : > { %v5449_v14 = vmax.f32 %v5444_v19, 0.0 }
 0x404   : > { %v5454_v43 = vld [vmem:[#allocation5 + $0x8] sm:$0x3f] }
 0x405   : > { %v5455_v39 = vld [vmem:[#allocation5 + $0x1] sm:$0xff]  ;;  %v5456_v56 = vld [vmem:[#allocation5 + $0x9] sm:$0x3f]  ;;  %5452 = vst [vmem:[#allocation5 + $0x10] sm:$0x3] %v5449_v14  ;;  %v5463_v22 = vpack.c.bf16 %v5454_v43, %v5447_v30 }
 0x406   : > { %v5464_v34 = vpack.c.bf16 %v5456_v56, %v5455_v39  ;;  %v5457_v18 = vld [vmem:[#allocation5 + $0x2] sm:$0xff]  ;;  %v5458_v8 = vld [vmem:[#allocation5 + $0xa] sm:$0x3f]  ;;  %v5427_v3 = vpop.f32.mrf.mxu3  ;;  %v9498_v30 = vld [vmem:[%s12679_s10] ss:$0 sm:$0xff] }
 0x407   : > { %v5465_v29 = vpack.c.bf16 %v5458_v8, %v5457_v18  ;;  %5800 = vmatmul.bf16.vlgmr.msra.gmra.mxu1 %v5463_v22  ;;  %v5459_v21 = vld [vmem:[#allocation5 + $0x3] sm:$0xff] }
 0x408   : > { %5814 = vmatmul.bf16.vlgmr.msra.gmra.mxu2 %v5464_v34  ;;  %v5445_v10 = vpop.f32.mrf.mxu0  ;;  %v5461_v41 = vld [vmem:[#allocation5 + $0x4] sm:$0xff]  ;;  %6247 = vmatpush.bf16.msra.mxu1 %v9345_v2 }
 0x409   : > { %5828 = vmatmul.bf16.vlgmr.msra.gmra.mxu3 %v5465_v29  ;;  %6261 = vmatpush.bf16.msra.mxu2 %v9353_v46  ;;  %v9348_v39 = vld [vmem:[%s12680_s11 + $0x110] sm:$0xff]  ;;  %v9347_v8 = vld [vmem:[%s12680_s11 + $0x108] sm:$0xff]  ;;  %v9361_v10 = vld [vmem:[%s12682_s13 + $0x38] sm:$0xff] }
 0x40a   : > { %6613 = vmatpush.bf16.msra.mxu3 %v9361_v10  ;;  %v9367_v46 = vld [vmem:[%s12682_s13 + $0x68] sm:$0xff] }
 0x40c   : > { %v5460_v26 = vld [vmem:[#allocation5 + $0xb] sm:$0x3f]  ;;  %6248 = vmatpush.bf16.msra.mxu1 %v9344_v33 }
 0x40d   : > { %v5466_v25 = vpack.c.bf16 %v5460_v26, %v5459_v21  ;;  %v5462_v52 = vld [vmem:[#allocation5 + $0xc] sm:$0x3f]  ;;  %6262 = vmatpush.bf16.msra.mxu2 %v9352_v37  ;;  %v9346_v26 = vld [vmem:[%s12680_s11 + $0x100] sm:$0xff] }
 0x40e   : > { %v5467_v6 = vpack.c.bf16 %v5462_v52, %v5461_v41  ;;  %v9360_v52 = vld [vmem:[%s12682_s13 + $0x30] sm:$0xff]  ;;  %v9374_v37 = vld [vmem:[%s12682_s13 + $0xa0] sm:$0xff] }
 0x40f   : > { %5842 = vmatmul.bf16.vlgmr.msrb.gmra.mxu0 %v5466_v25  ;;  %6614 = vmatpush.bf16.msra.mxu3 %v9360_v52 }
 0x410   : > { %6249 = vmatpush.bf16.msra.mxu1 %v9343_v4  ;;  %6626 = vmatpush.bf16.msrb.mxu0 %v9369_v24 }
 0x411   : > { %6263 = vmatpush.bf16.msra.mxu2 %v9351_v49  ;;  %v9383_v49 = vld [vmem:[%s12682_s13 + $0xe8] sm:$0xff] }
 0x413   : > { %6615 = vmatpush.bf16.msra.mxu3 %v9359_v7 }
 0x414   : > { %6250 = vmatpush.bf16.msra.mxu1 %v9342_v44  ;;  %v9377_v44 = vld [vmem:[%s12682_s13 + $0xb8] sm:$0xff]  ;;  %6627 = vmatpush.bf16.msrb.mxu0 %v9368_v59 }
 0x415   : > { %6264 = vmatpush.bf16.msra.mxu2 %v9350_v62  ;;  %v9391_v62 = vld [vmem:[%s12682_s13 + $0x128] sm:$0xff] }
 0x417   : > { %5856 = vmatmul.bf16.vlgmr.msrb.gmra.mxu1 %v5467_v6  ;;  %6616 = vmatpush.bf16.msra.mxu3 %v9358_v0 }
 0x418   : > { %6251 = vmatpush.bf16.msra.mxu1 %v9341_v60  ;;  %v9356_v60 = vld [vmem:[%s12682_s13 + $0x10] sm:$0xff]  ;;  %6628 = vmatpush.bf16.msrb.mxu0 %v9367_v46 }
 0x419   : > { %6265 = vmatpush.bf16.msra.mxu2 %v9349_v50  ;;  %v9370_v50 = vld [vmem:[%s12682_s13 + $0x80] sm:$0xff] }
 0x41b   : > { %6617 = vmatpush.bf16.msra.mxu3 %v9357_v31 }
 0x41c   : > { %6252 = vmatpush.bf16.msra.mxu1 %v9340_v12  ;;  %v9366_v12 = vld [vmem:[%s12682_s13 + $0x60] sm:$0xff] }
 0x41d   : > { %6266 = vmatpush.bf16.msra.mxu2 %v9348_v39  ;;  %6629 = vmatpush.bf16.msrb.mxu0 %v9366_v12  ;;  %v9379_v39 = vld [vmem:[%s12682_s13 + $0xc8] sm:$0xff] }
 0x41e   : > { %v9407_v12 = vld [vmem:[%s12684_s15 + $0x68] sm:$0xff] }
 0x41f   : > { %6618 = vmatpush.bf16.msra.mxu3 %v9356_v60 }
 0x420   : > { %6253 = vmatpush.bf16.msra.mxu1 %v9339_v53  ;;  %v9373_v53 = vld [vmem:[%s12682_s13 + $0x98] sm:$0xff] }
 0x421   : > { %6267 = vmatpush.bf16.msra.mxu2 %v9347_v8  ;;  %6630 = vmatpush.bf16.msrb.mxu0 %v9365_v35  ;;  %v9378_v8 = vld [vmem:[%s12682_s13 + $0xc0] sm:$0xff]  ;;  %v9425_v35 = vld [vmem:[%s12684_s15 + $0xf8] sm:$0xff] }
 0x424   : > { %6254 = vmatpush.bf16.msra.mxu1 %v9338_v36  ;;  %v9381_v36 = vld [vmem:[%s12682_s13 + $0xd8] sm:$0xff] }
 0x425   : > { %6268 = vmatpush.bf16.msra.mxu2 %v9346_v26  ;;  %v9387_v26 = vld [vmem:[%s12682_s13 + $0x108] sm:$0xff] }
 0x428   : > { %6639 = vmatpush.bf16.msrb.mxu1 %v9377_v44 }
 0x42c   : > { %6640 = vmatpush.bf16.msrb.mxu1 %v9376_v45 }
 0x430   : > { %6641 = vmatpush.bf16.msrb.mxu1 %v9375_v15 }
 0x434   : > { %6642 = vmatpush.bf16.msrb.mxu1 %v9374_v37  ;;  %v9398_v37 = vld [vmem:[%s12684_s15 + $0x20] sm:$0xff] }
 0x438   : > { %6643 = vmatpush.bf16.msrb.mxu1 %v9373_v53  ;;  %v9397_v53 = vld [vmem:[%s12684_s15 + $0x18] sm:$0xff] }
 0x484   : > { %v5801_v1 = vpop.f32.mrf.mxu1 }
 0x485   : > { %v5802_v63 = vadd.f32 %v9498_v30, %v5801_v1  ;;  %v9355_v1 = vld [vmem:[%s12682_s13 + $0x8] sm:$0xff] }
 0x486   : > { %6619 = vmatpush.bf16.msra.mxu3 %v9355_v1  ;;  %v9399_v1 = vld [vmem:[%s12684_s15 + $0x28] sm:$0xff] }
 0x48a   : > { %6620 = vmatpush.bf16.msra.mxu3 %v9354_v28  ;;  %v9417_v28 = vld [vmem:[%s12684_s15 + $0xb8] sm:$0xff] }
 0x48b   : > { %v5815_v9 = vpop.f32.mrf.mxu2 }
 0x48c   : > { %v5816_v48 = vadd.f32 %v5815_v9, %v5802_v63  ;;  %v5829_v27 = vpop.f32.mrf.mxu3  ;;  %v5803_v57 = vpop.f32.mrf.mxu1  ;;  %v9393_v63 = vld [vmem:[%s12682_s13 + $0x138] sm:$0xff]  ;;  %v9364_v9 = vld [vmem:[%s12682_s13 + $0x50] sm:$0xff] }
 0x48d   : > { %v5843_v58 = vpop.f32.mrf.mxu0  ;;  %v5804_v32 = vadd.f32 %v9498_v30, %v5803_v57  ;;  %v9384_v30 = vld [vmem:[%s12682_s13 + $0xf0] sm:$0xff]  ;;  %6631 = vmatpush.bf16.msrb.mxu0 %v9364_v9  ;;  %v9371_v57 = vld [vmem:[%s12682_s13 + $0x88] sm:$0xff] }
 0x48e   : > { %v5830_v5 = vadd.f32 %v5829_v27, %v5816_v48  ;;  %v9372_v48 = vld [vmem:[%s12682_s13 + $0x90] sm:$0xff]  ;;  %v9363_v27 = vld [vmem:[%s12682_s13 + $0x48] sm:$0xff] }
 0x48f   : > { %6644 = vmatpush.bf16.msrb.mxu1 %v9372_v48  ;;  %v9424_v9 = vld [vmem:[%s12684_s15 + $0xf0] sm:$0xff] }
 0x490   : > { %v5844_v19 = vadd.f32 %v5843_v58, %v5830_v5  ;;  %v9499_v5 = vld [vmem:[%s12681_s12] ss:$0 sm:$0xff]  ;;  %v9396_v48 = vld [vmem:[%s12684_s15 + $0x10] sm:$0xff] }
 0x491   : > { %6632 = vmatpush.bf16.msrb.mxu0 %v9363_v27  ;;  %v9362_v58 = vld [vmem:[%s12682_s13 + $0x40] sm:$0xff]  ;;  %v9423_v27 = vld [vmem:[%s12684_s15 + $0xe8] sm:$0xff] }
 0x493   : > { %v5817_v16 = vpop.f32.mrf.mxu2  ;;  %6645 = vmatpush.bf16.msrb.mxu1 %v9371_v57  ;;  %v9395_v57 = vld [vmem:[%s12684_s15 + $0x8] sm:$0xff] }
 0x494   : > { %v5818_v14 = vadd.f32 %v5817_v16, %v5804_v32  ;;  %v5857_v43 = vpop.f32.mrf.mxu1  ;;  %v5831_v22 = vpop.f32.mrf.mxu3  ;;  %v9380_v16 = vld [vmem:[%s12682_s13 + $0xd0] sm:$0xff] }
 0x495   : > { %v5858_v56 = vadd.f32 %v5857_v43, %v5844_v19  ;;  %v5845_v3 = vpop.f32.mrf.mxu0  ;;  %v9390_v19 = vld [vmem:[%s12682_s13 + $0x120] sm:$0xff]  ;;  %6633 = vmatpush.bf16.msrb.mxu0 %v9362_v58 }
 0x496   : > { %v5832_v34 = vadd.f32 %v5831_v22, %v5818_v14  ;;  %v9394_v58 = vld [vmem:[%s12684_s15] sm:$0xff] }
 0x497   : > { %v5862_v18 = vmax.f32 %v5858_v56, 0.0  ;;  %6646 = vmatpush.bf16.msrb.mxu1 %v9370_v50  ;;  %v9389_v56 = vld [vmem:[%s12682_s13 + $0x118] sm:$0xff]  ;;  %v9402_v50 = vld [vmem:[%s12684_s15 + $0x40] sm:$0xff] }
 0x498   : > { %v5846_v29 = vadd.f32 %v5845_v3, %v5832_v34  ;;  %v9388_v3 = vld [vmem:[%s12682_s13 + $0x110] sm:$0xff] }
 0x499   : > { %5864 = vst [vmem:[#allocation6] sm:$0xff] %v5862_v18 }
 0x49c   : > { %v5859_v21 = vpop.f32.mrf.mxu1 }
 0x49d   : > { %v5860_v25 = vadd.f32 %v5859_v21, %v5846_v29 }
 0x49f   : > { %v5863_v41 = vmax.f32 %v5860_v25, 0.0 }
 0x4a1   : > { %5865 = vst [vmem:[#allocation6 + $0x8] sm:$0x3f] %v5863_v41 }
 0x4a8   : > { %v5867_v6 = vld [vmem:[#allocation6 + $0x8] sm:$0x3]  ;;  %v5871_v11 = vld [vmem:[#allocation6 + $0xa] sm:$0x3]  ;;  %v5875_v13 = vld [vmem:[#allocation6 + $0xc] sm:$0x3] }
 0x4a9   : > { %v5868_v51 = vld [vmem:[#allocation6 + $0x1] sm:$0xff]  ;;  %v5869_v23 = vld [vmem:[#allocation6 + $0x9] sm:$0x3]  ;;  %v5876_v54 = vpack.c.bf16 %v5867_v6, %v5862_v18  ;;  %v5873_v33 = vld [vmem:[#allocation6 + $0xb] sm:$0x3] }
 0x4aa   : > { %v5877_v20 = vpack.c.bf16 %v5869_v23, %v5868_v51  ;;  %v5870_v2 = vld [vmem:[#allocation6 + $0x2] sm:$0xff]  ;;  %v9401_v6 = vld [vmem:[%s12684_s15 + $0x38] sm:$0xff] }
 0x4ab   : > { %v5872_v17 = vld [vmem:[#allocation6 + $0x3] sm:$0xff]  ;;  %v5878_v61 = vpack.c.bf16 %v5871_v11, %v5870_v2  ;;  %6213 = vmatmul.bf16.vlgmr.msrb.gmra.mxu2 %v5876_v54  ;;  %v9409_v51 = vld [vmem:[%s12684_s15 + $0x78] sm:$0xff]  ;;  %v9400_v2 = vld [vmem:[%s12684_s15 + $0x30] sm:$0xff] }
 0x4ac   : > { %6227 = vmatmul.bf16.vlgmr.msrb.gmra.mxu3 %v5877_v20  ;;  %v5879_v55 = vpack.c.bf16 %v5873_v33, %v5872_v17  ;;  %v5874_v40 = vld [vmem:[#allocation6 + $0x4] sm:$0xff]  ;;  %6652 = vmatpush.bf16.msrb.mxu2 %v9385_v47  ;;  %v9408_v11 = vld [vmem:[%s12684_s15 + $0x70] sm:$0xff] }
 0x4ad   : > { %6241 = vmatmul.bf16.vlgmr.msra.gmra.mxu0 %v5878_v61  ;;  %v5880_v4 = vpack.c.bf16 %v5875_v13, %v5874_v40  ;;  %6665 = vmatpush.bf16.msrb.mxu3 %v9393_v63  ;;  %v9386_v54 = vld [vmem:[%s12682_s13 + $0x100] sm:$0xff]  ;;  %v9416_v63 = vld [vmem:[%s12684_s15 + $0xb0] sm:$0xff] }
 0x4ae   : > { %6255 = vmatmul.bf16.vlgmr.msra.gmra.mxu1 %v5879_v55  ;;  %7077 = vmatpush.bf16.msra.mxu0 %v9401_v6  ;;  %v9500_v6 = vld [vmem:[%s12683_s14] ss:$0 sm:$0xff] }
 0x4af   : > { %7090 = vmatpush.bf16.msra.mxu1 %v9409_v51 }
 0x4b0   : > { %6653 = vmatpush.bf16.msrb.mxu2 %v9384_v30  ;;  %v9406_v30 = vld [vmem:[%s12684_s15 + $0x60] sm:$0xff] }
 0x4b1   : > { %6666 = vmatpush.bf16.msrb.mxu3 %v9392_v38  ;;  %v9415_v38 = vld [vmem:[%s12684_s15 + $0xa8] sm:$0xff] }
 0x4b2   : > { %7078 = vmatpush.bf16.msra.mxu0 %v9400_v2 }
 0x4b3   : > { %7091 = vmatpush.bf16.msra.mxu1 %v9408_v11 }
 0x4b4   : > { %6654 = vmatpush.bf16.msrb.mxu2 %v9383_v49  ;;  %v9405_v49 = vld [vmem:[%s12684_s15 + $0x58] sm:$0xff] }
 0x4b5   : > { %6667 = vmatpush.bf16.msrb.mxu3 %v9391_v62  ;;  %v9414_v62 = vld [vmem:[%s12684_s15 + $0xa0] sm:$0xff] }
 0x4b6   : > { %7079 = vmatpush.bf16.msra.mxu0 %v9399_v1 }
 0x4b7   : > { %7092 = vmatpush.bf16.msra.mxu1 %v9407_v12 }
 0x4b8   : > { %6655 = vmatpush.bf16.msrb.mxu2 %v9382_v42  ;;  %v9404_v42 = vld [vmem:[%s12684_s15 + $0x50] sm:$0xff] }
 0x4b9   : > { %6668 = vmatpush.bf16.msrb.mxu3 %v9390_v19  ;;  %v9433_v19 = vld [vmem:[%s12684_s15 + $0x138] sm:$0xff] }
 0x4ba   : > { %7080 = vmatpush.bf16.msra.mxu0 %v9398_v37 }
 0x4bb   : > { %6269 = vmatmul.bf16.vlgmr.msra.gmra.mxu2 %v5880_v4  ;;  %7093 = vmatpush.bf16.msra.mxu1 %v9406_v30 }
 0x4bc   : > { %6656 = vmatpush.bf16.msrb.mxu2 %v9381_v36  ;;  %v9403_v36 = vld [vmem:[%s12684_s15 + $0x48] sm:$0xff] }
 0x4bd   : > { %6669 = vmatpush.bf16.msrb.mxu3 %v9389_v56  ;;  %v9432_v56 = vld [vmem:[%s12684_s15 + $0x130] sm:$0xff] }
 0x4be   : > { %7081 = vmatpush.bf16.msra.mxu0 %v9397_v53 }
 0x4bf   : > { %7094 = vmatpush.bf16.msra.mxu1 %v9405_v49 }
 0x4c0   : > { %6657 = vmatpush.bf16.msrb.mxu2 %v9380_v16  ;;  %v9421_v16 = vld [vmem:[%s12684_s15 + $0xd8] sm:$0xff] }
 0x4c1   : > { %6670 = vmatpush.bf16.msrb.mxu3 %v9388_v3  ;;  %v9419_v3 = vld [vmem:[%s12684_s15 + $0xc8] sm:$0xff] }
 0x4c2   : > { %7082 = vmatpush.bf16.msra.mxu0 %v9396_v48 }
 0x4c3   : > { %7095 = vmatpush.bf16.msra.mxu1 %v9404_v42  ;;  %v9447_v42 = vld [vmem:[%s12686_s17 + $0x28] sm:$0xff] }
 0x4c4   : > { %6658 = vmatpush.bf16.msrb.mxu2 %v9379_v39  ;;  %v9420_v39 = vld [vmem:[%s12684_s15 + $0xd0] sm:$0xff] }
 0x4c5   : > { %6671 = vmatpush.bf16.msrb.mxu3 %v9387_v26  ;;  %v9418_v26 = vld [vmem:[%s12684_s15 + $0xc0] sm:$0xff] }
 0x4c6   : > { %7083 = vmatpush.bf16.msra.mxu0 %v9395_v57  ;;  %v9444_v57 = vld [vmem:[%s12686_s17 + $0x10] sm:$0xff] }
 0x4c7   : > { %7096 = vmatpush.bf16.msra.mxu1 %v9403_v36  ;;  %v9443_v36 = vld [vmem:[%s12686_s17 + $0x8] sm:$0xff] }
 0x4c8   : > { %6659 = vmatpush.bf16.msrb.mxu2 %v9378_v8  ;;  %v9411_v8 = vld [vmem:[%s12684_s15 + $0x88] sm:$0xff] }
 0x4c9   : > { %6672 = vmatpush.bf16.msrb.mxu3 %v9386_v54  ;;  %v9429_v54 = vld [vmem:[%s12684_s15 + $0x118] sm:$0xff] }
 0x4ca   : > { %7084 = vmatpush.bf16.msra.mxu0 %v9394_v58 }
 0x4cb   : > { %7097 = vmatpush.bf16.msra.mxu1 %v9402_v50  ;;  %v6788_v50 = vld [vmem:[%s12685_s16] sm:$0x1] }
 0x4cc   : > { %7103 = vmatpush.bf16.msra.mxu2 %v9417_v28 }
 0x4d0   : > { %7104 = vmatpush.bf16.msra.mxu2 %v9416_v63 }
 0x4d4   : > { %7105 = vmatpush.bf16.msra.mxu2 %v9415_v38  ;;  %v9446_v38 = vld [vmem:[%s12686_s17 + $0x20] sm:$0xff] }
 0x4d8   : > { %7106 = vmatpush.bf16.msra.mxu2 %v9414_v62  ;;  %v9442_v62 = vld [vmem:[%s12686_s17] sm:$0xff] }
 0x52a   : > { %v6242_v34 = vpop.f32.mrf.mxu0 }
 0x52b   : > { %v6256_v21 = vpop.f32.mrf.mxu1 }
 0x52e   : > { %v6214_v32 = vpop.f32.mrf.mxu2 }
 0x52f   : > { %v6215_v14 = vadd.f32 %v9499_v5, %v6214_v32  ;;  %v6228_v43 = vpop.f32.mrf.mxu3  ;;  %v9413_v32 = vld [vmem:[%s12684_s15 + $0x98] sm:$0xff] }
 0x530   : > { %7107 = vmatpush.bf16.msra.mxu2 %v9413_v32 }
 0x531   : > { %v6229_v22 = vadd.f32 %v6228_v43, %v6215_v14  ;;  %v9441_v14 = vld [vmem:[%s12684_s15 + $0x178] sm:$0xff]  ;;  %v9412_v43 = vld [vmem:[%s12684_s15 + $0x90] sm:$0xff] }
 0x532   : > { %v6244_v17 = vpop.f32.mrf.mxu0 }
 0x533   : > { %v6243_v29 = vadd.f32 %v6242_v34, %v6229_v22  ;;  %v6258_v55 = vpop.f32.mrf.mxu1  ;;  %v9440_v22 = vld [vmem:[%s12684_s15 + $0x170] sm:$0xff] }
 0x534   : > { %7108 = vmatpush.bf16.msra.mxu2 %v9412_v43 }
 0x535   : > { %v6257_v41 = vadd.f32 %v6256_v21, %v6243_v29  ;;  %v9431_v29 = vld [vmem:[%s12684_s15 + $0x128] sm:$0xff]  ;;  %v9410_v21 = vld [vmem:[%s12684_s15 + $0x80] sm:$0xff] }
 0x536   : > { %v6216_v18 = vpop.f32.mrf.mxu2 }
 0x537   : > { %v6217_v10 = vadd.f32 %v9499_v5, %v6216_v18  ;;  %v6230_v25 = vpop.f32.mrf.mxu3  ;;  %v9422_v5 = vld [vmem:[%s12684_s15 + $0xe0] sm:$0xff] }
 0x538   : > { %7109 = vmatpush.bf16.msra.mxu2 %v9411_v8 }
 0x539   : > { %v6231_v52 = vadd.f32 %v6230_v25, %v6217_v10  ;;  %v9439_v10 = vld [vmem:[%s12684_s15 + $0x168] sm:$0xff] }
 0x53b   : > { %v6245_v61 = vadd.f32 %v6244_v17, %v6231_v52  ;;  %v9430_v52 = vld [vmem:[%s12684_s15 + $0x120] sm:$0xff] }
 0x53c   : > { %7110 = vmatpush.bf16.msra.mxu2 %v9410_v21 }
 0x53d   : > { %v6259_v40 = vadd.f32 %v6258_v55, %v6245_v61  ;;  %v9428_v61 = vld [vmem:[%s12684_s15 + $0x110] sm:$0xff] }
 0x53e   : > { %v6270_v23 = vpop.f32.mrf.mxu2 }
 0x53f   : > { %v6271_v20 = vadd.f32 %v6270_v23, %v6257_v41  ;;  %v9438_v41 = vld [vmem:[%s12684_s15 + $0x160] sm:$0xff] }
 0x541   : > { %v6275_v33 = vmax.f32 %v6271_v20, 0.0  ;;  %v9437_v20 = vld [vmem:[%s12684_s15 + $0x158] sm:$0xff] }
 0x543   : > { %6277 = vst [vmem:[#allocation7] sm:$0xff] %v6275_v33  ;;  %v9436_v33 = vld [vmem:[%s12684_s15 + $0x150] sm:$0xff] }
 0x546   : > { %v6272_v13 = vpop.f32.mrf.mxu2 }
 0x547   : > { %v6273_v4 = vadd.f32 %v6272_v13, %v6259_v40  ;;  %v9427_v40 = vld [vmem:[%s12684_s15 + $0x108] sm:$0xff] }
 0x548   : > { %v9435_v13 = vld [vmem:[%s12684_s15 + $0x148] sm:$0xff] }
 0x549   : > { %v6276_v7 = vmax.f32 %v6273_v4, 0.0 }
 0x54a   : > { %v6279_v0 = vld [vmem:[#allocation7] sm:$0x3f] }
 0x54b   : > { %v6280_v24 = vld [vmem:[#allocation7 + $0x1] sm:$0x3f]  ;;  %6278 = vst [vmem:[#allocation7 + $0x8] sm:$0x3] %v6276_v7  ;;  %v6284_v31 = vpack.c.bf16 %v6279_v0, %v6279_v0  ;;  %v9449_v0 = vld [vmem:[%s12686_s17 + $0x38] sm:$0xff] }
 0x54c   : > { %v6281_v44 = vld [vmem:[#allocation7 + $0x2] sm:$0x3f]  ;;  %v6285_v59 = vpack.c.bf16 %v6280_v24, %v6280_v24 }
 0x54d   : > { %v6286_v45 = vpack.c.bf16 %v6281_v44, %v6281_v44  ;;  %6621 = vmatmul.bf16.vlgmr.msra.gmra.mxu3 %v6284_v31  ;;  %v9426_v31 = vld [vmem:[%s12684_s15 + $0x100] sm:$0xff] }
 0x54e   : > { %6634 = vmatmul.bf16.vlgmr.msrb.gmra.mxu0 %v6285_v59  ;;  %7116 = vmatpush.bf16.msra.mxu3 %v9425_v35  ;;  %v9434_v59 = vld [vmem:[%s12684_s15 + $0x140] sm:$0xff] }
 0x54f   : > { %6647 = vmatmul.bf16.vlgmr.msrb.gmra.mxu1 %v6286_v45  ;;  %7129 = vmatpush.bf16.msrb.mxu0 %v9433_v19 }
 0x550   : > { %7142 = vmatpush.bf16.msrb.mxu1 %v9441_v14 }
 0x552   : > { %v6282_v60 = vld [vmem:[#allocation7 + $0x3] sm:$0x3f]  ;;  %7117 = vmatpush.bf16.msra.mxu3 %v9424_v9 }
 0x553   : > { %v6287_v46 = vpack.c.bf16 %v6282_v60, %v6282_v60  ;;  %v6283_v15 = vld [vmem:[#allocation7 + $0x4] sm:$0x3f]  ;;  %7130 = vmatpush.bf16.msrb.mxu0 %v9432_v56 }
 0x554   : > { %v6288_v47 = vpack.c.bf16 %v6283_v15, %v6283_v15  ;;  %7143 = vmatpush.bf16.msrb.mxu1 %v9440_v22  ;;  %v9448_v60 = vld [vmem:[%s12686_s17 + $0x30] sm:$0xff] }
 0x555   : > { %6660 = vmatmul.bf16.vlgmr.msrb.gmra.mxu2 %v6287_v46 }
 0x556   : > { %7118 = vmatpush.bf16.msra.mxu3 %v9423_v27  ;;  %7221 = vmatpush.bf16.msrb.mxu2 %v9449_v0  ;;  %v9445_v27 = vld [vmem:[%s12686_s17 + $0x18] sm:$0xff] }
 0x557   : > { %7131 = vmatpush.bf16.msrb.mxu0 %v9431_v29 }
 0x558   : > { %7144 = vmatpush.bf16.msrb.mxu1 %v9439_v10 }
 0x55a   : > { %7119 = vmatpush.bf16.msra.mxu3 %v9422_v5  ;;  %7222 = vmatpush.bf16.msrb.mxu2 %v9448_v60 }
 0x55b   : > { %7132 = vmatpush.bf16.msrb.mxu0 %v9430_v52  ;;  %v7172_v52 = vld [vmem:[%s12847_s0] sm:$0x1] }
 0x55c   : > { %7145 = vmatpush.bf16.msrb.mxu1 %v9438_v41 }
 0x55d   : > { %6673 = vmatmul.bf16.vlgmr.msrb.gmra.mxu3 %v6288_v47 }
 0x55e   : > { %7120 = vmatpush.bf16.msra.mxu3 %v9421_v16  ;;  %7223 = vmatpush.bf16.msrb.mxu2 %v9447_v42 }
 0x55f   : > { %7133 = vmatpush.bf16.msrb.mxu0 %v9429_v54 }
 0x560   : > { %7146 = vmatpush.bf16.msrb.mxu1 %v9437_v20 }
 0x562   : > { %7121 = vmatpush.bf16.msra.mxu3 %v9420_v39  ;;  %7224 = vmatpush.bf16.msrb.mxu2 %v9446_v38 }
 0x563   : > { %7134 = vmatpush.bf16.msrb.mxu0 %v9428_v61 }
 0x564   : > { %7147 = vmatpush.bf16.msrb.mxu1 %v9436_v33 }
 0x566   : > { %7122 = vmatpush.bf16.msra.mxu3 %v9419_v3  ;;  %7225 = vmatpush.bf16.msrb.mxu2 %v9445_v27 }
 0x567   : > { %7135 = vmatpush.bf16.msrb.mxu0 %v9427_v40 }
 0x568   : > { %7148 = vmatpush.bf16.msrb.mxu1 %v9435_v13 }
 0x56a   : > { %7123 = vmatpush.bf16.msra.mxu3 %v9418_v26  ;;  %7226 = vmatpush.bf16.msrb.mxu2 %v9444_v57 }
 0x56b   : > { %7136 = vmatpush.bf16.msrb.mxu0 %v9426_v31 }
 0x56c   : > { %7149 = vmatpush.bf16.msrb.mxu1 %v9434_v59 }
 0x56e   : > { %7227 = vmatpush.bf16.msrb.mxu2 %v9443_v36 }
 0x572   : > { %7228 = vmatpush.bf16.msrb.mxu2 %v9442_v62 }
 0x5cb   : > { %v6635_v34 = vpop.f32.mrf.mxu0 }
 0x5cc   : > { %v6648_v18 = vpop.f32.mrf.mxu1 }
 0x5d0   : > { %v6622_v25 = vpop.f32.mrf.mxu3 }
 0x5d1   : > { %v6623_v2 = vadd.f32 %v9500_v6, %v6622_v25 }
 0x5d3   : > { %v6637_v51 = vpop.f32.mrf.mxu0  ;;  %v6636_v55 = vadd.f32 %v6635_v34, %v6623_v2 }
 0x5d4   : > { %v6650_v23 = vpop.f32.mrf.mxu1 }
 0x5d5   : > { %v6649_v4 = vadd.f32 %v6648_v18, %v6636_v55 }
 0x5d8   : > { %v6624_v11 = vpop.f32.mrf.mxu3  ;;  %v6661_v17 = vpop.f32.mrf.mxu2 }
 0x5d9   : > { %v6662_v7 = vadd.f32 %v6661_v17, %v6649_v4 }
 0x5e0   : > { %v6663_v24 = vpop.f32.mrf.mxu2  ;;  %v6674_v44 = vpop.f32.mrf.mxu3 }
 0x5e1   : > { %v6675_v45 = vadd.f32 %v6674_v44, %v6662_v7 }
 0x5e3   : > { %v6678_v46 = vmax.f32 %v6675_v45, 0.0 }
 0x5e5   : > { %6679 = vst [vmem:[#allocation8] sm:$0x3f] %v6678_v46 }
 0x5e8   : > { %v6676_v15 = vpop.f32.mrf.mxu3 }
 0x5ec   : > { %v6680_v47 = vld [vmem:[#allocation8] sm:$0x1]  ;;  %v6681_v1 = vld [vmem:[#allocation8 + $0x1] sm:$0x1]  ;;  %v6682_v12 = vld [vmem:[#allocation8 + $0x2] sm:$0x1] }
 0x5ed   : > { %v6686_v37 = vpack.c.bf16 %v6680_v47, %v6680_v47  ;;  %v6687_v30 = vpack.c.bf16 %v6681_v1, %v6681_v1  ;;  %v6688_v28 = vpack.c.bf16 %v6682_v12, %v6682_v12  ;;  %v6683_v35 = vld [vmem:[#allocation8 + $0x3] sm:$0x1]  ;;  %v6684_v49 = vld [vmem:[#allocation8 + $0x4] sm:$0x1]  ;;  %v6685_v63 = vld [vmem:[#allocation8 + $0x5] sm:$0x1] }
 0x5ee   : > { %v6689_v53 = vpack.c.bf16 %v6683_v35, %v6683_v35  ;;  %v6690_v9 = vpack.c.bf16 %v6684_v49, %v6684_v49  ;;  %v6691_v48 = vpack.c.bf16 %v6685_v63, %v6685_v63 }
 0x5ef   : > { %7085 = vmatmul.bf16.vlgmr.msra.gmra.mxu0 %v6686_v37  ;;  %7098 = vmatmul.bf16.vlgmr.msra.gmra.mxu1 %v6687_v30 }
 0x5f0   : > { %7111 = vmatmul.bf16.vlgmr.msra.gmra.mxu2 %v6688_v28  ;;  %7124 = vmatmul.bf16.vlgmr.msra.gmra.mxu3 %v6689_v53 }
 0x5ff   : > { %7137 = vmatmul.bf16.vlgmr.msrb.gmra.mxu0 %v6690_v9  ;;  %7150 = vmatmul.bf16.vlgmr.msrb.gmra.mxu1 %v6691_v48 }
 0x66c   : > { %v7086_v5 = vpop.f32.mrf.mxu0  ;;  %v7099_v58 = vpop.f32.mrf.mxu1 }
 0x66d   : > { %v7087_v32 = vadd.f32 %v7086_v5, %v6788_v50 }
 0x66f   : > { %v7100_v39 = vadd.f32 %v7099_v58, %v7087_v32 }
 0x673   : > { %v7112_v16 = vpop.f32.mrf.mxu2  ;;  %v7125_v19 = vpop.f32.mrf.mxu3 }
 0x674   : > { %v7088_v14 = vpop.f32.mrf.mxu0  ;;  %v7101_v43 = vpop.f32.mrf.mxu1  ;;  %v7113_v56 = vadd.f32 %v7112_v16, %v7100_v39 }
 0x676   : > { %v7126_v22 = vadd.f32 %v7125_v19, %v7113_v56 }
 0x67b   : > { %v7114_v34 = vpop.f32.mrf.mxu2  ;;  %v7127_v18 = vpop.f32.mrf.mxu3 }
 0x67c   : > { %v7138_v8 = vpop.f32.mrf.mxu0  ;;  %v7151_v3 = vpop.f32.mrf.mxu1 }
 0x67d   : > { %v7139_v29 = vadd.f32 %v7138_v8, %v7126_v22 }
 0x67f   : > { %v7152_v10 = vadd.f32 %v7151_v3, %v7139_v29 }
 0x681   : > { %v7155_v21 = vpack.c.bf16 %v7152_v10, %v7152_v10 }
 0x683   : > { %7229 = vmatmul.bf16.vlgmr.msrb.gmra.mxu2 %v7155_v21 }
 0x684   : > { %v7140_v26 = vpop.f32.mrf.mxu0  ;;  %v7153_v25 = vpop.f32.mrf.mxu1 }
 0x706   : > { %v7230_v41 = vpop.f32.mrf.mxu2 }
 0x707   : > { %v7231_v6 = vadd.f32 %v7230_v41, %v7172_v52 }
 0x709   : > { %7234 = vst [vmem:[%s594_s21] sm:$0x1] %v7231_v6 }
 0x70a   : > { %9535 = shalt.err (!%p9532_p3)
}
 0x70b   : > { %9451 = dma.vmem_to_hbm [thread:$0]  (%p9711_p5), %s7247_s3, 16, %s7249_s24, %s7236_s27  }
 0x70e   : > { %v7232_v51 = vpop.f32.mrf.mxu2 }
 0x70f PF: > { %s12848_s28 = sld [smem:[#allocation14_spill]] }
 0x710   : > { %s12849_s2 = sld [smem:[#allocation12_spill]] }
 0x715   : > { %p9457_p4 = scmp.ge.s32.totalorder %s12848_s28, 2 }
 0x716   : > { %s7260_s21 = sand.u32 1, %s12849_s2  }
 0x717   : > { %p9454_p7 = pnand %p9457_p4, %p9715_p6  ;;  %s7261_s1 = scalar_lea.sflag [#allocation10], %s7260_s21 }
 0x719   : > { %p9455_p8 = pneg %p9454_p7 }
 0x71b   : > { %9553 = dma.done.wait (%p9455_p8), %s7261_s1, 16  }
 0x71c   : > { %9555 = vsyncadd (%p9455_p8), %s7261_s1, 4294967280  ;;  %s12851_s21 = sld [smem:[#allocation15_spill]]  ;;  %s12854_s0 = smov %s9562_s30 }
 0x71d   : > { %s12852_s4 = sld [smem:[#allocation13_spill]] }
 0x71e   : > { %s12853_s20 = sld [smem:[#allocation16_spill]] }
 0x722   : > { %p29_p9 = scmp.ge.s32.totalorder %s12851_s21, 4  }
 0x723   : > { %s12855_s30 = smov %s12852_s4 }
 0x724   :  { %31 = sbr.rel (!%p29_p9) target bundleno = 11 (0xb), region = 139 }
 0x729   :  { %7266 = vsyncpa [#allocation10], 1 }
 0x72a   :  { %7268 = vsyncpa [#allocation10 + $0x1], 1 }

</bundles_post_ra>
